<compile_context>
chip_gen: v7x
topology: tpu7x:2x2x1
jax: 0.10.0
libtpu: 0.0.40
codegen_flags: <defaults>
</compile_context>

<pallas_src>
import math

import jax
import jax.numpy as jnp
from jax import lax
from jax.experimental import pallas as pl
from jax.experimental.pallas import tpu as pltpu

_LN_EPS = 1e-5


def _make_decoder_kernel(num_heads: int, head_dim: int):
    H, hd = num_heads, head_dim

    def layernorm(t, g, b):
        mu = jnp.mean(t, axis=-1, keepdims=True)
        var = jnp.mean((t - mu) ** 2, axis=-1, keepdims=True)
        return (t - mu) * lax.rsqrt(var + _LN_EPS) * g + b

    def attention(q_rows_bf, k_bf, v_bf, wq_bf, bq, wo_bf, bo):
        # Q projection (1/sqrt(hd) already folded into wq/bq): bf16 MXU, f32 acc.
        q = jnp.dot(q_rows_bf, wq_bf, preferred_element_type=jnp.float32) + bq
        q_bf = q.astype(jnp.bfloat16)          # single cast, outside the head loop
        heads = []
        # TODO(synk): switch to lax.fori_loop(..., unroll=True) + pl.ds slices if
        # num_heads grows large enough for unrolled live ranges to spill.
        for h in range(H):
            sl = slice(h * hd, (h + 1) * hd)
            # Contract the last dim of both operands -> no explicit K transpose.
            e = lax.dot_general(q_bf[:, sl], k_bf[:, sl], (((1,), (1,)), ((), ())),
                                preferred_element_type=jnp.float32)
            e = e - jnp.max(e, axis=-1, keepdims=True)
            p = jnp.exp(e)
            p = p / jnp.sum(p, axis=-1, keepdims=True)   # exact softmax denom (f32)
            heads.append(jnp.dot(p.astype(jnp.bfloat16), v_bf[:, sl],
                                 preferred_element_type=jnp.float32))
        # One D-deep output projection instead of H shallow (K=head_dim) matmuls.
        cat = jnp.concatenate(heads, axis=-1).astype(jnp.bfloat16)   # (tq, D)
        return jnp.dot(cat, wo_bf, preferred_element_type=jnp.float32) + bo

    def kernel(x_ref, ks_ref, vs_ref, kc_ref, vc_ref,
               wq1_ref, wo1_ref, wq2_ref, wo2_ref,
               w1_ref, b1_ref, w2_ref, vecs_ref,
               o_ref):
        x_q = x_ref[...]                        # (tq, D)   f32 query-tile rows
        ks, vs = ks_ref[...], vs_ref[...]       # (S, D)    bf16 self-attn K/V
        kc, vc = kc_ref[...], vc_ref[...]       # (Senc, D) bf16 cross-attn K/V

        vecs = vecs_ref[...]                    # (11, D)   packed f32 bias/LN rows
        bq1, bo1, g1, be1 = vecs[0:1], vecs[1:2], vecs[2:3], vecs[3:4]
        bq2, bo2, g2, be2 = vecs[4:5], vecs[5:6], vecs[6:7], vecs[7:8]
        b2, g3, be3 = vecs[8:9], vecs[9:10], vecs[10:11]

        # ---- Self-attention (K/V precomputed once per call, not per tile).
        attn = attention(x_q.astype(jnp.bfloat16), ks, vs,
                         wq1_ref[...], bq1, wo1_ref[...], bo1)
        y1 = layernorm(x_q + attn, g1, be1)            # dropout = identity (eval)

        # ---- Cross-attention against encoder output.
        cross = attention(y1.astype(jnp.bfloat16), kc, vc,
                          wq2_ref[...], bq2, wo2_ref[...], bo2)
        y2 = layernorm(y1 + cross, g2, be2)

        # ---- Position-wise feed-forward.
        f = jnp.dot(y2.astype(jnp.bfloat16), w1_ref[...],
                    preferred_element_type=jnp.float32) + b1_ref[...]
        f = jnp.maximum(f, 0.0)
        f = jnp.dot(f.astype(jnp.bfloat16), w2_ref[...],
                    preferred_element_type=jnp.float32) + b2

        o_ref[...] = layernorm(y2 + f, g3, be3).astype(o_ref.dtype)

    return kernel


def prepare_decoder_params(params, num_heads):
    """One-time weight prep: bf16 MXU operands, scale folded into Wq, packed vectors.

    Do this once and reuse across forward passes (avoids per-call re-casting)."""
    D = params["sa_wq"].shape[0]
    hd = D // num_heads
    scale = 1.0 / math.sqrt(hd)
    bf16, f32 = jnp.bfloat16, jnp.float32

    vecs = jnp.concatenate([
        params["sa_bq"] * scale, params["sa_bo"], params["ln1_g"], params["ln1_b"],
        params["ca_bq"] * scale, params["ca_bo"], params["ln2_g"], params["ln2_b"],
        params["b2"], params["ln3_g"], params["ln3_b"],
    ], axis=0).astype(f32)                                    # (11, D)

    return {
        "wq1": (params["sa_wq"] * scale).astype(bf16),
        "wo1": params["sa_wo"].astype(bf16),
        "wq2": (params["ca_wq"] * scale).astype(bf16),
        "wo2": params["ca_wo"].astype(bf16),
        "w1": params["w1"].astype(bf16),
        "b1": params["b1"].astype(f32),
        "w2": params["w2"].astype(bf16),
        "vecs": vecs,
        # f32 K/V projection weights: K/V are hoisted out of the kernel and
        # computed once per call (per sequence), not once per query tile.
        "wk1": params["sa_wk"], "bk1": params["sa_bk"],
        "wv1": params["sa_wv"], "bv1": params["sa_bv"],
        "wk2": params["ca_wk"], "bk2": params["ca_bk"],
        "wv2": params["ca_wv"], "bv2": params["ca_bv"],
    }


def decoder_layer_pallas(x, enc_out, prep, num_heads, *, q_tile=None):
    """x: (B, S, D) f32; enc_out: (B, S_enc, D) f32 -> (B, S, D) f32."""
    B, S, D = x.shape
    B2, S_enc, D2 = enc_out.shape
    assert B2 == B and D2 == D
    head_dim = D // num_heads
    assert head_dim * num_heads == D

    if q_tile is None:
        q_tile = S if S <= 256 else 256
        while S % q_tile:
            q_tile //= 2
    assert S % q_tile == 0
    n_q = S // q_tile

    bf16, f32 = jnp.bfloat16, jnp.float32
    x = x.astype(f32)
    enc_out = enc_out.astype(f32)

    # K/V hoisted out of the per-query-tile loop: one XLA matmul per projection,
    # DMA'd into the kernel as bf16 (halves activation HBM/VMEM traffic).
    k_self = (x @ prep["wk1"] + prep["bk1"]).astype(bf16)
    v_self = (x @ prep["wv1"] + prep["bv1"]).astype(bf16)
    k_cross = (enc_out @ prep["wk2"] + prep["bk2"]).astype(bf16)
    v_cross = (enc_out @ prep["wv2"] + prep["bv2"]).astype(bf16)

    weights = [prep["wq1"], prep["wo1"], prep["wq2"], prep["wo2"],
               prep["w1"], prep["b1"], prep["w2"], prep["vecs"]]

    kernel = _make_decoder_kernel(num_heads, head_dim)

    act_specs = [
        pl.BlockSpec((None, q_tile, D), lambda b, qi: (b, qi, 0)),   # x query tile
        pl.BlockSpec((None, S, D), lambda b, qi: (b, 0, 0)),         # K self
        pl.BlockSpec((None, S, D), lambda b, qi: (b, 0, 0)),         # V self
        pl.BlockSpec((None, S_enc, D), lambda b, qi: (b, 0, 0)),     # K cross
        pl.BlockSpec((None, S_enc, D), lambda b, qi: (b, 0, 0)),     # V cross
    ]
    out_specs = pl.BlockSpec((None, q_tile, D), lambda b, qi: (b, qi, 0))

    def const_spec(arr, single_buffer):
        nd = arr.ndim
        idx = lambda b, qi, _n=nd: (0,) * _n
        if single_buffer:
            try:
                # Weight blocks never change across the grid -> single-buffer them
                # so default double-buffering doesn't waste VMEM.
                return pl.BlockSpec(arr.shape, idx, pipeline_mode=pl.Buffered(1))
            except TypeError:
                pass
        return pl.BlockSpec(arr.shape, idx)

    # --- VMEM budget: single-buffered weights + double-buffered activation/output
    #     blocks + compiler scratch headroom, capped at ~3/4 of physical VMEM.
    weight_bytes = sum(int(a.size) * a.dtype.itemsize for a in weights)
    act_bytes = (q_tile * D * 4 + 2 * S * D * 2 + 2 * S_enc * D * 2 + q_tile * D * 4)
    needed = weight_bytes + 2 * act_bytes + (8 << 20)
    phys = 64 << 20
    try:
        phys = int(getattr(pltpu.get_tpu_info(), "vmem_capacity_bytes", phys))
    except Exception:
        pass
    vmem_limit = max(16 << 20, min(max(needed, 32 << 20), (phys * 3) // 4))

    # --- advisory cost estimate for XLA's scheduler (kernel work only).
    d_ff = prep["w1"].shape[1]
    flops = B * (2 * S * D * D * 4          # Q projections + output projections
                 + 4 * S * S * D            # self-attn scores + PV
                 + 4 * S * S_enc * D        # cross-attn scores + PV
                 + 4 * S * D * d_ff)        # FFN
    transcendentals = B * num_heads * S * (S + S_enc)
    bytes_accessed = (int(x.size) * 4
                      + int(k_self.size + v_self.size + k_cross.size + v_cross.size) * 2
                      + weight_bytes + B * S * D * 4)
    cost = pl.CostEstimate(flops=int(flops), transcendentals=int(transcendentals),
                           bytes_accessed=int(bytes_accessed))

    def build(single_buffer_weights):
        return pl.pallas_call(
            kernel,
            out_shape=jax.ShapeDtypeStruct((B, S, D), f32),
            grid=(B, n_q),
            in_specs=act_specs + [const_spec(a, single_buffer_weights) for a in weights],
            out_specs=out_specs,
            compiler_params=pltpu.CompilerParams(
                dimension_semantics=("parallel", "parallel"),
                vmem_limit_bytes=int(vmem_limit)),
            cost_estimate=cost,
        )

    args = (x, k_self, v_self, k_cross, v_cross, *weights)
    try:
        return build(True)(*args)
    except Exception:
        # Fallback for jax versions without Buffered(1) single-buffering support.
        return build(False)(*args)


def init_params(key, d_model, d_ff):
    """Deterministic synthetic parameters (shapes match the PyTorch module)."""
    keys = iter(jax.random.split(key, 32))
    s = 0.05

    def lin(shape):
        return jax.random.normal(next(keys), shape, jnp.float32) * s

    p = {}
    for pre in ("sa", "ca"):
        p[pre + "_wq"] = lin((d_model, d_model)); p[pre + "_bq"] = lin((1, d_model))
        p[pre + "_wk"] = lin((d_model, d_model)); p[pre + "_bk"] = lin((1, d_model))
        p[pre + "_wv"] = lin((d_model, d_model)); p[pre + "_bv"] = lin((1, d_model))
        p[pre + "_wo"] = lin((d_model, d_model)); p[pre + "_bo"] = lin((1, d_model))
    p["w1"] = lin((d_model, d_ff)); p["b1"] = lin((1, d_ff))
    p["w2"] = lin((d_ff, d_model)); p["b2"] = lin((1, d_model))
    for i in (1, 2, 3):
        p[f"ln{i}_g"] = 1.0 + 0.1 * jax.random.normal(next(keys), (1, d_model), jnp.float32)
        p[f"ln{i}_b"] = 0.1 * jax.random.normal(next(keys), (1, d_model), jnp.float32)
    return p


def _reference(x, enc, p, num_heads):
    """Pure-JAX f32 reference of the PyTorch DecoderLayer (eval mode, mask=None)."""
    D = x.shape[-1]
    hd = D // num_heads

    def mha(q_in, kv_in, pre):
        B, Sq, _ = q_in.shape
        Sk = kv_in.shape[1]
        q = q_in @ p[pre + "_wq"] + p[pre + "_bq"]
        k = kv_in @ p[pre + "_wk"] + p[pre + "_bk"]
        v = kv_in @ p[pre + "_wv"] + p[pre + "_bv"]
        q = q.reshape(B, Sq, num_heads, hd).transpose(0, 2, 1, 3)
        k = k.reshape(B, Sk, num_heads, hd).transpose(0, 2, 1, 3)
        v = v.reshape(B, Sk, num_heads, hd).transpose(0, 2, 1, 3)
        e = jnp.einsum("bhqd,bhkd->bhqk", q, k) / math.sqrt(hd)
        a = jax.nn.softmax(e, axis=-1)
        o = jnp.einsum("bhqk,bhkd->bhqd", a, v).transpose(0, 2, 1, 3).reshape(B, Sq, D)
        return o @ p[pre + "_wo"] + p[pre + "_bo"]

    def ln(t, g, b, eps=1e-5):
        mu = t.mean(-1, keepdims=True)
        var = ((t - mu) ** 2).mean(-1, keepdims=True)
        return (t - mu) / jnp.sqrt(var + eps) * g + b

    y1 = ln(x + mha(x, x, "sa"), p["ln1_g"], p["ln1_b"])
    y2 = ln(y1 + mha(y1, enc, "ca"), p["ln2_g"], p["ln2_b"])
    f = jnp.maximum(y2 @ p["w1"] + p["b1"], 0.0) @ p["w2"] + p["b2"]
    return ln(y2 + f, p["ln3_g"], p["ln3_b"])


if __name__ == "__main__":
    B, S, S_ENC, D, H, DFF = 2, 8, 16, 32, 4, 64
    key = jax.random.PRNGKey(0)
    kx, ke, kp = jax.random.split(key, 3)
    x = jax.random.normal(kx, (B, S, D), jnp.float32)
    enc = jax.random.normal(ke, (B, S_ENC, D), jnp.float32)
    params = init_params(kp, D, DFF)

    prep = prepare_decoder_params(params, H)          # one-time weight prep
    out = decoder_layer_pallas(x, enc, prep, H)
    out = jax.block_until_ready(out)

    ref = _reference(x, enc, params, H)
    assert out.shape == (B, S, D)
    err = float(jnp.max(jnp.abs(out - ref)))
    # bf16 matmul operands vs f32 reference => loose tolerance (softmax/LN are f32).
    assert err < 3e-2, err

    print("KERNEL_OK")
</pallas_src>

<mosaic_0001>
module attributes {stable_mosaic.version = 11 : i64} {
  func.func @kernel(%arg0: i32, %arg1: i32, %arg2: memref<1x8x32xf32, #tpu.memory_space<vmem>>, %arg3: memref<1x8x32xbf16, #tpu.memory_space<vmem>>, %arg4: memref<1x8x32xbf16, #tpu.memory_space<vmem>>, %arg5: memref<1x16x32xbf16, #tpu.memory_space<vmem>>, %arg6: memref<1x16x32xbf16, #tpu.memory_space<vmem>>, %arg7: memref<32x32xbf16, #tpu.memory_space<vmem>>, %arg8: memref<32x32xbf16, #tpu.memory_space<vmem>>, %arg9: memref<32x32xbf16, #tpu.memory_space<vmem>>, %arg10: memref<32x32xbf16, #tpu.memory_space<vmem>>, %arg11: memref<32x64xbf16, #tpu.memory_space<vmem>>, %arg12: memref<1x64xf32, #tpu.memory_space<vmem>>, %arg13: memref<64x32xbf16, #tpu.memory_space<vmem>>, %arg14: memref<11x32xf32, #tpu.memory_space<vmem>>, %arg15: memref<1x8x32xf32, #tpu.memory_space<vmem>>) attributes {dimension_semantics = [#tpu.dimension_semantics<parallel>, #tpu.dimension_semantics<parallel>], iteration_bounds = array<i64: 2, 1>, scalar_prefetch = 0 : i64, scratch_operands = 0 : i64, tpu.core_type = #tpu.core_type<tc>, window_params = [{transform_indices = @transform_0, window_bounds = array<i64: 1, 8, 32>}, {transform_indices = @transform_1, window_bounds = array<i64: 1, 8, 32>}, {transform_indices = @transform_2, window_bounds = array<i64: 1, 8, 32>}, {transform_indices = @transform_3, window_bounds = array<i64: 1, 16, 32>}, {transform_indices = @transform_4, window_bounds = array<i64: 1, 16, 32>}, {pipeline_mode = #tpu.pipeline_mode<synchronous>, transform_indices = @transform_5, window_bounds = array<i64: 32, 32>}, {pipeline_mode = #tpu.pipeline_mode<synchronous>, transform_indices = @transform_6, window_bounds = array<i64: 32, 32>}, {pipeline_mode = #tpu.pipeline_mode<synchronous>, transform_indices = @transform_7, window_bounds = array<i64: 32, 32>}, {pipeline_mode = #tpu.pipeline_mode<synchronous>, transform_indices = @transform_8, window_bounds = array<i64: 32, 32>}, {pipeline_mode = #tpu.pipeline_mode<synchronous>, transform_indices = @transform_9, window_bounds = array<i64: 32, 64>}, {pipeline_mode = #tpu.pipeline_mode<synchronous>, transform_indices = @transform_10, window_bounds = array<i64: 1, 64>}, {pipeline_mode = #tpu.pipeline_mode<synchronous>, transform_indices = @transform_11, window_bounds = array<i64: 64, 32>}, {pipeline_mode = #tpu.pipeline_mode<synchronous>, transform_indices = @transform_12, window_bounds = array<i64: 11, 32>}, {transform_indices = @transform_13, window_bounds = array<i64: 1, 8, 32>}]} {
    %c0 = arith.constant 0 : index
    %c0_0 = arith.constant 0 : index
    %c0_1 = arith.constant 0 : index
    %0 = vector.load %arg2[%c0, %c0_0, %c0_1] : memref<1x8x32xf32, #tpu.memory_space<vmem>>, vector<1x8x32xf32>
    %1 = vector.shape_cast %0 : vector<1x8x32xf32> to vector<8x32xf32>
    %c0_2 = arith.constant 0 : index
    %c0_3 = arith.constant 0 : index
    %c0_4 = arith.constant 0 : index
    %2 = vector.load %arg3[%c0_2, %c0_3, %c0_4] : memref<1x8x32xbf16, #tpu.memory_space<vmem>>, vector<1x8x32xbf16>
    %3 = vector.shape_cast %2 : vector<1x8x32xbf16> to vector<8x32xbf16>
    %c0_5 = arith.constant 0 : index
    %c0_6 = arith.constant 0 : index
    %c0_7 = arith.constant 0 : index
    %4 = vector.load %arg4[%c0_5, %c0_6, %c0_7] : memref<1x8x32xbf16, #tpu.memory_space<vmem>>, vector<1x8x32xbf16>
    %5 = vector.shape_cast %4 : vector<1x8x32xbf16> to vector<8x32xbf16>
    %c0_8 = arith.constant 0 : index
    %c0_9 = arith.constant 0 : index
    %c0_10 = arith.constant 0 : index
    %6 = vector.load %arg5[%c0_8, %c0_9, %c0_10] : memref<1x16x32xbf16, #tpu.memory_space<vmem>>, vector<1x16x32xbf16>
    %7 = vector.shape_cast %6 : vector<1x16x32xbf16> to vector<16x32xbf16>
    %c0_11 = arith.constant 0 : index
    %c0_12 = arith.constant 0 : index
    %c0_13 = arith.constant 0 : index
    %8 = vector.load %arg6[%c0_11, %c0_12, %c0_13] : memref<1x16x32xbf16, #tpu.memory_space<vmem>>, vector<1x16x32xbf16>
    %9 = vector.shape_cast %8 : vector<1x16x32xbf16> to vector<16x32xbf16>
    %c0_14 = arith.constant 0 : index
    %c0_15 = arith.constant 0 : index
    %10 = vector.load %arg14[%c0_14, %c0_15] : memref<11x32xf32, #tpu.memory_space<vmem>>, vector<11x32xf32>
    %11 = vector.extract_strided_slice %10 {offsets = [0, 0], sizes = [1, 32], strides = [1, 1]} : vector<11x32xf32> to vector<1x32xf32>
    %12 = vector.extract_strided_slice %10 {offsets = [1, 0], sizes = [1, 32], strides = [1, 1]} : vector<11x32xf32> to vector<1x32xf32>
    %13 = vector.extract_strided_slice %10 {offsets = [2, 0], sizes = [1, 32], strides = [1, 1]} : vector<11x32xf32> to vector<1x32xf32>
    %14 = vector.extract_strided_slice %10 {offsets = [3, 0], sizes = [1, 32], strides = [1, 1]} : vector<11x32xf32> to vector<1x32xf32>
    %15 = vector.extract_strided_slice %10 {offsets = [4, 0], sizes = [1, 32], strides = [1, 1]} : vector<11x32xf32> to vector<1x32xf32>
    %16 = vector.extract_strided_slice %10 {offsets = [5, 0], sizes = [1, 32], strides = [1, 1]} : vector<11x32xf32> to vector<1x32xf32>
    %17 = vector.extract_strided_slice %10 {offsets = [6, 0], sizes = [1, 32], strides = [1, 1]} : vector<11x32xf32> to vector<1x32xf32>
    %18 = vector.extract_strided_slice %10 {offsets = [7, 0], sizes = [1, 32], strides = [1, 1]} : vector<11x32xf32> to vector<1x32xf32>
    %19 = vector.extract_strided_slice %10 {offsets = [8, 0], sizes = [1, 32], strides = [1, 1]} : vector<11x32xf32> to vector<1x32xf32>
    %20 = vector.extract_strided_slice %10 {offsets = [9, 0], sizes = [1, 32], strides = [1, 1]} : vector<11x32xf32> to vector<1x32xf32>
    %21 = vector.extract_strided_slice %10 {offsets = [10, 0], sizes = [1, 32], strides = [1, 1]} : vector<11x32xf32> to vector<1x32xf32>
    %22 = arith.truncf %1 : vector<8x32xf32> to vector<8x32xbf16>
    %c0_16 = arith.constant 0 : index
    %c0_17 = arith.constant 0 : index
    %23 = vector.load %arg7[%c0_16, %c0_17] : memref<32x32xbf16, #tpu.memory_space<vmem>>, vector<32x32xbf16>
    %c0_18 = arith.constant 0 : index
    %c0_19 = arith.constant 0 : index
    %24 = vector.load %arg8[%c0_18, %c0_19] : memref<32x32xbf16, #tpu.memory_space<vmem>>, vector<32x32xbf16>
    %cst = arith.constant dense<0.000000e+00> : vector<8x32xf32>
    %25 = tpu.matmul %22, %23, %cst {dimension_numbers = #tpu.dot_dimension_numbers<[1], [0], [0], [1], [0, 0, 1, 1], [], []>} : vector<8x32xbf16>, vector<32x32xbf16>, vector<8x32xf32> -> vector<8x32xf32>
    %26 = vector.broadcast %11 : vector<1x32xf32> to vector<8x32xf32>
    %27 = arith.addf %25, %26 : vector<8x32xf32>
    %28 = arith.truncf %27 : vector<8x32xf32> to vector<8x32xbf16>
    %29 = vector.extract_strided_slice %28 {offsets = [0, 0], sizes = [8, 8], strides = [1, 1]} : vector<8x32xbf16> to vector<8x8xbf16>
    %30 = vector.extract_strided_slice %3 {offsets = [0, 0], sizes = [8, 8], strides = [1, 1]} : vector<8x32xbf16> to vector<8x8xbf16>
    %cst_20 = arith.constant dense<0.000000e+00> : vector<8x8xf32>
    %31 = tpu.matmul %29, %30, %cst_20 {dimension_numbers = #tpu.dot_dimension_numbers<[1], [1], [0], [0], [0, 0, 1, 0], [], []>} : vector<8x8xbf16>, vector<8x8xbf16>, vector<8x8xf32> -> vector<8x8xf32>
    %cst_21 = arith.constant dense<0xFF800000> : vector<8xf32>
    %32 = vector.multi_reduction <maximumf>, %31, %cst_21 [1] : vector<8x8xf32> to vector<8xf32>
    %33 = vector.shape_cast %32 : vector<8xf32> to vector<8x1xf32>
    %34 = vector.broadcast %33 : vector<8x1xf32> to vector<8x8xf32>
    %35 = arith.subf %31, %34 : vector<8x8xf32>
    %36 = math.exp %35 : vector<8x8xf32>
    %cst_22 = arith.constant dense<0.000000e+00> : vector<8xf32>
    %37 = vector.multi_reduction <add>, %36, %cst_22 [1] : vector<8x8xf32> to vector<8xf32>
    %38 = vector.shape_cast %37 : vector<8xf32> to vector<8x1xf32>
    %39 = vector.broadcast %38 : vector<8x1xf32> to vector<8x8xf32>
    %40 = arith.divf %36, %39 : vector<8x8xf32>
    %41 = arith.truncf %40 : vector<8x8xf32> to vector<8x8xbf16>
    %42 = vector.extract_strided_slice %5 {offsets = [0, 0], sizes = [8, 8], strides = [1, 1]} : vector<8x32xbf16> to vector<8x8xbf16>
    %cst_23 = arith.constant dense<0.000000e+00> : vector<8x8xf32>
    %43 = tpu.matmul %41, %42, %cst_23 {dimension_numbers = #tpu.dot_dimension_numbers<[1], [0], [0], [1], [0, 0, 1, 1], [], []>} : vector<8x8xbf16>, vector<8x8xbf16>, vector<8x8xf32> -> vector<8x8xf32>
    %44 = vector.extract_strided_slice %28 {offsets = [0, 8], sizes = [8, 8], strides = [1, 1]} : vector<8x32xbf16> to vector<8x8xbf16>
    %45 = vector.extract_strided_slice %3 {offsets = [0, 8], sizes = [8, 8], strides = [1, 1]} : vector<8x32xbf16> to vector<8x8xbf16>
    %cst_24 = arith.constant dense<0.000000e+00> : vector<8x8xf32>
    %46 = tpu.matmul %44, %45, %cst_24 {dimension_numbers = #tpu.dot_dimension_numbers<[1], [1], [0], [0], [0, 0, 1, 0], [], []>} : vector<8x8xbf16>, vector<8x8xbf16>, vector<8x8xf32> -> vector<8x8xf32>
    %cst_25 = arith.constant dense<0xFF800000> : vector<8xf32>
    %47 = vector.multi_reduction <maximumf>, %46, %cst_25 [1] : vector<8x8xf32> to vector<8xf32>
    %48 = vector.shape_cast %47 : vector<8xf32> to vector<8x1xf32>
    %49 = vector.broadcast %48 : vector<8x1xf32> to vector<8x8xf32>
    %50 = arith.subf %46, %49 : vector<8x8xf32>
    %51 = math.exp %50 : vector<8x8xf32>
    %cst_26 = arith.constant dense<0.000000e+00> : vector<8xf32>
    %52 = vector.multi_reduction <add>, %51, %cst_26 [1] : vector<8x8xf32> to vector<8xf32>
    %53 = vector.shape_cast %52 : vector<8xf32> to vector<8x1xf32>
    %54 = vector.broadcast %53 : vector<8x1xf32> to vector<8x8xf32>
    %55 = arith.divf %51, %54 : vector<8x8xf32>
    %56 = arith.truncf %55 : vector<8x8xf32> to vector<8x8xbf16>
    %57 = vector.extract_strided_slice %5 {offsets = [0, 8], sizes = [8, 8], strides = [1, 1]} : vector<8x32xbf16> to vector<8x8xbf16>
    %cst_27 = arith.constant dense<0.000000e+00> : vector<8x8xf32>
    %58 = tpu.matmul %56, %57, %cst_27 {dimension_numbers = #tpu.dot_dimension_numbers<[1], [0], [0], [1], [0, 0, 1, 1], [], []>} : vector<8x8xbf16>, vector<8x8xbf16>, vector<8x8xf32> -> vector<8x8xf32>
    %59 = vector.extract_strided_slice %28 {offsets = [0, 16], sizes = [8, 8], strides = [1, 1]} : vector<8x32xbf16> to vector<8x8xbf16>
    %60 = vector.extract_strided_slice %3 {offsets = [0, 16], sizes = [8, 8], strides = [1, 1]} : vector<8x32xbf16> to vector<8x8xbf16>
    %cst_28 = arith.constant dense<0.000000e+00> : vector<8x8xf32>
    %61 = tpu.matmul %59, %60, %cst_28 {dimension_numbers = #tpu.dot_dimension_numbers<[1], [1], [0], [0], [0, 0, 1, 0], [], []>} : vector<8x8xbf16>, vector<8x8xbf16>, vector<8x8xf32> -> vector<8x8xf32>
    %cst_29 = arith.constant dense<0xFF800000> : vector<8xf32>
    %62 = vector.multi_reduction <maximumf>, %61, %cst_29 [1] : vector<8x8xf32> to vector<8xf32>
    %63 = vector.shape_cast %62 : vector<8xf32> to vector<8x1xf32>
    %64 = vector.broadcast %63 : vector<8x1xf32> to vector<8x8xf32>
    %65 = arith.subf %61, %64 : vector<8x8xf32>
    %66 = math.exp %65 : vector<8x8xf32>
    %cst_30 = arith.constant dense<0.000000e+00> : vector<8xf32>
    %67 = vector.multi_reduction <add>, %66, %cst_30 [1] : vector<8x8xf32> to vector<8xf32>
    %68 = vector.shape_cast %67 : vector<8xf32> to vector<8x1xf32>
    %69 = vector.broadcast %68 : vector<8x1xf32> to vector<8x8xf32>
    %70 = arith.divf %66, %69 : vector<8x8xf32>
    %71 = arith.truncf %70 : vector<8x8xf32> to vector<8x8xbf16>
    %72 = vector.extract_strided_slice %5 {offsets = [0, 16], sizes = [8, 8], strides = [1, 1]} : vector<8x32xbf16> to vector<8x8xbf16>
    %cst_31 = arith.constant dense<0.000000e+00> : vector<8x8xf32>
    %73 = tpu.matmul %71, %72, %cst_31 {dimension_numbers = #tpu.dot_dimension_numbers<[1], [0], [0], [1], [0, 0, 1, 1], [], []>} : vector<8x8xbf16>, vector<8x8xbf16>, vector<8x8xf32> -> vector<8x8xf32>
    %74 = vector.extract_strided_slice %28 {offsets = [0, 24], sizes = [8, 8], strides = [1, 1]} : vector<8x32xbf16> to vector<8x8xbf16>
    %75 = vector.extract_strided_slice %3 {offsets = [0, 24], sizes = [8, 8], strides = [1, 1]} : vector<8x32xbf16> to vector<8x8xbf16>
    %cst_32 = arith.constant dense<0.000000e+00> : vector<8x8xf32>
    %76 = tpu.matmul %74, %75, %cst_32 {dimension_numbers = #tpu.dot_dimension_numbers<[1], [1], [0], [0], [0, 0, 1, 0], [], []>} : vector<8x8xbf16>, vector<8x8xbf16>, vector<8x8xf32> -> vector<8x8xf32>
    %cst_33 = arith.constant dense<0xFF800000> : vector<8xf32>
    %77 = vector.multi_reduction <maximumf>, %76, %cst_33 [1] : vector<8x8xf32> to vector<8xf32>
    %78 = vector.shape_cast %77 : vector<8xf32> to vector<8x1xf32>
    %79 = vector.broadcast %78 : vector<8x1xf32> to vector<8x8xf32>
    %80 = arith.subf %76, %79 : vector<8x8xf32>
    %81 = math.exp %80 : vector<8x8xf32>
    %cst_34 = arith.constant dense<0.000000e+00> : vector<8xf32>
    %82 = vector.multi_reduction <add>, %81, %cst_34 [1] : vector<8x8xf32> to vector<8xf32>
    %83 = vector.shape_cast %82 : vector<8xf32> to vector<8x1xf32>
    %84 = vector.broadcast %83 : vector<8x1xf32> to vector<8x8xf32>
    %85 = arith.divf %81, %84 : vector<8x8xf32>
    %86 = arith.truncf %85 : vector<8x8xf32> to vector<8x8xbf16>
    %87 = vector.extract_strided_slice %5 {offsets = [0, 24], sizes = [8, 8], strides = [1, 1]} : vector<8x32xbf16> to vector<8x8xbf16>
    %cst_35 = arith.constant dense<0.000000e+00> : vector<8x8xf32>
    %88 = tpu.matmul %86, %87, %cst_35 {dimension_numbers = #tpu.dot_dimension_numbers<[1], [0], [0], [1], [0, 0, 1, 1], [], []>} : vector<8x8xbf16>, vector<8x8xbf16>, vector<8x8xf32> -> vector<8x8xf32>
    %89 = tpu.concatenate %43, %58, %73, %88 in 1 : vector<8x8xf32>, vector<8x8xf32>, vector<8x8xf32>, vector<8x8xf32> -> vector<8x32xf32>
    %90 = arith.truncf %89 : vector<8x32xf32> to vector<8x32xbf16>
    %cst_36 = arith.constant dense<0.000000e+00> : vector<8x32xf32>
    %91 = tpu.matmul %90, %24, %cst_36 {dimension_numbers = #tpu.dot_dimension_numbers<[1], [0], [0], [1], [0, 0, 1, 1], [], []>} : vector<8x32xbf16>, vector<32x32xbf16>, vector<8x32xf32> -> vector<8x32xf32>
    %92 = vector.broadcast %12 : vector<1x32xf32> to vector<8x32xf32>
    %93 = arith.addf %91, %92 : vector<8x32xf32>
    %94 = arith.addf %1, %93 : vector<8x32xf32>
    %cst_37 = arith.constant dense<0.000000e+00> : vector<8xf32>
    %95 = vector.multi_reduction <add>, %94, %cst_37 [1] : vector<8x32xf32> to vector<8xf32>
    %96 = vector.shape_cast %95 : vector<8xf32> to vector<8x1xf32>
    %cst_38 = arith.constant 3.200000e+01 : f32
    %97 = vector.broadcast %cst_38 : f32 to vector<8x1xf32>
    %98 = arith.divf %96, %97 : vector<8x1xf32>
    %99 = vector.broadcast %98 : vector<8x1xf32> to vector<8x32xf32>
    %100 = arith.subf %94, %99 : vector<8x32xf32>
    %101 = arith.mulf %100, %100 : vector<8x32xf32>
    %cst_39 = arith.constant dense<0.000000e+00> : vector<8xf32>
    %102 = vector.multi_reduction <add>, %101, %cst_39 [1] : vector<8x32xf32> to vector<8xf32>
    %103 = vector.shape_cast %102 : vector<8xf32> to vector<8x1xf32>
    %cst_40 = arith.constant 3.200000e+01 : f32
    %104 = vector.broadcast %cst_40 : f32 to vector<8x1xf32>
    %105 = arith.divf %103, %104 : vector<8x1xf32>
    %106 = vector.broadcast %98 : vector<8x1xf32> to vector<8x32xf32>
    %107 = arith.subf %94, %106 : vector<8x32xf32>
    %cst_41 = arith.constant 9.99999974E-6 : f32
    %108 = vector.broadcast %cst_41 : f32 to vector<8x1xf32>
    %109 = arith.addf %105, %108 : vector<8x1xf32>
    %110 = math.rsqrt %109 : vector<8x1xf32>
    %111 = vector.broadcast %110 : vector<8x1xf32> to vector<8x32xf32>
    %112 = arith.mulf %107, %111 : vector<8x32xf32>
    %113 = vector.broadcast %13 : vector<1x32xf32> to vector<8x32xf32>
    %114 = arith.mulf %112, %113 : vector<8x32xf32>
    %115 = vector.broadcast %14 : vector<1x32xf32> to vector<8x32xf32>
    %116 = arith.addf %114, %115 : vector<8x32xf32>
    %117 = arith.truncf %116 : vector<8x32xf32> to vector<8x32xbf16>
    %c0_42 = arith.constant 0 : index
    %c0_43 = arith.constant 0 : index
    %118 = vector.load %arg9[%c0_42, %c0_43] : memref<32x32xbf16, #tpu.memory_space<vmem>>, vector<32x32xbf16>
    %c0_44 = arith.constant 0 : index
    %c0_45 = arith.constant 0 : index
    %119 = vector.load %arg10[%c0_44, %c0_45] : memref<32x32xbf16, #tpu.memory_space<vmem>>, vector<32x32xbf16>
    %cst_46 = arith.constant dense<0.000000e+00> : vector<8x32xf32>
    %120 = tpu.matmul %117, %118, %cst_46 {dimension_numbers = #tpu.dot_dimension_numbers<[1], [0], [0], [1], [0, 0, 1, 1], [], []>} : vector<8x32xbf16>, vector<32x32xbf16>, vector<8x32xf32> -> vector<8x32xf32>
    %121 = vector.broadcast %15 : vector<1x32xf32> to vector<8x32xf32>
    %122 = arith.addf %120, %121 : vector<8x32xf32>
    %123 = arith.truncf %122 : vector<8x32xf32> to vector<8x32xbf16>
    %124 = vector.extract_strided_slice %123 {offsets = [0, 0], sizes = [8, 8], strides = [1, 1]} : vector<8x32xbf16> to vector<8x8xbf16>
    %125 = vector.extract_strided_slice %7 {offsets = [0, 0], sizes = [16, 8], strides = [1, 1]} : vector<16x32xbf16> to vector<16x8xbf16>
    %cst_47 = arith.constant dense<0.000000e+00> : vector<8x16xf32>
    %126 = tpu.matmul %124, %125, %cst_47 {dimension_numbers = #tpu.dot_dimension_numbers<[1], [1], [0], [0], [0, 0, 1, 0], [], []>} : vector<8x8xbf16>, vector<16x8xbf16>, vector<8x16xf32> -> vector<8x16xf32>
    %cst_48 = arith.constant dense<0xFF800000> : vector<8xf32>
    %127 = vector.multi_reduction <maximumf>, %126, %cst_48 [1] : vector<8x16xf32> to vector<8xf32>
    %128 = vector.shape_cast %127 : vector<8xf32> to vector<8x1xf32>
    %129 = vector.broadcast %128 : vector<8x1xf32> to vector<8x16xf32>
    %130 = arith.subf %126, %129 : vector<8x16xf32>
    %131 = math.exp %130 : vector<8x16xf32>
    %cst_49 = arith.constant dense<0.000000e+00> : vector<8xf32>
    %132 = vector.multi_reduction <add>, %131, %cst_49 [1] : vector<8x16xf32> to vector<8xf32>
    %133 = vector.shape_cast %132 : vector<8xf32> to vector<8x1xf32>
    %134 = vector.broadcast %133 : vector<8x1xf32> to vector<8x16xf32>
    %135 = arith.divf %131, %134 : vector<8x16xf32>
    %136 = arith.truncf %135 : vector<8x16xf32> to vector<8x16xbf16>
    %137 = vector.extract_strided_slice %9 {offsets = [0, 0], sizes = [16, 8], strides = [1, 1]} : vector<16x32xbf16> to vector<16x8xbf16>
    %cst_50 = arith.constant dense<0.000000e+00> : vector<8x8xf32>
    %138 = tpu.matmul %136, %137, %cst_50 {dimension_numbers = #tpu.dot_dimension_numbers<[1], [0], [0], [1], [0, 0, 1, 1], [], []>} : vector<8x16xbf16>, vector<16x8xbf16>, vector<8x8xf32> -> vector<8x8xf32>
    %139 = vector.extract_strided_slice %123 {offsets = [0, 8], sizes = [8, 8], strides = [1, 1]} : vector<8x32xbf16> to vector<8x8xbf16>
    %140 = vector.extract_strided_slice %7 {offsets = [0, 8], sizes = [16, 8], strides = [1, 1]} : vector<16x32xbf16> to vector<16x8xbf16>
    %cst_51 = arith.constant dense<0.000000e+00> : vector<8x16xf32>
    %141 = tpu.matmul %139, %140, %cst_51 {dimension_numbers = #tpu.dot_dimension_numbers<[1], [1], [0], [0], [0, 0, 1, 0], [], []>} : vector<8x8xbf16>, vector<16x8xbf16>, vector<8x16xf32> -> vector<8x16xf32>
    %cst_52 = arith.constant dense<0xFF800000> : vector<8xf32>
    %142 = vector.multi_reduction <maximumf>, %141, %cst_52 [1] : vector<8x16xf32> to vector<8xf32>
    %143 = vector.shape_cast %142 : vector<8xf32> to vector<8x1xf32>
    %144 = vector.broadcast %143 : vector<8x1xf32> to vector<8x16xf32>
    %145 = arith.subf %141, %144 : vector<8x16xf32>
    %146 = math.exp %145 : vector<8x16xf32>
    %cst_53 = arith.constant dense<0.000000e+00> : vector<8xf32>
    %147 = vector.multi_reduction <add>, %146, %cst_53 [1] : vector<8x16xf32> to vector<8xf32>
    %148 = vector.shape_cast %147 : vector<8xf32> to vector<8x1xf32>
    %149 = vector.broadcast %148 : vector<8x1xf32> to vector<8x16xf32>
    %150 = arith.divf %146, %149 : vector<8x16xf32>
    %151 = arith.truncf %150 : vector<8x16xf32> to vector<8x16xbf16>
    %152 = vector.extract_strided_slice %9 {offsets = [0, 8], sizes = [16, 8], strides = [1, 1]} : vector<16x32xbf16> to vector<16x8xbf16>
    %cst_54 = arith.constant dense<0.000000e+00> : vector<8x8xf32>
    %153 = tpu.matmul %151, %152, %cst_54 {dimension_numbers = #tpu.dot_dimension_numbers<[1], [0], [0], [1], [0, 0, 1, 1], [], []>} : vector<8x16xbf16>, vector<16x8xbf16>, vector<8x8xf32> -> vector<8x8xf32>
    %154 = vector.extract_strided_slice %123 {offsets = [0, 16], sizes = [8, 8], strides = [1, 1]} : vector<8x32xbf16> to vector<8x8xbf16>
    %155 = vector.extract_strided_slice %7 {offsets = [0, 16], sizes = [16, 8], strides = [1, 1]} : vector<16x32xbf16> to vector<16x8xbf16>
    %cst_55 = arith.constant dense<0.000000e+00> : vector<8x16xf32>
    %156 = tpu.matmul %154, %155, %cst_55 {dimension_numbers = #tpu.dot_dimension_numbers<[1], [1], [0], [0], [0, 0, 1, 0], [], []>} : vector<8x8xbf16>, vector<16x8xbf16>, vector<8x16xf32> -> vector<8x16xf32>
    %cst_56 = arith.constant dense<0xFF800000> : vector<8xf32>
    %157 = vector.multi_reduction <maximumf>, %156, %cst_56 [1] : vector<8x16xf32> to vector<8xf32>
    %158 = vector.shape_cast %157 : vector<8xf32> to vector<8x1xf32>
    %159 = vector.broadcast %158 : vector<8x1xf32> to vector<8x16xf32>
    %160 = arith.subf %156, %159 : vector<8x16xf32>
    %161 = math.exp %160 : vector<8x16xf32>
    %cst_57 = arith.constant dense<0.000000e+00> : vector<8xf32>
    %162 = vector.multi_reduction <add>, %161, %cst_57 [1] : vector<8x16xf32> to vector<8xf32>
    %163 = vector.shape_cast %162 : vector<8xf32> to vector<8x1xf32>
    %164 = vector.broadcast %163 : vector<8x1xf32> to vector<8x16xf32>
    %165 = arith.divf %161, %164 : vector<8x16xf32>
    %166 = arith.truncf %165 : vector<8x16xf32> to vector<8x16xbf16>
    %167 = vector.extract_strided_slice %9 {offsets = [0, 16], sizes = [16, 8], strides = [1, 1]} : vector<16x32xbf16> to vector<16x8xbf16>
    %cst_58 = arith.constant dense<0.000000e+00> : vector<8x8xf32>
    %168 = tpu.matmul %166, %167, %cst_58 {dimension_numbers = #tpu.dot_dimension_numbers<[1], [0], [0], [1], [0, 0, 1, 1], [], []>} : vector<8x16xbf16>, vector<16x8xbf16>, vector<8x8xf32> -> vector<8x8xf32>
    %169 = vector.extract_strided_slice %123 {offsets = [0, 24], sizes = [8, 8], strides = [1, 1]} : vector<8x32xbf16> to vector<8x8xbf16>
    %170 = vector.extract_strided_slice %7 {offsets = [0, 24], sizes = [16, 8], strides = [1, 1]} : vector<16x32xbf16> to vector<16x8xbf16>
    %cst_59 = arith.constant dense<0.000000e+00> : vector<8x16xf32>
    %171 = tpu.matmul %169, %170, %cst_59 {dimension_numbers = #tpu.dot_dimension_numbers<[1], [1], [0], [0], [0, 0, 1, 0], [], []>} : vector<8x8xbf16>, vector<16x8xbf16>, vector<8x16xf32> -> vector<8x16xf32>
    %cst_60 = arith.constant dense<0xFF800000> : vector<8xf32>
    %172 = vector.multi_reduction <maximumf>, %171, %cst_60 [1] : vector<8x16xf32> to vector<8xf32>
    %173 = vector.shape_cast %172 : vector<8xf32> to vector<8x1xf32>
    %174 = vector.broadcast %173 : vector<8x1xf32> to vector<8x16xf32>
    %175 = arith.subf %171, %174 : vector<8x16xf32>
    %176 = math.exp %175 : vector<8x16xf32>
    %cst_61 = arith.constant dense<0.000000e+00> : vector<8xf32>
    %177 = vector.multi_reduction <add>, %176, %cst_61 [1] : vector<8x16xf32> to vector<8xf32>
    %178 = vector.shape_cast %177 : vector<8xf32> to vector<8x1xf32>
    %179 = vector.broadcast %178 : vector<8x1xf32> to vector<8x16xf32>
    %180 = arith.divf %176, %179 : vector<8x16xf32>
    %181 = arith.truncf %180 : vector<8x16xf32> to vector<8x16xbf16>
    %182 = vector.extract_strided_slice %9 {offsets = [0, 24], sizes = [16, 8], strides = [1, 1]} : vector<16x32xbf16> to vector<16x8xbf16>
    %cst_62 = arith.constant dense<0.000000e+00> : vector<8x8xf32>
    %183 = tpu.matmul %181, %182, %cst_62 {dimension_numbers = #tpu.dot_dimension_numbers<[1], [0], [0], [1], [0, 0, 1, 1], [], []>} : vector<8x16xbf16>, vector<16x8xbf16>, vector<8x8xf32> -> vector<8x8xf32>
    %184 = tpu.concatenate %138, %153, %168, %183 in 1 : vector<8x8xf32>, vector<8x8xf32>, vector<8x8xf32>, vector<8x8xf32> -> vector<8x32xf32>
    %185 = arith.truncf %184 : vector<8x32xf32> to vector<8x32xbf16>
    %cst_63 = arith.constant dense<0.000000e+00> : vector<8x32xf32>
    %186 = tpu.matmul %185, %119, %cst_63 {dimension_numbers = #tpu.dot_dimension_numbers<[1], [0], [0], [1], [0, 0, 1, 1], [], []>} : vector<8x32xbf16>, vector<32x32xbf16>, vector<8x32xf32> -> vector<8x32xf32>
    %187 = vector.broadcast %16 : vector<1x32xf32> to vector<8x32xf32>
    %188 = arith.addf %186, %187 : vector<8x32xf32>
    %189 = arith.addf %116, %188 : vector<8x32xf32>
    %cst_64 = arith.constant dense<0.000000e+00> : vector<8xf32>
    %190 = vector.multi_reduction <add>, %189, %cst_64 [1] : vector<8x32xf32> to vector<8xf32>
    %191 = vector.shape_cast %190 : vector<8xf32> to vector<8x1xf32>
    %cst_65 = arith.constant 3.200000e+01 : f32
    %192 = vector.broadcast %cst_65 : f32 to vector<8x1xf32>
    %193 = arith.divf %191, %192 : vector<8x1xf32>
    %194 = vector.broadcast %193 : vector<8x1xf32> to vector<8x32xf32>
    %195 = arith.subf %189, %194 : vector<8x32xf32>
    %196 = arith.mulf %195, %195 : vector<8x32xf32>
    %cst_66 = arith.constant dense<0.000000e+00> : vector<8xf32>
    %197 = vector.multi_reduction <add>, %196, %cst_66 [1] : vector<8x32xf32> to vector<8xf32>
    %198 = vector.shape_cast %197 : vector<8xf32> to vector<8x1xf32>
    %cst_67 = arith.constant 3.200000e+01 : f32
    %199 = vector.broadcast %cst_67 : f32 to vector<8x1xf32>
    %200 = arith.divf %198, %199 : vector<8x1xf32>
    %201 = vector.broadcast %193 : vector<8x1xf32> to vector<8x32xf32>
    %202 = arith.subf %189, %201 : vector<8x32xf32>
    %cst_68 = arith.constant 9.99999974E-6 : f32
    %203 = vector.broadcast %cst_68 : f32 to vector<8x1xf32>
    %204 = arith.addf %200, %203 : vector<8x1xf32>
    %205 = math.rsqrt %204 : vector<8x1xf32>
    %206 = vector.broadcast %205 : vector<8x1xf32> to vector<8x32xf32>
    %207 = arith.mulf %202, %206 : vector<8x32xf32>
    %208 = vector.broadcast %17 : vector<1x32xf32> to vector<8x32xf32>
    %209 = arith.mulf %207, %208 : vector<8x32xf32>
    %210 = vector.broadcast %18 : vector<1x32xf32> to vector<8x32xf32>
    %211 = arith.addf %209, %210 : vector<8x32xf32>
    %212 = arith.truncf %211 : vector<8x32xf32> to vector<8x32xbf16>
    %c0_69 = arith.constant 0 : index
    %c0_70 = arith.constant 0 : index
    %213 = vector.load %arg11[%c0_69, %c0_70] : memref<32x64xbf16, #tpu.memory_space<vmem>>, vector<32x64xbf16>
    %cst_71 = arith.constant dense<0.000000e+00> : vector<8x64xf32>
    %214 = tpu.matmul %212, %213, %cst_71 {dimension_numbers = #tpu.dot_dimension_numbers<[1], [0], [0], [1], [0, 0, 1, 1], [], []>} : vector<8x32xbf16>, vector<32x64xbf16>, vector<8x64xf32> -> vector<8x64xf32>
    %c0_72 = arith.constant 0 : index
    %c0_73 = arith.constant 0 : index
    %215 = vector.load %arg12[%c0_72, %c0_73] : memref<1x64xf32, #tpu.memory_space<vmem>>, vector<1x64xf32>
    %216 = vector.broadcast %215 : vector<1x64xf32> to vector<8x64xf32>
    %217 = arith.addf %214, %216 : vector<8x64xf32>
    %cst_74 = arith.constant 0.000000e+00 : f32
    %218 = vector.broadcast %cst_74 : f32 to vector<8x64xf32>
    %219 = arith.maximumf %217, %218 : vector<8x64xf32>
    %220 = arith.truncf %219 : vector<8x64xf32> to vector<8x64xbf16>
    %c0_75 = arith.constant 0 : index
    %c0_76 = arith.constant 0 : index
    %221 = vector.load %arg13[%c0_75, %c0_76] : memref<64x32xbf16, #tpu.memory_space<vmem>>, vector<64x32xbf16>
    %cst_77 = arith.constant dense<0.000000e+00> : vector<8x32xf32>
    %222 = tpu.matmul %220, %221, %cst_77 {dimension_numbers = #tpu.dot_dimension_numbers<[1], [0], [0], [1], [0, 0, 1, 1], [], []>} : vector<8x64xbf16>, vector<64x32xbf16>, vector<8x32xf32> -> vector<8x32xf32>
    %223 = vector.broadcast %19 : vector<1x32xf32> to vector<8x32xf32>
    %224 = arith.addf %222, %223 : vector<8x32xf32>
    %225 = arith.addf %211, %224 : vector<8x32xf32>
    %cst_78 = arith.constant dense<0.000000e+00> : vector<8xf32>
    %226 = vector.multi_reduction <add>, %225, %cst_78 [1] : vector<8x32xf32> to vector<8xf32>
    %227 = vector.shape_cast %226 : vector<8xf32> to vector<8x1xf32>
    %cst_79 = arith.constant 3.200000e+01 : f32
    %228 = vector.broadcast %cst_79 : f32 to vector<8x1xf32>
    %229 = arith.divf %227, %228 : vector<8x1xf32>
    %230 = vector.broadcast %229 : vector<8x1xf32> to vector<8x32xf32>
    %231 = arith.subf %225, %230 : vector<8x32xf32>
    %232 = arith.mulf %231, %231 : vector<8x32xf32>
    %cst_80 = arith.constant dense<0.000000e+00> : vector<8xf32>
    %233 = vector.multi_reduction <add>, %232, %cst_80 [1] : vector<8x32xf32> to vector<8xf32>
    %234 = vector.shape_cast %233 : vector<8xf32> to vector<8x1xf32>
    %cst_81 = arith.constant 3.200000e+01 : f32
    %235 = vector.broadcast %cst_81 : f32 to vector<8x1xf32>
    %236 = arith.divf %234, %235 : vector<8x1xf32>
    %237 = vector.broadcast %229 : vector<8x1xf32> to vector<8x32xf32>
    %238 = arith.subf %225, %237 : vector<8x32xf32>
    %cst_82 = arith.constant 9.99999974E-6 : f32
    %239 = vector.broadcast %cst_82 : f32 to vector<8x1xf32>
    %240 = arith.addf %236, %239 : vector<8x1xf32>
    %241 = math.rsqrt %240 : vector<8x1xf32>
    %242 = vector.broadcast %241 : vector<8x1xf32> to vector<8x32xf32>
    %243 = arith.mulf %238, %242 : vector<8x32xf32>
    %244 = vector.broadcast %20 : vector<1x32xf32> to vector<8x32xf32>
    %245 = arith.mulf %243, %244 : vector<8x32xf32>
    %246 = vector.broadcast %21 : vector<1x32xf32> to vector<8x32xf32>
    %247 = arith.addf %245, %246 : vector<8x32xf32>
    %c0_83 = arith.constant 0 : index
    %c0_84 = arith.constant 0 : index
    %c0_85 = arith.constant 0 : index
    %248 = vector.load %arg15[%c0_83, %c0_84, %c0_85] : memref<1x8x32xf32, #tpu.memory_space<vmem>>, vector<1x8x32xf32>
    %249 = vector.shape_cast %248 : vector<1x8x32xf32> to vector<8x32xf32>
    %250 = vector.shape_cast %247 : vector<8x32xf32> to vector<1x8x32xf32>
    tpu.vector_store %arg15[%c0_83, %c0_84, %c0_85], %250 {strides = array<i32>} : memref<1x8x32xf32, #tpu.memory_space<vmem>>, vector<1x8x32xf32>,
    return
  }
  func.func @transform_0(%arg0: i32, %arg1: i32) -> (i32, i32, i32) {
    %c0_i32 = arith.constant 0 : i32
    %c0_i32_0 = arith.constant 0 : i32
    return %arg0, %arg1, %c0_i32 : i32, i32, i32
  }
  func.func @transform_1(%arg0: i32, %arg1: i32) -> (i32, i32, i32) {
    %c0_i32 = arith.constant 0 : i32
    %c0_i32_0 = arith.constant 0 : i32
    %c0_i32_1 = arith.constant 0 : i32
    return %arg0, %c0_i32, %c0_i32_0 : i32, i32, i32
  }
  func.func @transform_2(%arg0: i32, %arg1: i32) -> (i32, i32, i32) {
    %c0_i32 = arith.constant 0 : i32
    %c0_i32_0 = arith.constant 0 : i32
    %c0_i32_1 = arith.constant 0 : i32
    return %arg0, %c0_i32, %c0_i32_0 : i32, i32, i32
  }
  func.func @transform_3(%arg0: i32, %arg1: i32) -> (i32, i32, i32) {
    %c0_i32 = arith.constant 0 : i32
    %c0_i32_0 = arith.constant 0 : i32
    %c0_i32_1 = arith.constant 0 : i32
    return %arg0, %c0_i32, %c0_i32_0 : i32, i32, i32
  }
  func.func @transform_4(%arg0: i32, %arg1: i32) -> (i32, i32, i32) {
    %c0_i32 = arith.constant 0 : i32
    %c0_i32_0 = arith.constant 0 : i32
    %c0_i32_1 = arith.constant 0 : i32
    return %arg0, %c0_i32, %c0_i32_0 : i32, i32, i32
  }
  func.func @transform_5(%arg0: i32, %arg1: i32) -> (i32, i32) {
    %c0_i32 = arith.constant 0 : i32
    %c0_i32_0 = arith.constant 0 : i32
    %c0_i32_1 = arith.constant 0 : i32
    return %c0_i32, %c0_i32_0 : i32, i32
  }
  func.func @transform_6(%arg0: i32, %arg1: i32) -> (i32, i32) {
    %c0_i32 = arith.constant 0 : i32
    %c0_i32_0 = arith.constant 0 : i32
    %c0_i32_1 = arith.constant 0 : i32
    return %c0_i32, %c0_i32_0 : i32, i32
  }
  func.func @transform_7(%arg0: i32, %arg1: i32) -> (i32, i32) {
    %c0_i32 = arith.constant 0 : i32
    %c0_i32_0 = arith.constant 0 : i32
    %c0_i32_1 = arith.constant 0 : i32
    return %c0_i32, %c0_i32_0 : i32, i32
  }
  func.func @transform_8(%arg0: i32, %arg1: i32) -> (i32, i32) {
    %c0_i32 = arith.constant 0 : i32
    %c0_i32_0 = arith.constant 0 : i32
    %c0_i32_1 = arith.constant 0 : i32
    return %c0_i32, %c0_i32_0 : i32, i32
  }
  func.func @transform_9(%arg0: i32, %arg1: i32) -> (i32, i32) {
    %c0_i32 = arith.constant 0 : i32
    %c0_i32_0 = arith.constant 0 : i32
    %c0_i32_1 = arith.constant 0 : i32
    return %c0_i32, %c0_i32_0 : i32, i32
  }
  func.func @transform_10(%arg0: i32, %arg1: i32) -> (i32, i32) {
    %c0_i32 = arith.constant 0 : i32
    %c0_i32_0 = arith.constant 0 : i32
    %c0_i32_1 = arith.constant 0 : i32
    return %c0_i32, %c0_i32_0 : i32, i32
  }
  func.func @transform_11(%arg0: i32, %arg1: i32) -> (i32, i32) {
    %c0_i32 = arith.constant 0 : i32
    %c0_i32_0 = arith.constant 0 : i32
    %c0_i32_1 = arith.constant 0 : i32
    return %c0_i32, %c0_i32_0 : i32, i32
  }
  func.func @transform_12(%arg0: i32, %arg1: i32) -> (i32, i32) {
    %c0_i32 = arith.constant 0 : i32
    %c0_i32_0 = arith.constant 0 : i32
    %c0_i32_1 = arith.constant 0 : i32
    return %c0_i32, %c0_i32_0 : i32, i32
  }
  func.func @transform_13(%arg0: i32, %arg1: i32) -> (i32, i32, i32) {
    %c0_i32 = arith.constant 0 : i32
    %c0_i32_0 = arith.constant 0 : i32
    return %arg0, %arg1, %c0_i32 : i32, i32, i32
  }
}

module attributes {stable_mosaic.version = 11 : i64} {
  func.func @kernel(%arg0: i32, %arg1: i32, %arg2: memref<1x8x32xf32, #tpu.memory_space<vmem>>, %arg3: memref<1x8x32xbf16, #tpu.memory_space<vmem>>, %arg4: memref<1x8x32xbf16, #tpu.memory_space<vmem>>, %arg5: memref<1x16x32xbf16, #tpu.memory_space<vmem>>, %arg6: memref<1x16x32xbf16, #tpu.memory_space<vmem>>, %arg7: memref<32x32xbf16, #tpu.memory_space<vmem>>, %arg8: memref<32x32xbf16, #tpu.memory_space<vmem>>, %arg9: memref<32x32xbf16, #tpu.memory_space<vmem>>, %arg10: memref<32x32xbf16, #tpu.memory_space<vmem>>, %arg11: memref<32x64xbf16, #tpu.memory_space<vmem>>, %arg12: memref<1x64xf32, #tpu.memory_space<vmem>>, %arg13: memref<64x32xbf16, #tpu.memory_space<vmem>>, %arg14: memref<11x32xf32, #tpu.memory_space<vmem>>, %arg15: memref<1x8x32xf32, #tpu.memory_space<vmem>>) attributes {dimension_semantics = [#tpu.dimension_semantics<parallel>, #tpu.dimension_semantics<parallel>], iteration_bounds = array<i64: 2, 1>, scalar_prefetch = 0 : i64, scratch_operands = 0 : i64, tpu.core_type = #tpu.core_type<tc>, window_params = [{transform_indices = @transform_0, window_bounds = array<i64: 1, 8, 32>}, {transform_indices = @transform_1, window_bounds = array<i64: 1, 8, 32>}, {transform_indices = @transform_2, window_bounds = array<i64: 1, 8, 32>}, {transform_indices = @transform_3, window_bounds = array<i64: 1, 16, 32>}, {transform_indices = @transform_4, window_bounds = array<i64: 1, 16, 32>}, {pipeline_mode = #tpu.pipeline_mode<synchronous>, transform_indices = @transform_5, window_bounds = array<i64: 32, 32>}, {pipeline_mode = #tpu.pipeline_mode<synchronous>, transform_indices = @transform_6, window_bounds = array<i64: 32, 32>}, {pipeline_mode = #tpu.pipeline_mode<synchronous>, transform_indices = @transform_7, window_bounds = array<i64: 32, 32>}, {pipeline_mode = #tpu.pipeline_mode<synchronous>, transform_indices = @transform_8, window_bounds = array<i64: 32, 32>}, {pipeline_mode = #tpu.pipeline_mode<synchronous>, transform_indices = @transform_9, window_bounds = array<i64: 32, 64>}, {pipeline_mode = #tpu.pipeline_mode<synchronous>, transform_indices = @transform_10, window_bounds = array<i64: 1, 64>}, {pipeline_mode = #tpu.pipeline_mode<synchronous>, transform_indices = @transform_11, window_bounds = array<i64: 64, 32>}, {pipeline_mode = #tpu.pipeline_mode<synchronous>, transform_indices = @transform_12, window_bounds = array<i64: 11, 32>}, {transform_indices = @transform_13, window_bounds = array<i64: 1, 8, 32>}]} {
    %c0 = arith.constant 0 : index
    %c0_0 = arith.constant 0 : index
    %c0_1 = arith.constant 0 : index
    %0 = vector.load %arg2[%c0, %c0_0, %c0_1] : memref<1x8x32xf32, #tpu.memory_space<vmem>>, vector<1x8x32xf32>
    %1 = vector.shape_cast %0 : vector<1x8x32xf32> to vector<8x32xf32>
    %c0_2 = arith.constant 0 : index
    %c0_3 = arith.constant 0 : index
    %c0_4 = arith.constant 0 : index
    %2 = vector.load %arg3[%c0_2, %c0_3, %c0_4] : memref<1x8x32xbf16, #tpu.memory_space<vmem>>, vector<1x8x32xbf16>
    %3 = vector.shape_cast %2 : vector<1x8x32xbf16> to vector<8x32xbf16>
    %c0_5 = arith.constant 0 : index
    %c0_6 = arith.constant 0 : index
    %c0_7 = arith.constant 0 : index
    %4 = vector.load %arg4[%c0_5, %c0_6, %c0_7] : memref<1x8x32xbf16, #tpu.memory_space<vmem>>, vector<1x8x32xbf16>
    %5 = vector.shape_cast %4 : vector<1x8x32xbf16> to vector<8x32xbf16>
    %c0_8 = arith.constant 0 : index
    %c0_9 = arith.constant 0 : index
    %c0_10 = arith.constant 0 : index
    %6 = vector.load %arg5[%c0_8, %c0_9, %c0_10] : memref<1x16x32xbf16, #tpu.memory_space<vmem>>, vector<1x16x32xbf16>
    %7 = vector.shape_cast %6 : vector<1x16x32xbf16> to vector<16x32xbf16>
    %c0_11 = arith.constant 0 : index
    %c0_12 = arith.constant 0 : index
    %c0_13 = arith.constant 0 : index
    %8 = vector.load %arg6[%c0_11, %c0_12, %c0_13] : memref<1x16x32xbf16, #tpu.memory_space<vmem>>, vector<1x16x32xbf16>
    %9 = vector.shape_cast %8 : vector<1x16x32xbf16> to vector<16x32xbf16>
    %c0_14 = arith.constant 0 : index
    %c0_15 = arith.constant 0 : index
    %10 = vector.load %arg14[%c0_14, %c0_15] : memref<11x32xf32, #tpu.memory_space<vmem>>, vector<11x32xf32>
    %11 = vector.extract_strided_slice %10 {offsets = [0, 0], sizes = [1, 32], strides = [1, 1]} : vector<11x32xf32> to vector<1x32xf32>
    %12 = vector.extract_strided_slice %10 {offsets = [1, 0], sizes = [1, 32], strides = [1, 1]} : vector<11x32xf32> to vector<1x32xf32>
    %13 = vector.extract_strided_slice %10 {offsets = [2, 0], sizes = [1, 32], strides = [1, 1]} : vector<11x32xf32> to vector<1x32xf32>
    %14 = vector.extract_strided_slice %10 {offsets = [3, 0], sizes = [1, 32], strides = [1, 1]} : vector<11x32xf32> to vector<1x32xf32>
    %15 = vector.extract_strided_slice %10 {offsets = [4, 0], sizes = [1, 32], strides = [1, 1]} : vector<11x32xf32> to vector<1x32xf32>
    %16 = vector.extract_strided_slice %10 {offsets = [5, 0], sizes = [1, 32], strides = [1, 1]} : vector<11x32xf32> to vector<1x32xf32>
    %17 = vector.extract_strided_slice %10 {offsets = [6, 0], sizes = [1, 32], strides = [1, 1]} : vector<11x32xf32> to vector<1x32xf32>
    %18 = vector.extract_strided_slice %10 {offsets = [7, 0], sizes = [1, 32], strides = [1, 1]} : vector<11x32xf32> to vector<1x32xf32>
    %19 = vector.extract_strided_slice %10 {offsets = [8, 0], sizes = [1, 32], strides = [1, 1]} : vector<11x32xf32> to vector<1x32xf32>
    %20 = vector.extract_strided_slice %10 {offsets = [9, 0], sizes = [1, 32], strides = [1, 1]} : vector<11x32xf32> to vector<1x32xf32>
    %21 = vector.extract_strided_slice %10 {offsets = [10, 0], sizes = [1, 32], strides = [1, 1]} : vector<11x32xf32> to vector<1x32xf32>
    %22 = arith.truncf %1 : vector<8x32xf32> to vector<8x32xbf16>
    %c0_16 = arith.constant 0 : index
    %c0_17 = arith.constant 0 : index
    %23 = vector.load %arg7[%c0_16, %c0_17] : memref<32x32xbf16, #tpu.memory_space<vmem>>, vector<32x32xbf16>
    %c0_18 = arith.constant 0 : index
    %c0_19 = arith.constant 0 : index
    %24 = vector.load %arg8[%c0_18, %c0_19] : memref<32x32xbf16, #tpu.memory_space<vmem>>, vector<32x32xbf16>
    %cst = arith.constant dense<0.000000e+00> : vector<8x32xf32>
    %25 = tpu.matmul %22, %23, %cst {dimension_numbers = #tpu.dot_dimension_numbers<[1], [0], [0], [1], [0, 0, 1, 1], [], []>} : vector<8x32xbf16>, vector<32x32xbf16>, vector<8x32xf32> -> vector<8x32xf32>
    %26 = vector.broadcast %11 : vector<1x32xf32> to vector<8x32xf32>
    %27 = arith.addf %25, %26 : vector<8x32xf32>
    %28 = arith.truncf %27 : vector<8x32xf32> to vector<8x32xbf16>
    %29 = vector.extract_strided_slice %28 {offsets = [0, 0], sizes = [8, 8], strides = [1, 1]} : vector<8x32xbf16> to vector<8x8xbf16>
    %30 = vector.extract_strided_slice %3 {offsets = [0, 0], sizes = [8, 8], strides = [1, 1]} : vector<8x32xbf16> to vector<8x8xbf16>
    %cst_20 = arith.constant dense<0.000000e+00> : vector<8x8xf32>
    %31 = tpu.matmul %29, %30, %cst_20 {dimension_numbers = #tpu.dot_dimension_numbers<[1], [1], [0], [0], [0, 0, 1, 0], [], []>} : vector<8x8xbf16>, vector<8x8xbf16>, vector<8x8xf32> -> vector<8x8xf32>
    %cst_21 = arith.constant dense<0xFF800000> : vector<8xf32>
    %32 = vector.multi_reduction <maximumf>, %31, %cst_21 [1] : vector<8x8xf32> to vector<8xf32>
    %33 = vector.shape_cast %32 : vector<8xf32> to vector<8x1xf32>
    %34 = vector.broadcast %33 : vector<8x1xf32> to vector<8x8xf32>
    %35 = arith.subf %31, %34 : vector<8x8xf32>
    %36 = math.exp %35 : vector<8x8xf32>
    %cst_22 = arith.constant dense<0.000000e+00> : vector<8xf32>
    %37 = vector.multi_reduction <add>, %36, %cst_22 [1] : vector<8x8xf32> to vector<8xf32>
    %38 = vector.shape_cast %37 : vector<8xf32> to vector<8x1xf32>
    %39 = vector.broadcast %38 : vector<8x1xf32> to vector<8x8xf32>
    %40 = arith.divf %36, %39 : vector<8x8xf32>
    %41 = arith.truncf %40 : vector<8x8xf32> to vector<8x8xbf16>
    %42 = vector.extract_strided_slice %5 {offsets = [0, 0], sizes = [8, 8], strides = [1, 1]} : vector<8x32xbf16> to vector<8x8xbf16>
    %cst_23 = arith.constant dense<0.000000e+00> : vector<8x8xf32>
    %43 = tpu.matmul %41, %42, %cst_23 {dimension_numbers = #tpu.dot_dimension_numbers<[1], [0], [0], [1], [0, 0, 1, 1], [], []>} : vector<8x8xbf16>, vector<8x8xbf16>, vector<8x8xf32> -> vector<8x8xf32>
    %44 = vector.extract_strided_slice %28 {offsets = [0, 8], sizes = [8, 8], strides = [1, 1]} : vector<8x32xbf16> to vector<8x8xbf16>
    %45 = vector.extract_strided_slice %3 {offsets = [0, 8], sizes = [8, 8], strides = [1, 1]} : vector<8x32xbf16> to vector<8x8xbf16>
    %cst_24 = arith.constant dense<0.000000e+00> : vector<8x8xf32>
    %46 = tpu.matmul %44, %45, %cst_24 {dimension_numbers = #tpu.dot_dimension_numbers<[1], [1], [0], [0], [0, 0, 1, 0], [], []>} : vector<8x8xbf16>, vector<8x8xbf16>, vector<8x8xf32> -> vector<8x8xf32>
    %cst_25 = arith.constant dense<0xFF800000> : vector<8xf32>
    %47 = vector.multi_reduction <maximumf>, %46, %cst_25 [1] : vector<8x8xf32> to vector<8xf32>
    %48 = vector.shape_cast %47 : vector<8xf32> to vector<8x1xf32>
    %49 = vector.broadcast %48 : vector<8x1xf32> to vector<8x8xf32>
    %50 = arith.subf %46, %49 : vector<8x8xf32>
    %51 = math.exp %50 : vector<8x8xf32>
    %cst_26 = arith.constant dense<0.000000e+00> : vector<8xf32>
    %52 = vector.multi_reduction <add>, %51, %cst_26 [1] : vector<8x8xf32> to vector<8xf32>
    %53 = vector.shape_cast %52 : vector<8xf32> to vector<8x1xf32>
    %54 = vector.broadcast %53 : vector<8x1xf32> to vector<8x8xf32>
    %55 = arith.divf %51, %54 : vector<8x8xf32>
    %56 = arith.truncf %55 : vector<8x8xf32> to vector<8x8xbf16>
    %57 = vector.extract_strided_slice %5 {offsets = [0, 8], sizes = [8, 8], strides = [1, 1]} : vector<8x32xbf16> to vector<8x8xbf16>
    %cst_27 = arith.constant dense<0.000000e+00> : vector<8x8xf32>
    %58 = tpu.matmul %56, %57, %cst_27 {dimension_numbers = #tpu.dot_dimension_numbers<[1], [0], [0], [1], [0, 0, 1, 1], [], []>} : vector<8x8xbf16>, vector<8x8xbf16>, vector<8x8xf32> -> vector<8x8xf32>
    %59 = vector.extract_strided_slice %28 {offsets = [0, 16], sizes = [8, 8], strides = [1, 1]} : vector<8x32xbf16> to vector<8x8xbf16>
    %60 = vector.extract_strided_slice %3 {offsets = [0, 16], sizes = [8, 8], strides = [1, 1]} : vector<8x32xbf16> to vector<8x8xbf16>
    %cst_28 = arith.constant dense<0.000000e+00> : vector<8x8xf32>
    %61 = tpu.matmul %59, %60, %cst_28 {dimension_numbers = #tpu.dot_dimension_numbers<[1], [1], [0], [0], [0, 0, 1, 0], [], []>} : vector<8x8xbf16>, vector<8x8xbf16>, vector<8x8xf32> -> vector<8x8xf32>
    %cst_29 = arith.constant dense<0xFF800000> : vector<8xf32>
    %62 = vector.multi_reduction <maximumf>, %61, %cst_29 [1] : vector<8x8xf32> to vector<8xf32>
    %63 = vector.shape_cast %62 : vector<8xf32> to vector<8x1xf32>
    %64 = vector.broadcast %63 : vector<8x1xf32> to vector<8x8xf32>
    %65 = arith.subf %61, %64 : vector<8x8xf32>
    %66 = math.exp %65 : vector<8x8xf32>
    %cst_30 = arith.constant dense<0.000000e+00> : vector<8xf32>
    %67 = vector.multi_reduction <add>, %66, %cst_30 [1] : vector<8x8xf32> to vector<8xf32>
    %68 = vector.shape_cast %67 : vector<8xf32> to vector<8x1xf32>
    %69 = vector.broadcast %68 : vector<8x1xf32> to vector<8x8xf32>
    %70 = arith.divf %66, %69 : vector<8x8xf32>
    %71 = arith.truncf %70 : vector<8x8xf32> to vector<8x8xbf16>
    %72 = vector.extract_strided_slice %5 {offsets = [0, 16], sizes = [8, 8], strides = [1, 1]} : vector<8x32xbf16> to vector<8x8xbf16>
    %cst_31 = arith.constant dense<0.000000e+00> : vector<8x8xf32>
    %73 = tpu.matmul %71, %72, %cst_31 {dimension_numbers = #tpu.dot_dimension_numbers<[1], [0], [0], [1], [0, 0, 1, 1], [], []>} : vector<8x8xbf16>, vector<8x8xbf16>, vector<8x8xf32> -> vector<8x8xf32>
    %74 = vector.extract_strided_slice %28 {offsets = [0, 24], sizes = [8, 8], strides = [1, 1]} : vector<8x32xbf16> to vector<8x8xbf16>
    %75 = vector.extract_strided_slice %3 {offsets = [0, 24], sizes = [8, 8], strides = [1, 1]} : vector<8x32xbf16> to vector<8x8xbf16>
    %cst_32 = arith.constant dense<0.000000e+00> : vector<8x8xf32>
    %76 = tpu.matmul %74, %75, %cst_32 {dimension_numbers = #tpu.dot_dimension_numbers<[1], [1], [0], [0], [0, 0, 1, 0], [], []>} : vector<8x8xbf16>, vector<8x8xbf16>, vector<8x8xf32> -> vector<8x8xf32>
    %cst_33 = arith.constant dense<0xFF800000> : vector<8xf32>
    %77 = vector.multi_reduction <maximumf>, %76, %cst_33 [1] : vector<8x8xf32> to vector<8xf32>
    %78 = vector.shape_cast %77 : vector<8xf32> to vector<8x1xf32>
    %79 = vector.broadcast %78 : vector<8x1xf32> to vector<8x8xf32>
    %80 = arith.subf %76, %79 : vector<8x8xf32>
    %81 = math.exp %80 : vector<8x8xf32>
    %cst_34 = arith.constant dense<0.000000e+00> : vector<8xf32>
    %82 = vector.multi_reduction <add>, %81, %cst_34 [1] : vector<8x8xf32> to vector<8xf32>
    %83 = vector.shape_cast %82 : vector<8xf32> to vector<8x1xf32>
    %84 = vector.broadcast %83 : vector<8x1xf32> to vector<8x8xf32>
    %85 = arith.divf %81, %84 : vector<8x8xf32>
    %86 = arith.truncf %85 : vector<8x8xf32> to vector<8x8xbf16>
    %87 = vector.extract_strided_slice %5 {offsets = [0, 24], sizes = [8, 8], strides = [1, 1]} : vector<8x32xbf16> to vector<8x8xbf16>
    %cst_35 = arith.constant dense<0.000000e+00> : vector<8x8xf32>
    %88 = tpu.matmul %86, %87, %cst_35 {dimension_numbers = #tpu.dot_dimension_numbers<[1], [0], [0], [1], [0, 0, 1, 1], [], []>} : vector<8x8xbf16>, vector<8x8xbf16>, vector<8x8xf32> -> vector<8x8xf32>
    %89 = tpu.concatenate %43, %58, %73, %88 in 1 : vector<8x8xf32>, vector<8x8xf32>, vector<8x8xf32>, vector<8x8xf32> -> vector<8x32xf32>
    %90 = arith.truncf %89 : vector<8x32xf32> to vector<8x32xbf16>
    %cst_36 = arith.constant dense<0.000000e+00> : vector<8x32xf32>
    %91 = tpu.matmul %90, %24, %cst_36 {dimension_numbers = #tpu.dot_dimension_numbers<[1], [0], [0], [1], [0, 0, 1, 1], [], []>} : vector<8x32xbf16>, vector<32x32xbf16>, vector<8x32xf32> -> vector<8x32xf32>
    %92 = vector.broadcast %12 : vector<1x32xf32> to vector<8x32xf32>
    %93 = arith.addf %91, %92 : vector<8x32xf32>
    %94 = arith.addf %1, %93 : vector<8x32xf32>
    %cst_37 = arith.constant dense<0.000000e+00> : vector<8xf32>
    %95 = vector.multi_reduction <add>, %94, %cst_37 [1] : vector<8x32xf32> to vector<8xf32>
    %96 = vector.shape_cast %95 : vector<8xf32> to vector<8x1xf32>
    %cst_38 = arith.constant 3.200000e+01 : f32
    %97 = vector.broadcast %cst_38 : f32 to vector<8x1xf32>
    %98 = arith.divf %96, %97 : vector<8x1xf32>
    %99 = vector.broadcast %98 : vector<8x1xf32> to vector<8x32xf32>
    %100 = arith.subf %94, %99 : vector<8x32xf32>
    %101 = arith.mulf %100, %100 : vector<8x32xf32>
    %cst_39 = arith.constant dense<0.000000e+00> : vector<8xf32>
    %102 = vector.multi_reduction <add>, %101, %cst_39 [1] : vector<8x32xf32> to vector<8xf32>
    %103 = vector.shape_cast %102 : vector<8xf32> to vector<8x1xf32>
    %cst_40 = arith.constant 3.200000e+01 : f32
    %104 = vector.broadcast %cst_40 : f32 to vector<8x1xf32>
    %105 = arith.divf %103, %104 : vector<8x1xf32>
    %106 = vector.broadcast %98 : vector<8x1xf32> to vector<8x32xf32>
    %107 = arith.subf %94, %106 : vector<8x32xf32>
    %cst_41 = arith.constant 9.99999974E-6 : f32
    %108 = vector.broadcast %cst_41 : f32 to vector<8x1xf32>
    %109 = arith.addf %105, %108 : vector<8x1xf32>
    %110 = math.rsqrt %109 : vector<8x1xf32>
    %111 = vector.broadcast %110 : vector<8x1xf32> to vector<8x32xf32>
    %112 = arith.mulf %107, %111 : vector<8x32xf32>
    %113 = vector.broadcast %13 : vector<1x32xf32> to vector<8x32xf32>
    %114 = arith.mulf %112, %113 : vector<8x32xf32>
    %115 = vector.broadcast %14 : vector<1x32xf32> to vector<8x32xf32>
    %116 = arith.addf %114, %115 : vector<8x32xf32>
    %117 = arith.truncf %116 : vector<8x32xf32> to vector<8x32xbf16>
    %c0_42 = arith.constant 0 : index
    %c0_43 = arith.constant 0 : index
    %118 = vector.load %arg9[%c0_42, %c0_43] : memref<32x32xbf16, #tpu.memory_space<vmem>>, vector<32x32xbf16>
    %c0_44 = arith.constant 0 : index
    %c0_45 = arith.constant 0 : index
    %119 = vector.load %arg10[%c0_44, %c0_45] : memref<32x32xbf16, #tpu.memory_space<vmem>>, vector<32x32xbf16>
    %cst_46 = arith.constant dense<0.000000e+00> : vector<8x32xf32>
    %120 = tpu.matmul %117, %118, %cst_46 {dimension_numbers = #tpu.dot_dimension_numbers<[1], [0], [0], [1], [0, 0, 1, 1], [], []>} : vector<8x32xbf16>, vector<32x32xbf16>, vector<8x32xf32> -> vector<8x32xf32>
    %121 = vector.broadcast %15 : vector<1x32xf32> to vector<8x32xf32>
    %122 = arith.addf %120, %121 : vector<8x32xf32>
    %123 = arith.truncf %122 : vector<8x32xf32> to vector<8x32xbf16>
    %124 = vector.extract_strided_slice %123 {offsets = [0, 0], sizes = [8, 8], strides = [1, 1]} : vector<8x32xbf16> to vector<8x8xbf16>
    %125 = vector.extract_strided_slice %7 {offsets = [0, 0], sizes = [16, 8], strides = [1, 1]} : vector<16x32xbf16> to vector<16x8xbf16>
    %cst_47 = arith.constant dense<0.000000e+00> : vector<8x16xf32>
    %126 = tpu.matmul %124, %125, %cst_47 {dimension_numbers = #tpu.dot_dimension_numbers<[1], [1], [0], [0], [0, 0, 1, 0], [], []>} : vector<8x8xbf16>, vector<16x8xbf16>, vector<8x16xf32> -> vector<8x16xf32>
    %cst_48 = arith.constant dense<0xFF800000> : vector<8xf32>
    %127 = vector.multi_reduction <maximumf>, %126, %cst_48 [1] : vector<8x16xf32> to vector<8xf32>
    %128 = vector.shape_cast %127 : vector<8xf32> to vector<8x1xf32>
    %129 = vector.broadcast %128 : vector<8x1xf32> to vector<8x16xf32>
    %130 = arith.subf %126, %129 : vector<8x16xf32>
    %131 = math.exp %130 : vector<8x16xf32>
    %cst_49 = arith.constant dense<0.000000e+00> : vector<8xf32>
    %132 = vector.multi_reduction <add>, %131, %cst_49 [1] : vector<8x16xf32> to vector<8xf32>
    %133 = vector.shape_cast %132 : vector<8xf32> to vector<8x1xf32>
    %134 = vector.broadcast %133 : vector<8x1xf32> to vector<8x16xf32>
    %135 = arith.divf %131, %134 : vector<8x16xf32>
    %136 = arith.truncf %135 : vector<8x16xf32> to vector<8x16xbf16>
    %137 = vector.extract_strided_slice %9 {offsets = [0, 0], sizes = [16, 8], strides = [1, 1]} : vector<16x32xbf16> to vector<16x8xbf16>
    %cst_50 = arith.constant dense<0.000000e+00> : vector<8x8xf32>
    %138 = tpu.matmul %136, %137, %cst_50 {dimension_numbers = #tpu.dot_dimension_numbers<[1], [0], [0], [1], [0, 0, 1, 1], [], []>} : vector<8x16xbf16>, vector<16x8xbf16>, vector<8x8xf32> -> vector<8x8xf32>
    %139 = vector.extract_strided_slice %123 {offsets = [0, 8], sizes = [8, 8], strides = [1, 1]} : vector<8x32xbf16> to vector<8x8xbf16>
    %140 = vector.extract_strided_slice %7 {offsets = [0, 8], sizes = [16, 8], strides = [1, 1]} : vector<16x32xbf16> to vector<16x8xbf16>
    %cst_51 = arith.constant dense<0.000000e+00> : vector<8x16xf32>
    %141 = tpu.matmul %139, %140, %cst_51 {dimension_numbers = #tpu.dot_dimension_numbers<[1], [1], [0], [0], [0, 0, 1, 0], [], []>} : vector<8x8xbf16>, vector<16x8xbf16>, vector<8x16xf32> -> vector<8x16xf32>
    %cst_52 = arith.constant dense<0xFF800000> : vector<8xf32>
    %142 = vector.multi_reduction <maximumf>, %141, %cst_52 [1] : vector<8x16xf32> to vector<8xf32>
    %143 = vector.shape_cast %142 : vector<8xf32> to vector<8x1xf32>
    %144 = vector.broadcast %143 : vector<8x1xf32> to vector<8x16xf32>
    %145 = arith.subf %141, %144 : vector<8x16xf32>
    %146 = math.exp %145 : vector<8x16xf32>
    %cst_53 = arith.constant dense<0.000000e+00> : vector<8xf32>
    %147 = vector.multi_reduction <add>, %146, %cst_53 [1] : vector<8x16xf32> to vector<8xf32>
    %148 = vector.shape_cast %147 : vector<8xf32> to vector<8x1xf32>
    %149 = vector.broadcast %148 : vector<8x1xf32> to vector<8x16xf32>
    %150 = arith.divf %146, %149 : vector<8x16xf32>
    %151 = arith.truncf %150 : vector<8x16xf32> to vector<8x16xbf16>
    %152 = vector.extract_strided_slice %9 {offsets = [0, 8], sizes = [16, 8], strides = [1, 1]} : vector<16x32xbf16> to vector<16x8xbf16>
    %cst_54 = arith.constant dense<0.000000e+00> : vector<8x8xf32>
    %153 = tpu.matmul %151, %152, %cst_54 {dimension_numbers = #tpu.dot_dimension_numbers<[1], [0], [0], [1], [0, 0, 1, 1], [], []>} : vector<8x16xbf16>, vector<16x8xbf16>, vector<8x8xf32> -> vector<8x8xf32>
    %154 = vector.extract_strided_slice %123 {offsets = [0, 16], sizes = [8, 8], strides = [1, 1]} : vector<8x32xbf16> to vector<8x8xbf16>
    %155 = vector.extract_strided_slice %7 {offsets = [0, 16], sizes = [16, 8], strides = [1, 1]} : vector<16x32xbf16> to vector<16x8xbf16>
    %cst_55 = arith.constant dense<0.000000e+00> : vector<8x16xf32>
    %156 = tpu.matmul %154, %155, %cst_55 {dimension_numbers = #tpu.dot_dimension_numbers<[1], [1], [0], [0], [0, 0, 1, 0], [], []>} : vector<8x8xbf16>, vector<16x8xbf16>, vector<8x16xf32> -> vector<8x16xf32>
    %cst_56 = arith.constant dense<0xFF800000> : vector<8xf32>
    %157 = vector.multi_reduction <maximumf>, %156, %cst_56 [1] : vector<8x16xf32> to vector<8xf32>
    %158 = vector.shape_cast %157 : vector<8xf32> to vector<8x1xf32>
    %159 = vector.broadcast %158 : vector<8x1xf32> to vector<8x16xf32>
    %160 = arith.subf %156, %159 : vector<8x16xf32>
    %161 = math.exp %160 : vector<8x16xf32>
    %cst_57 = arith.constant dense<0.000000e+00> : vector<8xf32>
    %162 = vector.multi_reduction <add>, %161, %cst_57 [1] : vector<8x16xf32> to vector<8xf32>
    %163 = vector.shape_cast %162 : vector<8xf32> to vector<8x1xf32>
    %164 = vector.broadcast %163 : vector<8x1xf32> to vector<8x16xf32>
    %165 = arith.divf %161, %164 : vector<8x16xf32>
    %166 = arith.truncf %165 : vector<8x16xf32> to vector<8x16xbf16>
    %167 = vector.extract_strided_slice %9 {offsets = [0, 16], sizes = [16, 8], strides = [1, 1]} : vector<16x32xbf16> to vector<16x8xbf16>
    %cst_58 = arith.constant dense<0.000000e+00> : vector<8x8xf32>
    %168 = tpu.matmul %166, %167, %cst_58 {dimension_numbers = #tpu.dot_dimension_numbers<[1], [0], [0], [1], [0, 0, 1, 1], [], []>} : vector<8x16xbf16>, vector<16x8xbf16>, vector<8x8xf32> -> vector<8x8xf32>
    %169 = vector.extract_strided_slice %123 {offsets = [0, 24], sizes = [8, 8], strides = [1, 1]} : vector<8x32xbf16> to vector<8x8xbf16>
    %170 = vector.extract_strided_slice %7 {offsets = [0, 24], sizes = [16, 8], strides = [1, 1]} : vector<16x32xbf16> to vector<16x8xbf16>
    %cst_59 = arith.constant dense<0.000000e+00> : vector<8x16xf32>
    %171 = tpu.matmul %169, %170, %cst_59 {dimension_numbers = #tpu.dot_dimension_numbers<[1], [1], [0], [0], [0, 0, 1, 0], [], []>} : vector<8x8xbf16>, vector<16x8xbf16>, vector<8x16xf32> -> vector<8x16xf32>
    %cst_60 = arith.constant dense<0xFF800000> : vector<8xf32>
    %172 = vector.multi_reduction <maximumf>, %171, %cst_60 [1] : vector<8x16xf32> to vector<8xf32>
    %173 = vector.shape_cast %172 : vector<8xf32> to vector<8x1xf32>
    %174 = vector.broadcast %173 : vector<8x1xf32> to vector<8x16xf32>
    %175 = arith.subf %171, %174 : vector<8x16xf32>
    %176 = math.exp %175 : vector<8x16xf32>
    %cst_61 = arith.constant dense<0.000000e+00> : vector<8xf32>
    %177 = vector.multi_reduction <add>, %176, %cst_61 [1] : vector<8x16xf32> to vector<8xf32>
    %178 = vector.shape_cast %177 : vector<8xf32> to vector<8x1xf32>
    %179 = vector.broadcast %178 : vector<8x1xf32> to vector<8x16xf32>
    %180 = arith.divf %176, %179 : vector<8x16xf32>
    %181 = arith.truncf %180 : vector<8x16xf32> to vector<8x16xbf16>
    %182 = vector.extract_strided_slice %9 {offsets = [0, 24], sizes = [16, 8], strides = [1, 1]} : vector<16x32xbf16> to vector<16x8xbf16>
    %cst_62 = arith.constant dense<0.000000e+00> : vector<8x8xf32>
    %183 = tpu.matmul %181, %182, %cst_62 {dimension_numbers = #tpu.dot_dimension_numbers<[1], [0], [0], [1], [0, 0, 1, 1], [], []>} : vector<8x16xbf16>, vector<16x8xbf16>, vector<8x8xf32> -> vector<8x8xf32>
    %184 = tpu.concatenate %138, %153, %168, %183 in 1 : vector<8x8xf32>, vector<8x8xf32>, vector<8x8xf32>, vector<8x8xf32> -> vector<8x32xf32>
    %185 = arith.truncf %184 : vector<8x32xf32> to vector<8x32xbf16>
    %cst_63 = arith.constant dense<0.000000e+00> : vector<8x32xf32>
    %186 = tpu.matmul %185, %119, %cst_63 {dimension_numbers = #tpu.dot_dimension_numbers<[1], [0], [0], [1], [0, 0, 1, 1], [], []>} : vector<8x32xbf16>, vector<32x32xbf16>, vector<8x32xf32> -> vector<8x32xf32>
    %187 = vector.broadcast %16 : vector<1x32xf32> to vector<8x32xf32>
    %188 = arith.addf %186, %187 : vector<8x32xf32>
    %189 = arith.addf %116, %188 : vector<8x32xf32>
    %cst_64 = arith.constant dense<0.000000e+00> : vector<8xf32>
    %190 = vector.multi_reduction <add>, %189, %cst_64 [1] : vector<8x32xf32> to vector<8xf32>
    %191 = vector.shape_cast %190 : vector<8xf32> to vector<8x1xf32>
    %cst_65 = arith.constant 3.200000e+01 : f32
    %192 = vector.broadcast %cst_65 : f32 to vector<8x1xf32>
    %193 = arith.divf %191, %192 : vector<8x1xf32>
    %194 = vector.broadcast %193 : vector<8x1xf32> to vector<8x32xf32>
    %195 = arith.subf %189, %194 : vector<8x32xf32>
    %196 = arith.mulf %195, %195 : vector<8x32xf32>
    %cst_66 = arith.constant dense<0.000000e+00> : vector<8xf32>
    %197 = vector.multi_reduction <add>, %196, %cst_66 [1] : vector<8x32xf32> to vector<8xf32>
    %198 = vector.shape_cast %197 : vector<8xf32> to vector<8x1xf32>
    %cst_67 = arith.constant 3.200000e+01 : f32
    %199 = vector.broadcast %cst_67 : f32 to vector<8x1xf32>
    %200 = arith.divf %198, %199 : vector<8x1xf32>
    %201 = vector.broadcast %193 : vector<8x1xf32> to vector<8x32xf32>
    %202 = arith.subf %189, %201 : vector<8x32xf32>
    %cst_68 = arith.constant 9.99999974E-6 : f32
    %203 = vector.broadcast %cst_68 : f32 to vector<8x1xf32>
    %204 = arith.addf %200, %203 : vector<8x1xf32>
    %205 = math.rsqrt %204 : vector<8x1xf32>
    %206 = vector.broadcast %205 : vector<8x1xf32> to vector<8x32xf32>
    %207 = arith.mulf %202, %206 : vector<8x32xf32>
    %208 = vector.broadcast %17 : vector<1x32xf32> to vector<8x32xf32>
    %209 = arith.mulf %207, %208 : vector<8x32xf32>
    %210 = vector.broadcast %18 : vector<1x32xf32> to vector<8x32xf32>
    %211 = arith.addf %209, %210 : vector<8x32xf32>
    %212 = arith.truncf %211 : vector<8x32xf32> to vector<8x32xbf16>
    %c0_69 = arith.constant 0 : index
    %c0_70 = arith.constant 0 : index
    %213 = vector.load %arg11[%c0_69, %c0_70] : memref<32x64xbf16, #tpu.memory_space<vmem>>, vector<32x64xbf16>
    %cst_71 = arith.constant dense<0.000000e+00> : vector<8x64xf32>
    %214 = tpu.matmul %212, %213, %cst_71 {dimension_numbers = #tpu.dot_dimension_numbers<[1], [0], [0], [1], [0, 0, 1, 1], [], []>} : vector<8x32xbf16>, vector<32x64xbf16>, vector<8x64xf32> -> vector<8x64xf32>
    %c0_72 = arith.constant 0 : index
    %c0_73 = arith.constant 0 : index
    %215 = vector.load %arg12[%c0_72, %c0_73] : memref<1x64xf32, #tpu.memory_space<vmem>>, vector<1x64xf32>
    %216 = vector.broadcast %215 : vector<1x64xf32> to vector<8x64xf32>
    %217 = arith.addf %214, %216 : vector<8x64xf32>
    %cst_74 = arith.constant 0.000000e+00 : f32
    %218 = vector.broadcast %cst_74 : f32 to vector<8x64xf32>
    %219 = arith.maximumf %217, %218 : vector<8x64xf32>
    %220 = arith.truncf %219 : vector<8x64xf32> to vector<8x64xbf16>
    %c0_75 = arith.constant 0 : index
    %c0_76 = arith.constant 0 : index
    %221 = vector.load %arg13[%c0_75, %c0_76] : memref<64x32xbf16, #tpu.memory_space<vmem>>, vector<64x32xbf16>
    %cst_77 = arith.constant dense<0.000000e+00> : vector<8x32xf32>
    %222 = tpu.matmul %220, %221, %cst_77 {dimension_numbers = #tpu.dot_dimension_numbers<[1], [0], [0], [1], [0, 0, 1, 1], [], []>} : vector<8x64xbf16>, vector<64x32xbf16>, vector<8x32xf32> -> vector<8x32xf32>
    %223 = vector.broadcast %19 : vector<1x32xf32> to vector<8x32xf32>
    %224 = arith.addf %222, %223 : vector<8x32xf32>
    %225 = arith.addf %211, %224 : vector<8x32xf32>
    %cst_78 = arith.constant dense<0.000000e+00> : vector<8xf32>
    %226 = vector.multi_reduction <add>, %225, %cst_78 [1] : vector<8x32xf32> to vector<8xf32>
    %227 = vector.shape_cast %226 : vector<8xf32> to vector<8x1xf32>
    %cst_79 = arith.constant 3.200000e+01 : f32
    %228 = vector.broadcast %cst_79 : f32 to vector<8x1xf32>
    %229 = arith.divf %227, %228 : vector<8x1xf32>
    %230 = vector.broadcast %229 : vector<8x1xf32> to vector<8x32xf32>
    %231 = arith.subf %225, %230 : vector<8x32xf32>
    %232 = arith.mulf %231, %231 : vector<8x32xf32>
    %cst_80 = arith.constant dense<0.000000e+00> : vector<8xf32>
    %233 = vector.multi_reduction <add>, %232, %cst_80 [1] : vector<8x32xf32> to vector<8xf32>
    %234 = vector.shape_cast %233 : vector<8xf32> to vector<8x1xf32>
    %cst_81 = arith.constant 3.200000e+01 : f32
    %235 = vector.broadcast %cst_81 : f32 to vector<8x1xf32>
    %236 = arith.divf %234, %235 : vector<8x1xf32>
    %237 = vector.broadcast %229 : vector<8x1xf32> to vector<8x32xf32>
    %238 = arith.subf %225, %237 : vector<8x32xf32>
    %cst_82 = arith.constant 9.99999974E-6 : f32
    %239 = vector.broadcast %cst_82 : f32 to vector<8x1xf32>
    %240 = arith.addf %236, %239 : vector<8x1xf32>
    %241 = math.rsqrt %240 : vector<8x1xf32>
    %242 = vector.broadcast %241 : vector<8x1xf32> to vector<8x32xf32>
    %243 = arith.mulf %238, %242 : vector<8x32xf32>
    %244 = vector.broadcast %20 : vector<1x32xf32> to vector<8x32xf32>
    %245 = arith.mulf %243, %244 : vector<8x32xf32>
    %246 = vector.broadcast %21 : vector<1x32xf32> to vector<8x32xf32>
    %247 = arith.addf %245, %246 : vector<8x32xf32>
    %c0_83 = arith.constant 0 : index
    %c0_84 = arith.constant 0 : index
    %c0_85 = arith.constant 0 : index
    %248 = vector.load %arg15[%c0_83, %c0_84, %c0_85] : memref<1x8x32xf32, #tpu.memory_space<vmem>>, vector<1x8x32xf32>
    %249 = vector.shape_cast %248 : vector<1x8x32xf32> to vector<8x32xf32>
    %250 = vector.shape_cast %247 : vector<8x32xf32> to vector<1x8x32xf32>
    tpu.vector_store %arg15[%c0_83, %c0_84, %c0_85], %250 {strides = array<i32>} : memref<1x8x32xf32, #tpu.memory_space<vmem>>, vector<1x8x32xf32>,
    return
  }
  func.func @transform_0(%arg0: i32, %arg1: i32) -> (i32, i32, i32) {
    %c0_i32 = arith.constant 0 : i32
    %c0_i32_0 = arith.constant 0 : i32
    return %arg0, %arg1, %c0_i32 : i32, i32, i32
  }
  func.func @transform_1(%arg0: i32, %arg1: i32) -> (i32, i32, i32) {
    %c0_i32 = arith.constant 0 : i32
    %c0_i32_0 = arith.constant 0 : i32
    %c0_i32_1 = arith.constant 0 : i32
    return %arg0, %c0_i32, %c0_i32_0 : i32, i32, i32
  }
  func.func @transform_2(%arg0: i32, %arg1: i32) -> (i32, i32, i32) {
    %c0_i32 = arith.constant 0 : i32
    %c0_i32_0 = arith.constant 0 : i32
    %c0_i32_1 = arith.constant 0 : i32
    return %arg0, %c0_i32, %c0_i32_0 : i32, i32, i32
  }
  func.func @transform_3(%arg0: i32, %arg1: i32) -> (i32, i32, i32) {
    %c0_i32 = arith.constant 0 : i32
    %c0_i32_0 = arith.constant 0 : i32
    %c0_i32_1 = arith.constant 0 : i32
    return %arg0, %c0_i32, %c0_i32_0 : i32, i32, i32
  }
  func.func @transform_4(%arg0: i32, %arg1: i32) -> (i32, i32, i32) {
    %c0_i32 = arith.constant 0 : i32
    %c0_i32_0 = arith.constant 0 : i32
    %c0_i32_1 = arith.constant 0 : i32
    return %arg0, %c0_i32, %c0_i32_0 : i32, i32, i32
  }
  func.func @transform_5(%arg0: i32, %arg1: i32) -> (i32, i32) {
    %c0_i32 = arith.constant 0 : i32
    %c0_i32_0 = arith.constant 0 : i32
    %c0_i32_1 = arith.constant 0 : i32
    return %c0_i32, %c0_i32_0 : i32, i32
  }
  func.func @transform_6(%arg0: i32, %arg1: i32) -> (i32, i32) {
    %c0_i32 = arith.constant 0 : i32
    %c0_i32_0 = arith.constant 0 : i32
    %c0_i32_1 = arith.constant 0 : i32
    return %c0_i32, %c0_i32_0 : i32, i32
  }
  func.func @transform_7(%arg0: i32, %arg1: i32) -> (i32, i32) {
    %c0_i32 = arith.constant 0 : i32
    %c0_i32_0 = arith.constant 0 : i32
    %c0_i32_1 = arith.constant 0 : i32
    return %c0_i32, %c0_i32_0 : i32, i32
  }
  func.func @transform_8(%arg0: i32, %arg1: i32) -> (i32, i32) {
    %c0_i32 = arith.constant 0 : i32
    %c0_i32_0 = arith.constant 0 : i32
    %c0_i32_1 = arith.constant 0 : i32
    return %c0_i32, %c0_i32_0 : i32, i32
  }
  func.func @transform_9(%arg0: i32, %arg1: i32) -> (i32, i32) {
    %c0_i32 = arith.constant 0 : i32
    %c0_i32_0 = arith.constant 0 : i32
    %c0_i32_1 = arith.constant 0 : i32
    return %c0_i32, %c0_i32_0 : i32, i32
  }
  func.func @transform_10(%arg0: i32, %arg1: i32) -> (i32, i32) {
    %c0_i32 = arith.constant 0 : i32
    %c0_i32_0 = arith.constant 0 : i32
    %c0_i32_1 = arith.constant 0 : i32
    return %c0_i32, %c0_i32_0 : i32, i32
  }
  func.func @transform_11(%arg0: i32, %arg1: i32) -> (i32, i32) {
    %c0_i32 = arith.constant 0 : i32
    %c0_i32_0 = arith.constant 0 : i32
    %c0_i32_1 = arith.constant 0 : i32
    return %c0_i32, %c0_i32_0 : i32, i32
  }
  func.func @transform_12(%arg0: i32, %arg1: i32) -> (i32, i32) {
    %c0_i32 = arith.constant 0 : i32
    %c0_i32_0 = arith.constant 0 : i32
    %c0_i32_1 = arith.constant 0 : i32
    return %c0_i32, %c0_i32_0 : i32, i32
  }
  func.func @transform_13(%arg0: i32, %arg1: i32) -> (i32, i32, i32) {
    %c0_i32 = arith.constant 0 : i32
    %c0_i32_0 = arith.constant 0 : i32
    return %arg0, %arg1, %c0_i32 : i32, i32, i32
  }
}

</mosaic_0001>

<bundles_post_ra>
// kernel: tpu_custom_call.1
= control target key start
LH: loop header
LB: loop body
LE: loop exit
PB: predicated region body
PF: predicated region fallthrough
CT: control target
= control target key end

     0   :  { %s3708_s0 = inlined_call_operand.vmem [shape: f32[2,8,32], index: 0, kind: input, shape index: {}]   ;;  %s3709_s1 = inlined_call_operand.hbm [shape: bf16[2,8,32], index: 1, kind: input, shape index: {}]   ;;  %s3710_s2 = inlined_call_operand.hbm [shape: bf16[2,8,32], index: 2, kind: input, shape index: {}]   ;;  %s3711_s3 = inlined_call_operand.vmem [shape: bf16[2,16,32], index: 3, kind: input, shape index: {}]   ;;  %s3712_s4 = inlined_call_operand.vmem [shape: bf16[2,16,32], index: 4, kind: input, shape index: {}]   ;;  %s3713_s5 = inlined_call_operand.hbm [shape: bf16[32,32], index: 5, kind: input, shape index: {}]   ;;  %s3714_s6 = inlined_call_operand.hbm [shape: bf16[32,32], index: 6, kind: input, shape index: {}]   ;;  %s3715_s7 = inlined_call_operand.hbm [shape: bf16[32,32], index: 7, kind: input, shape index: {}]   ;;  %s3716_s8 = inlined_call_operand.hbm [shape: bf16[32,32], index: 8, kind: input, shape index: {}]   ;;  %s3717_s9 = inlined_call_operand.vmem [shape: bf16[32,64], index: 9, kind: input, shape index: {}]   ;;  %s3718_s10 = inlined_call_operand.vmem [shape: f32[1,64], index: 10, kind: input, shape index: {}]   ;;  %s3719_s11 = inlined_call_operand.vmem [shape: bf16[64,32], index: 11, kind: input, shape index: {}]   ;;  %s3720_s12 = inlined_call_operand.hbm [shape: f32[11,32], index: 12, kind: input, shape index: {}]   ;;  %s3721_s13 = inlined_call_operand.hbm [shape: f32[2,8,32], index: 13, kind: output, shape index: {}]  }
   0x1   :  { %3729 = sst [smem:[#allocation21_spill]] %s3708_s0 }
   0x2   :  { %3730 = sst [smem:[#allocation22_spill]] %s3711_s3 }
   0x3   :  { %3731 = sst [smem:[#allocation23_spill]] %s3712_s4 }
   0x4   :  { %3732 = sst [smem:[#allocation24_spill]] %s3713_s5 }
   0x5   :  { %3733 = sst [smem:[#allocation25_spill]] %s3714_s6 }
   0x6   :  { %3734 = sst [smem:[#allocation26_spill]] %s3715_s7 }
   0x7   :  { %3735 = sst [smem:[#allocation27_spill]] %s3716_s8 }
   0x8   :  { %3736 = sst [smem:[#allocation28_spill]] %s3717_s9 }
   0x9   :  { %3737 = sst [smem:[#allocation29_spill]] %s3718_s10 }
   0xa   :  { %3738 = sst [smem:[#allocation30_spill]] %s3719_s11 }
   0xb   :  { %3739 = sst [smem:[#allocation31_spill]] %s3720_s12 }
   0xc   :  { %3740 = sst [smem:[#allocation32_spill]] %s3721_s13 }
   0xd   :  { %18 = vsyncpa [#allocation3], 0 }
   0xe   :  { %20 = vsyncpa [#allocation3 + $0x1], 0 }
   0xf   :  { %21 = vsyncpa [#allocation6], 0 }
  0x10   :  { %23 = vsyncpa [#allocation6 + $0x1], 0 }
  0x11   :  { %24 = vsyncpa [#allocation9], 0 }
  0x12   :  { %25 = vsyncpa [#allocation12], 0 }
  0x13   :  { %26 = vsyncpa [#allocation4], 0 }
  0x14   :  { %28 = vsyncpa [#allocation4 + $0x1], 0  ;;  %s3104_s25 = smov 0   ;;  %s3106_s26 = smov 0  }
  0x15   :  { %s3108_s27 = smov 0   ;;  %s3110_s28 = smov 0  }
  0x16   :  { %s3112_s29 = smov 0   ;;  %s3114_s30 = smov 0  }
  0x17 LB: > { %s3135_s14 = sadd.s32 4294967295, %s3012_s30   ;;  %p2256_p0 = scmp.ge.s32.totalorder %s3012_s30, 1  ;;  %s3012_s30 = sphi %s3114_s30, %s34_s30   ;;  %s3008_s29 = sphi %s3112_s29, %s3777_s29   ;;  %s3004_s28 = sphi %s3110_s28, %s3776_s28   ;;  %s3000_s27 = sphi %s3108_s27, %s3775_s27   ;;  %s2996_s26 = sphi %s3106_s26, %s3774_s26   ;;  %s2992_s25 = sphi %s3104_s25, %s3773_s25  }
  0x18   : > { %p3725_p1 = scmp.eq.s32.totalorder %s3135_s14, 0  ;;  %p379_p2 = scmp.lt.s32.totalorder %s3012_s30, 3 }
  0x19   : > { %s3014_s16 = smov [#allocation7]   ;;  %s3015_s19 = smov [#allocation8]  }
  0x1a   : > { %p3140_p3 = pnand %p2256_p0, %p379_p2  ;;  %s391_s17 = sshll.u32 %s3014_s16, 4  ;;  %s3144_s17 = int_to_ptr.vmem [resolvable:$true] %s391_s17 }
  0x1b   : > { %s404_s20 = sshll.u32 %s3015_s19, 4  ;;  %s3016_s21 = smov [#allocation11]   ;;  %s3155_s20 = int_to_ptr.vmem [resolvable:$true] %s404_s20 }
  0x1c   : > { %s3741_s15 = scalar_select %p3140_p3, 1, 0 }
  0x1d   : > { %p2554_p4 = pneg %p3140_p3  ;;  %s3157_s22 = sshll.u32 %s3016_s21, 4  ;;  %s431_s22 = int_to_ptr.vmem [resolvable:$true] %s3157_s22 }
  0x1e   : > { %s3743_s5 = sld [smem:[#allocation24_spill]] }
  0x1f   : > { %p3151_p6 = pnand %p2554_p4, %p3725_p1 }
  0x21   : > { %p3167_p8 = pneg %p3151_p6 }
  0x24   : > { %s2714_s16 = scalar_lea.hbm %s3743_s5, 256 }
  0x25   : > { %p2715_p7 = scmp.ne.s32.totalorder %s3743_s5, %s2714_s16  ;;  %p2721_p11 = scmp.lt.u32.totalorder %s2714_s16, %s3743_s5 }
  0x27   : > { %p2717_p9 = pnand %p3167_p8, %p2715_p7 }
  0x29   : > { %p2718_p10 = pneg %p2717_p9 }
  0x2b   : > { %p2723_p12 = pnand %p2721_p11, %p2718_p10 }
  0x2d   : > { %2726 = shalt.err (!%p2723_p12)
}
  0x2e   : > { %s2727_s10 = scalar_lea.vmem %s3144_s17, 256  ;;  %p2735_p4 = scmp.lt.s32.totalorder %s3144_s17, %s3144_s17 }
  0x2f   : > { %p2728_p13 = scmp.ne.s32.totalorder %s3144_s17, %s2727_s10  ;;  %p2736_p5 = scmp.lt.s32.totalorder %s2727_s10, %s2727_s10 }
  0x31   : > { %p2730_p0 = pnand %p2728_p13, %p3167_p8  ;;  %p2737_p7 = por %p2736_p5, %p2735_p4 }
  0x33   : > { %p2731_p2 = pneg %p2730_p0 }
  0x35   : > { %p2738_p9 = pnand %p2737_p7, %p2731_p2 }
  0x37   : > { %2741 = shalt.err (!%p2738_p9)
}
  0x38   : > { %s3017_s13 = smov 64   ;;  %s3018_s23 = smov 4  }
  0x39   : > { %2557 = dma.hbm_to_vmem [thread:$0]  (!%p3151_p6), %s3743_s5, 256, %s3144_s17, [#allocation6], %s3017_s13, %s3017_s13, %s3018_s23  }
  0x3a   : > { %s3745_s6 = sld [smem:[#allocation25_spill]] }
  0x40   : > { %s2742_s10 = scalar_lea.hbm %s3745_s6, 256 }
  0x41   : > { %p2743_p5 = scmp.ne.s32.totalorder %s3745_s6, %s2742_s10  ;;  %p2749_p12 = scmp.lt.u32.totalorder %s2742_s10, %s3745_s6 }
  0x43   : > { %p2745_p10 = pnand %p2743_p5, %p3167_p8 }
  0x45   : > { %p2746_p11 = pneg %p2745_p10 }
  0x47   : > { %p2751_p13 = pnand %p2749_p12, %p2746_p11 }
  0x49   : > { %2754 = shalt.err (!%p2751_p13)
}
  0x4a   : > { %s2755_s17 = scalar_lea.vmem %s3155_s20, 256  ;;  %p2763_p7 = scmp.lt.s32.totalorder %s3155_s20, %s3155_s20 }
  0x4b   : > { %p2756_p0 = scmp.ne.s32.totalorder %s3155_s20, %s2755_s17  ;;  %p2764_p9 = scmp.lt.s32.totalorder %s2755_s17, %s2755_s17 }
  0x4d   : > { %p2758_p2 = pnand %p2756_p0, %p3167_p8  ;;  %p2765_p5 = por %p2764_p9, %p2763_p7 }
  0x4f   : > { %p2759_p4 = pneg %p2758_p2 }
  0x51   : > { %p2766_p10 = pnand %p2765_p5, %p2759_p4 }
  0x53   : > { %2769 = shalt.err (!%p2766_p10)
}
  0x54   : > { %2560 = dma.hbm_to_vmem [thread:$0]  (!%p3151_p6), %s3745_s6, 256, %s3155_s20, [#allocation9], %s3017_s13, %s3017_s13, %s3018_s23  }
  0x55   : > { %s3746_s8 = sld [smem:[#allocation27_spill]] }
  0x5b   : > { %s2770_s24 = scalar_lea.hbm %s3746_s8, 256 }
  0x5c   : > { %p2771_p11 = scmp.ne.s32.totalorder %s3746_s8, %s2770_s24  ;;  %p2777_p0 = scmp.lt.u32.totalorder %s2770_s24, %s3746_s8 }
  0x5e   : > { %p2773_p12 = pnand %p2771_p11, %p3167_p8 }
  0x60   : > { %p2774_p13 = pneg %p2773_p12 }
  0x62   : > { %p2779_p2 = pnand %p2777_p0, %p2774_p13 }
  0x64   : > { %2782 = shalt.err (!%p2779_p2)
}
  0x65   : > { %s2783_s17 = scalar_lea.vmem %s431_s22, 256  ;;  %p2791_p5 = scmp.lt.s32.totalorder %s431_s22, %s431_s22 }
  0x66   : > { %p2784_p4 = scmp.ne.s32.totalorder %s431_s22, %s2783_s17  ;;  %p2792_p10 = scmp.lt.s32.totalorder %s2783_s17, %s2783_s17 }
  0x68   : > { %p2786_p7 = pnand %p2784_p4, %p3167_p8  ;;  %p2793_p1 = por %p2792_p10, %p2791_p5 }
  0x6a   : > { %p2787_p9 = pneg %p2786_p7 }
  0x6c   : > { %p2794_p3 = pnand %p2793_p1, %p2787_p9 }
  0x6e   : > { %2797 = shalt.err (!%p2794_p3)
}
  0x6f   : > { %2566 = dma.hbm_to_vmem [thread:$0]  (!%p3151_p6), %s3746_s8, 256, %s431_s22, [#allocation12], %s3017_s13, %s3017_s13, %s3018_s23  }
  0x70   : > { %s3019_s3 = smov [#allocation10]   ;;  %s3020_s9 = smov [#allocation13]  }
  0x71   : > { %s417_s4 = sshll.u32 %s3019_s3, 4  ;;  %s452_s24 = sshll.u32 %s3020_s9, 4  ;;  %s418_s4 = int_to_ptr.vmem [resolvable:$true] %s417_s4  ;;  %s453_s24 = int_to_ptr.vmem [resolvable:$true] %s452_s24 }
  0x72   : > { %s3747_s7 = sld [smem:[#allocation26_spill]] }
  0x78   : > { %s2798_s21 = scalar_lea.hbm %s3747_s7, 256 }
  0x79   : > { %p2799_p1 = scmp.ne.s32.totalorder %s3747_s7, %s2798_s21  ;;  %p2805_p12 = scmp.lt.u32.totalorder %s2798_s21, %s3747_s7 }
  0x7b   : > { %p2801_p3 = pnand %p2799_p1, %p3167_p8 }
  0x7d   : > { %p2802_p11 = pneg %p2801_p3 }
  0x7f   : > { %p2807_p13 = pnand %p2805_p12, %p2802_p11 }
  0x81   : > { %2810 = shalt.err (!%p2807_p13)
}
  0x82   : > { %s2811_s22 = scalar_lea.vmem %s418_s4, 256  ;;  %p2819_p7 = scmp.lt.s32.totalorder %s418_s4, %s418_s4 }
  0x83   : > { %p2812_p0 = scmp.ne.s32.totalorder %s418_s4, %s2811_s22  ;;  %p2820_p9 = scmp.lt.s32.totalorder %s2811_s22, %s2811_s22 }
  0x85   : > { %p2814_p2 = pnand %p2812_p0, %p3167_p8  ;;  %p2821_p5 = por %p2820_p9, %p2819_p7 }
  0x87   : > { %p2815_p4 = pneg %p2814_p2 }
  0x89   : > { %p2822_p10 = pnand %p2821_p5, %p2815_p4 }
  0x8b   : > { %2825 = shalt.err (!%p2822_p10)
}
  0x8c   : > { %2563 = dma.hbm_to_vmem [thread:$0]  (!%p3151_p6), %s3747_s7, 256, %s418_s4, [#allocation9], %s3017_s13, %s3017_s13, %s3018_s23  }
  0x8d   : > { %s3748_s12 = sld [smem:[#allocation31_spill]] }
  0x93   : > { %s2826_s16 = scalar_lea.hbm %s3748_s12, 256 }
  0x94   : > { %p2827_p1 = scmp.ne.s32.totalorder %s3748_s12, %s2826_s16  ;;  %p2833_p12 = scmp.lt.u32.totalorder %s2826_s16, %s3748_s12 }
  0x96   : > { %p2829_p3 = pnand %p2827_p1, %p3167_p8 }
  0x98   : > { %p2830_p11 = pneg %p2829_p3 }
  0x9a   : > { %p2835_p13 = pnand %p2833_p12, %p2830_p11 }
  0x9c   : > { %2838 = shalt.err (!%p2835_p13)
}
  0x9d   : > { %s2839_s20 = scalar_lea.vmem %s453_s24, 256  ;;  %p2847_p7 = scmp.lt.s32.totalorder %s453_s24, %s453_s24 }
  0x9e   : > { %p2840_p0 = scmp.ne.s32.totalorder %s453_s24, %s2839_s20  ;;  %p2848_p9 = scmp.lt.s32.totalorder %s2839_s20, %s2839_s20 }
  0xa0   : > { %p2842_p2 = pnand %p2840_p0, %p3167_p8  ;;  %p2849_p5 = por %p2848_p9, %p2847_p7 }
  0xa2   : > { %p2843_p4 = pneg %p2842_p2 }
  0xa4   : > { %p2850_p10 = pnand %p2849_p5, %p2843_p4 }
  0xa6   : > { %2853 = shalt.err (!%p2850_p10)
}
  0xa7   : > { %s3021_s13 = smov 128   ;;  %s3022_s11 = smov 8  }
  0xa8   : > { %2569 = dma.hbm_to_vmem [thread:$0]  (!%p3151_p6), %s3748_s12, 256, %s453_s24, [#allocation12], %s3021_s13, %s3021_s13, %s3022_s11  }
  0xa9   : > { %s2255_s22 = sadd.s32 4294967294, %s3012_s30   ;;  %s46_s5 = sadd.s32 1, %s3008_s29 }
  0xaa   : > { %s81_s0 = sadd.s32 1, %s3000_s27  ;;  %p48_p8 = scmp.ge.s32.totalorder %s46_s5, 2 }
  0xab   : > { %p88_p1 = scmp.ne.s32.totalorder %s3000_s27, %s2996_s26  ;;  %p89_p3 = scmp.eq.s32.totalorder %s3012_s30, 0 }
  0xac   : > { %p94_p11 = scmp.ne.s32.totalorder %s2996_s26, %s2992_s25  ;;  %s3779_s5 = smov (%p48_p8, %s46_s5), 0 }
  0xad   : > { %p3288_p12 = por %p89_p3, %p88_p1  ;;  %p3750_p13 = scmp.eq.s32.totalorder %s3135_s14, 0 }
  0xae   : > { %s78_s3 = ssub.s32 %s3008_s29, %s3779_s5  ;;  %p366_p0 = scmp.eq.s32.totalorder %s3135_s14, 1 }
  0xaf   : > { %p3294_p6 = por %p3750_p13, %p94_p11  ;;  %p79_p2 = scmp.eq.s32.totalorder %s78_s3, 0 }
  0xb0   : > { %p372_p4 = scmp.eq.s32.totalorder %s2255_s22, 1  ;;  %p3301_p7 = por %p366_p0, %p88_p1 }
  0xb1   : > { %s3751_s24 = scalar_select %p3294_p6, 1, 0 }
  0xb2   : > { %s3752_s9 = scalar_select %p3301_p7, 1, 0 }
  0xb3   : > { %p2586_p9 = scmp.lt.s32.totalorder %s3012_s30, 2  ;;  %p3309_p5 = por %p372_p4, %p94_p11 }
  0xb4   : > { %s3307_s16 = scalar_select %p79_p2, %s3000_s27, %s81_s0  }
  0xb5   : > { %s3753_s19 = scalar_select %p3309_p5, 1, 0 }
  0xb6   : > { %s476_s21 = sand.u32 1, %s3000_s27   ;;  %s2264_s17 = sshll.u32 %s3008_s29, 6 }
  0xb7   : > { %s3314_s10 = sshll.u32 %s476_s21, 2  ;;  %s3320_s11 = scalar_lea.hbm %s3709_s1, %s2264_s17 }
  0xb8   : > { %s480_s23 = scalar_lea.vmem [#allocation2], %s3314_s10  ;;  %p3327_p10 = pnand %p2586_p9, %p3288_p12 }
  0xb9   : > { %s487_s4 = sshll.u32 %s480_s23, 4  ;;  %s3334_s20 = scalar_lea.hbm %s3710_s2, %s2264_s17  ;;  %s3323_s4 = int_to_ptr.vmem [resolvable:$true] %s487_s4 }
  0xba   : > { %s494_s13 = sand.u32 1, %s3012_s30   ;;  %s477_s6 = scalar_lea.sflag [#allocation3], %s476_s21 }
  0xbb   : > { %s2854_s7 = scalar_lea.hbm %s3320_s11, 64  ;;  %p2856_p1 = pneg %p3327_p10 }
  0xbc   : > { %p2855_p8 = scmp.ne.s32.totalorder %s3320_s11, %s2854_s7  ;;  %s2859_s8 = scalar_lea.hbm %s3709_s1, 128 }
  0xbd   : > { %p2860_p12 = scmp.lt.u32.totalorder %s3320_s11, %s3709_s1  ;;  %p2861_p13 = scmp.lt.u32.totalorder %s2859_s8, %s2854_s7 }
  0xbe   : > { %p2857_p3 = pnand %p2856_p1, %p2855_p8  ;;  %p2863_p2 = scmp.lt.u32.totalorder %s2854_s7, %s3320_s11 }
  0xbf   : > { %p2862_p0 = por %p2861_p13, %p2860_p12 }
  0xc0   : > { %p2858_p11 = pneg %p2857_p3 }
  0xc1   : > { %p2864_p4 = por %p2863_p2, %p2862_p0 }
  0xc3   : > { %p2865_p9 = pnand %p2864_p4, %p2858_p11 }
  0xc5   : > { %2868 = shalt.err (!%p2865_p9)
}
  0xc6   : > { %s2869_s21 = scalar_lea.vmem %s3323_s4, 64  ;;  %s3023_s17 = smov [#allocation2]  }
  0xc7   : > { %p2870_p8 = scmp.ne.s32.totalorder %s3323_s4, %s2869_s21  ;;  %s2874_s3 = sshll.u32 %s3023_s17, 4  ;;  %s2875_s3 = int_to_ptr.vmem [resolvable:$false] %s2874_s3 }
  0xc8   : > { %s2876_s12 = scalar_lea.vmem %s2875_s3, 128  ;;  %p2877_p7 = scmp.lt.s32.totalorder %s3323_s4, %s2875_s3 }
  0xc9   : > { %p2872_p3 = pnand %p2870_p8, %p2856_p1  ;;  %p2878_p12 = scmp.lt.s32.totalorder %s2876_s12, %s2869_s21 }
  0xcb   : > { %p2873_p5 = pneg %p2872_p3  ;;  %p2879_p13 = por %p2878_p12, %p2877_p7 }
  0xcd   : > { %p2880_p0 = pnand %p2879_p13, %p2873_p5 }
  0xcf   : > { %2883 = shalt.err (!%p2880_p0)
}
  0xd0   : > { %2573 = dma.hbm_to_vmem [thread:$0]  (!%p3327_p10), %s3320_s11, 64, %s3323_s4, %s477_s6  }
  0xd1   : > { %s498_s7 = scalar_lea.vmem [#allocation5], %s3314_s10  ;;  %s495_s18 = scalar_lea.sflag [#allocation6], %s494_s13 }
  0xd2   : > { %s505_s8 = sshll.u32 %s498_s7, 4  ;;  %s2884_s23 = scalar_lea.hbm %s3334_s20, 64  ;;  %s506_s8 = int_to_ptr.vmem [resolvable:$true] %s505_s8 }
  0xd3   : > { %p2885_p7 = scmp.ne.s32.totalorder %s3334_s20, %s2884_s23  ;;  %s2889_s17 = scalar_lea.hbm %s3710_s2, 128 }
  0xd4   : > { %p2890_p2 = scmp.lt.u32.totalorder %s3334_s20, %s3710_s2  ;;  %p2891_p4 = scmp.lt.u32.totalorder %s2889_s17, %s2884_s23 }
  0xd5   : > { %p2887_p5 = pnand %p2885_p7, %p2856_p1  ;;  %p2893_p8 = scmp.lt.u32.totalorder %s2884_s23, %s3334_s20 }
  0xd6   : > { %p2892_p9 = por %p2891_p4, %p2890_p2 }
  0xd7   : > { %p2888_p11 = pneg %p2887_p5 }
  0xd8   : > { %p2894_p3 = por %p2893_p8, %p2892_p9 }
  0xda   : > { %p2895_p12 = pnand %p2894_p3, %p2888_p11 }
  0xdc   : > { %2898 = shalt.err (!%p2895_p12)
}
  0xdd   : > { %s2899_s6 = scalar_lea.vmem %s506_s8, 64  ;;  %s3024_s10 = smov [#allocation5]  }
  0xde   : > { %p2900_p13 = scmp.ne.s32.totalorder %s506_s8, %s2899_s6  ;;  %s2904_s11 = sshll.u32 %s3024_s10, 4  ;;  %s2905_s11 = int_to_ptr.vmem [resolvable:$false] %s2904_s11 }
  0xdf   : > { %s2906_s4 = scalar_lea.vmem %s2905_s11, 128  ;;  %p2907_p5 = scmp.lt.s32.totalorder %s506_s8, %s2905_s11 }
  0xe0   : > { %p2902_p0 = pnand %p2900_p13, %p2856_p1  ;;  %p2908_p6 = scmp.lt.s32.totalorder %s2906_s4, %s2899_s6 }
  0xe2   : > { %p2903_p7 = pneg %p2902_p0  ;;  %p2909_p2 = por %p2908_p6, %p2907_p5 }
  0xe4   : > { %p2910_p4 = pnand %p2909_p2, %p2903_p7 }
  0xe6   : > { %2913 = shalt.err (!%p2910_p4)
}
  0xe7   : > { %2576 = dma.hbm_to_vmem [thread:$0]  (!%p3327_p10), %s3334_s20, 64, %s506_s8, %s495_s18  }
  0xe8   : > { %p3755_p11 = scmp.ne.s32.totalorder %s3741_s15, 0 }
  0xe9   : > { %s3387_s13 = sand.u32 (!%p3755_p11), 1, %s2996_s26   ;;  %p3756_p1 = scmp.ne.s32.totalorder (!%p3755_p11), %s3751_s24, 0 }
  0xea   : > { %530 = sbr.rel (%p3755_p11) target bundleno = 4498 (0x1192), region = 72  ;;  %s2268_s7 = sshll.u32 (!%p3755_p11), %s3387_s13, 2 }
  0xeb   : > { %s533_s23 = scalar_lea.sflag (!%p3755_p11), [#allocation3], %s3387_s13  ;;  %s536_s0 = scalar_lea.vmem (!%p3755_p11), [#allocation2], %s2268_s7 }
  0xf1   : > { %2967 = dma.done.wait (%p3756_p1), %s533_s23, 64  }
  0xf2   : > { %2969 = vsyncadd (%p3756_p1), %s533_s23, 4294967232  ;;  %s541_s22 = sand.u32 1, %s3135_s14   ;;  %s3396_s15 = scalar_lea.vmem [#allocation5], %s2268_s7 }
  0xf3   : > { %s542_s20 = scalar_lea.sflag [#allocation6], %s541_s22 }
  0xf4   : > { %2971 = dma.done.wait (%p3756_p1), %s542_s20, 64  }
  0xf5   : > { %2973 = vsyncadd (%p3756_p1), %s542_s20, 4294967232  ;;  %p3757_p6 = scmp.eq.s32.totalorder %s3135_s14, 0 }
  0xf7   : > { %2975 = dma.done.wait (%p3757_p6), [#allocation6], 256   ;;  %p3758_p10 = pmov %p3757_p6 }
  0xf8   : > { %p3759_p9 = pmov %p3757_p6 }
  0xf9   : > { %2977 = vsyncadd (%p3758_p10), [#allocation6], 4294967040 }
  0xfa   : > { %2979 = dma.done.wait (%p3759_p9), [#allocation9], 512   ;;  %p3760_p8 = pmov %p3757_p6 }
  0xfb   : > { %p3761_p3 = pmov %p3757_p6 }
  0xfc   : > { %2981 = vsyncadd (%p3760_p8), [#allocation9], 4294966784 }
  0xfd   : > { %2983 = dma.done.wait (%p3761_p3), [#allocation12], 512   ;;  %p3762_p12 = pmov %p3761_p3 }
  0xfe   : > { %p630_p13 = scmp.lt.s32.totalorder %s3004_s28, 1  ;;  %v3025_v0 = vmov 0.0   ;;  %vm3026_vm0 = vmmov 0   ;;  %s3763_s21 = sld [smem:[#allocation21_spill]]  ;;  %v2658_v1 = vld [vmem:[#allocation7] sm:$0xff]   ;;  %vm727_vm1 = vcmask 64512   ;;  %v666_v8 = vlaneseq }
  0xff   : > { %2985 = vsyncadd (%p3762_p12), [#allocation12], 4294966784  ;;  %2380 = vmatprep.subr.bf16.mxu0 %v3025_v0  ;;  %2384 = vmatprep.mubr.msk.bf16.mxu0 %vm3026_vm0, %v3025_v0  ;;  %v2659_v2 = vld [vmem:[#allocation7 + $0x8] sm:$0xff]   ;;  %v649_v4 = vld [vmem:[%s536_s0] sm:$0xf]  ;;  %vm682_vm2 = vcmask 261120  }
 0x100   : > { %s631_s24 = scalar_select %p630_p13, %s3004_s28, 1  ;;  %2388 = vmatprep.subr.bf16.mxu1 %v3025_v0  ;;  %2390 = vmatprep.mubr.msk.bf16.mxu1 %vm3026_vm0, %v3025_v0  ;;  %v2286_v5 = vcombine.low %v649_v4, %v649_v4  ;;  %v732_v6 = vsel %vm727_vm1, %v649_v4, 0  ;;  %v3441_v9 = vshrl.u32 %v666_v8, 7  ;;  %v3444_v11 = vld [vmem:[#allocation13] sm:$0xff]  ;;  %v650_v53 = vld [vmem:[%s3396_s15] sm:$0xf] }
 0x101   : > { %2381 = vmatpush3.bf16.msra.mxu0 %v2658_v1  ;;  %2389 = vmatpush3.bf16.xpose.msra.mxu1 %v732_v6  ;;  %s3027_s3 = smov 120   ;;  %s3028_s12 = smov 112   ;;  %v2288_v54 = vcombine.low %v650_v53, %v650_v53  ;;  %vm789_vm3 = vcmask 1043456   ;;  %vm1183_vm4 = vcmask 130048   ;;  %vm1185_vm5 = vcmask 195584  }
 0x102   : > { %s3422_s8 = sshll.u32 %s631_s24, 3  ;;  %2382 = vmatprep.subr.bf16.mxu0 %v3025_v0  ;;  %839 = vrot.lane.b32.xlu0 %v2286_v5, %s3027_s3  ;;  %v668_v10 = vsub.s32 0, %v3441_v9  ;;  %s3029_s6 = smov 104   ;;  %v791_v55 = vsel %vm789_vm3, %v650_v53, 0  ;;  %vm1982_vm6 = vcmask 523264  }
 0x103   : > { %2400 = vmatprep.subr.bf16.mxu1 %v3025_v0  ;;  %952 = vrot.lane.b32.xlu1 %v2286_v5, %s3028_s12  ;;  %s3030_s10 = smov 8   ;;  %s3031_s11 = smov 16  }
 0x104   : > { %s636_s17 = scalar_lea.vmem %s3763_s21, %s3422_s8  ;;  %v669_v12 = vrot.slane %v3444_v11, %v668_v10  ;;  %s3032_s4 = smov 24  }
 0x105   : > { %v3428_v3 = vld [vmem:[%s636_s17] sm:$0xff]  ;;  %2383 = vmatpush3.bf16.msra.mxu0 %v2659_v2  ;;  %s3764_s0 = sld [smem:[#allocation22_spill]]  ;;  %s3765_s24 = sld [smem:[#allocation23_spill]] }
 0x106   : > { %v657_v7 = vpack.c.bf16 %v3428_v3, %v3428_v3  ;;  %2394 = vmatprep.subr.bf16.mxu0 %v3025_v0  ;;  %s3766_s21 = sld [smem:[#allocation28_spill]]  ;;  %p3770_p7 = scmp.ne.s32.totalorder %s3752_s9, 0 }
 0x108   : > { %2385 = vmatmul.mubr.msk.bf16.vlgmr.msra.gmra.mrb[0].mxu0 %vm682_vm2, %v657_v7 }
 0x109   : > { %2396 = vmatprep.mubr.msk.bf16.mxu0 %vm3026_vm0, %v3025_v0  ;;  %2395 = vmatpush3.bf16.msra.mxu0 %v791_v55 }
 0x10a   : > { %2406 = vmatprep.subr.bf16.mxu0 %v3025_v0 }
 0x10b   : > { %s641_s22 = scalar_lea.vmem %s3764_s0, %s3422_s8  ;;  %s646_s14 = scalar_lea.vmem %s3765_s24, %s3422_s8 }
 0x10c   : > { %s3768_s24 = sld [smem:[#allocation29_spill]]  ;;  %s2323_s8 = sshll.u32 %s3004_s28, 7 }
 0x10d   : > { %s3033_s28 = smov [#allocation14]  }
 0x10e   : > { %s2918_s23 = sshll.u32 %s3033_s28, 4  ;;  %s2919_s23 = int_to_ptr.vmem [resolvable:$false] %s2918_s23 }
 0x10f   : > { %s2920_s0 = scalar_lea.vmem %s2919_s23, 256 }
 0x174   : > { %v840_v16 = vpop.permute.xlu0 %839 }
 0x175   : > { %v845_v20 = vsel %vm727_vm1, %v840_v16, 0  ;;  %v953_v21 = vpop.permute.xlu1 %952 }
 0x176   : > { %v958_v22 = vsel %vm727_vm1, %v953_v21, 0 }
 0x1db   : > { %v720_v13 = vpop.f32.mrb[0].mxu0 }
 0x1dc   : > { %v721_v14 = vadd.f32 %v720_v13, %v669_v12  ;;  %v2386_v15 = vpop.f32.mrb[1].mxu0 }
 0x1dd   : > { %v723_v17 = vpop.f32.mrb[2].mxu0 }
 0x1de   : > { %v726_v18 = vpack.c.bf16 %v721_v14, %v721_v14  ;;  %v2387_v19 = vpop.f32.mrb[3].mxu0 }
 0x1e0   : > { %950 = vrot.lane.b32.xlu1 %v726_v18, %s3028_s12  ;;  %834 = vrot.lane.b32.xlu0 %v726_v18, %s3027_s3 }
 0x1e1   : > { %2391 = vmatmul.mubr.msk.bf16.vlgmr.msra.gmra.mrb[0].mxu1 %vm727_vm1, %v726_v18 }
 0x1e2   : > { %2401 = vmatpush3.bf16.xpose.msra.mxu1 %v845_v20  ;;  %2402 = vmatprep.mubr.msk.bf16.mxu1 %vm3026_vm0, %v3025_v0 }
 0x1e3   : > { %2412 = vmatprep.subr.bf16.mxu1 %v3025_v0 }
 0x1e4   : > { %1060 = vrot.lane.b32.xlu1 %v726_v18, %s3029_s6  ;;  %1062 = vrot.lane.b32.xlu0 %v2286_v5, %s3029_s6 }
 0x252   : > { %v835_v23 = vpop.permute.xlu0 %834  ;;  %v951_v26 = vpop.permute.xlu1 %950 }
 0x253   : > { %2403 = vmatmul.mubr.msk.bf16.vlgmr.msra.gmra.mrb[4].mxu1 %vm727_vm1, %v835_v23 }
 0x254   : > { %2413 = vmatpush3.bf16.xpose.msra.mxu1 %v958_v22  ;;  %2414 = vmatprep.mubr.msk.bf16.mxu1 %vm3026_vm0, %v3025_v0 }
 0x255   : > { %2424 = vmatprep.subr.bf16.mxu1 %v3025_v0 }
 0x256   : > { %v1063_v24 = vpop.permute.xlu0 %1062  ;;  %v1061_v27 = vpop.permute.xlu1 %1060 }
 0x257   : > { %v1068_v25 = vsel %vm727_vm1, %v1063_v24, 0 }
 0x25b   : > { %2415 = vmatmul.mubr.msk.bf16.vlgmr.msra.gmra.mrb[8].mxu1 %vm727_vm1, %v951_v26 }
 0x25c   : > { %2425 = vmatpush3.bf16.xpose.msra.mxu1 %v1068_v25  ;;  %2426 = vmatprep.mubr.msk.bf16.mxu1 %vm3026_vm0, %v3025_v0 }
 0x25d   : > { %2436 = vmatprep.subr.bf16.mxu1 %v3025_v0 }
 0x263   : > { %2427 = vmatmul.mubr.msk.bf16.vlgmr.msra.gmra.mrb[12].mxu1 %vm727_vm1, %v1061_v27 }
 0x264   : > { %2440 = vmatprep.mubr.msk.bf16.mxu1 %vm3026_vm0, %v3025_v0 }
 0x2b4   : > { %v768_v28 = vpop.f32.mrb[0].mxu1 }
 0x2b5   : > { %v2392_v29 = vpop.f32.mrb[1].mxu1  ;;  %v774_v30 = vsel %vm727_vm1, %v768_v28, -inf }
 0x2b6   : > { %775 = vmax.xlane.f32.xlu0 %v774_v30  ;;  %v771_v31 = vpop.f32.mrb[2].mxu1 }
 0x2b7   : > { %v2393_v32 = vpop.f32.mrb[3].mxu1 }
 0x326   : > { %v881_v33 = vpop.f32.mrb[4].mxu1 }
 0x327   : > { %v2404_v34 = vpop.f32.mrb[5].mxu1  ;;  %v887_v35 = vsel %vm727_vm1, %v881_v33, -inf }
 0x328   : > { %888 = vmax.xlane.f32.xlu1 %v887_v35  ;;  %v884_v36 = vpop.f32.mrb[6].mxu1 }
 0x329   : > { %v2405_v37 = vpop.f32.mrb[7].mxu1 }
 0x32e   : > { %v994_v38 = vpop.f32.mrb[8].mxu1 }
 0x32f   : > { %v2416_v39 = vpop.f32.mrb[9].mxu1  ;;  %v1000_v40 = vsel %vm727_vm1, %v994_v38, -inf }
 0x330   : > { %1001 = vmax.xlane.f32.xlu0 %v1000_v40  ;;  %v997_v41 = vpop.f32.mrb[10].mxu1 }
 0x331   : > { %v2417_v42 = vpop.f32.mrb[11].mxu1 }
 0x336   : > { %v1104_v43 = vpop.f32.mrb[12].mxu1 }
 0x337   : > { %v2428_v44 = vpop.f32.mrb[13].mxu1  ;;  %v1110_v45 = vsel %vm727_vm1, %v1104_v43, -inf }
 0x338   : > { %1111 = vmax.xlane.f32.xlu0 %v1110_v45  ;;  %v1107_v46 = vpop.f32.mrb[14].mxu1 }
 0x339   : > { %v2429_v47 = vpop.f32.mrb[15].mxu1 }
 0x343   : > { %v776_v48 = vpop.xlane.xlu0 %775 }
 0x344   : > { %v777_v49 = vsub.f32 %v768_v28, %v776_v48 }
 0x346   : > { %v778_v50 = vmul.f32 1.442695, %v777_v49 }
 0x348   : > { %2676 = vpow2.f32 %v778_v50 }
 0x352   : > { %v2677_v51 = vpop.eup %2676 }
 0x353   : > { %v780_v52 = vsel %vm727_vm1, %v2677_v51, 0.0 }
 0x354   : > { %781 = vadd.xlane.f32.xlu1 %v780_v52 }
 0x365   : > { %902 = vrot.lane.b32.xlu1 %v2288_v54, %s3027_s3 }
 0x3b5   : > { %v889_v56 = vpop.xlane.xlu1 %888 }
 0x3b6   : > { %v890_v57 = vsub.f32 %v881_v33, %v889_v56 }
 0x3b8   : > { %v891_v58 = vmul.f32 1.442695, %v890_v57 }
 0x3ba   : > { %2678 = vpow2.f32 %v891_v58 }
 0x3bd   : > { %v1002_v59 = vpop.xlane.xlu0 %1001 }
 0x3be   : > { %v1003_v60 = vsub.f32 %v994_v38, %v1002_v59  ;;  %v2662_v38 = vld [vmem:[#allocation8] sm:$0xff]   ;;  %v1190_v59 = vsub.s32 1, %v3441_v9 }
 0x3bf   : > { %2437 = vmatpush3.bf16.msra.mxu1 %v2662_v38 }
 0x3c0   : > { %v1004_v61 = vmul.f32 1.442695, %v1003_v60  ;;  %2438 = vmatprep.subr.bf16.mxu1 %v3025_v0  ;;  %v1191_v60 = vrot.slane %v3444_v11, %v1190_v59 }
 0x3c2   : > { %2680 = vpow2.f32 %v1004_v61 }
 0x3c4   : > { %v2679_v62 = vpop.eup %2678 }
 0x3c5   : > { %v1112_v63 = vpop.xlane.xlu0 %1111  ;;  %v893_v1 = vsel %vm727_vm1, %v2679_v62, 0.0 }
 0x3c6   : > { %v1113_v2 = vsub.f32 %v1104_v43, %v1112_v63  ;;  %894 = vadd.xlane.f32.xlu0 %v893_v1  ;;  %v2663_v43 = vld [vmem:[#allocation8 + $0x8] sm:$0xff]  }
 0x3c7   : > { %2439 = vmatpush3.bf16.msra.mxu1 %v2663_v43 }
 0x3c8   : > { %v1114_v4 = vmul.f32 1.442695, %v1113_v2  ;;  %2452 = vmatprep.subr.bf16.mxu1 %v3025_v0 }
 0x3ca   : > { %2682 = vpow2.f32 %v1114_v4 }
 0x3cc   : > { %v2681_v5 = vpop.eup %2680 }
 0x3cd   : > { %v1006_v6 = vsel %vm727_vm1, %v2681_v5, 0.0 }
 0x3ce   : > { %1007 = vadd.xlane.f32.xlu1 %v1006_v6 }
 0x3d4   : > { %v2683_v7 = vpop.eup %2682 }
 0x3d5   : > { %v1116_v8 = vsel %vm727_vm1, %v2683_v7, 0.0 }
 0x3d6   : > { %1117 = vadd.xlane.f32.xlu0 %v1116_v8 }
 0x3df   : > { %1122 = vrot.lane.b32.xlu1 %v2288_v54, %s3029_s6 }
 0x3e1   : > { %v782_v12 = vpop.xlane.xlu1 %781 }
 0x3e2   : > { %2684 = vrcp.f32 %v782_v12 }
 0x3e5   : > { %v903_v14 = vpop.permute.xlu1 %902 }
 0x3e6   : > { %v908_v17 = vsel %vm789_vm3, %v903_v14, 0  ;;  %v2664_v14 = vld [vmem:[#allocation10] sm:$0xff]  }
 0x3ec   : > { %v2685_v13 = vpop.eup %2684  ;;  %1012 = vrot.lane.b32.xlu0 %v2288_v54, %s3028_s12 }
 0x3ed   : > { %v784_v15 = vmul.f32 %v2685_v13, %v2677_v51 }
 0x3ef   : > { %v785_v16 = vpack.c.bf16 %v784_v15, %v784_v15  ;;  %v2665_v15 = vld [vmem:[#allocation10 + $0x8] sm:$0xff]  }
 0x3f1   : > { %2397 = vmatmul.mubr.msk.bf16.vlgmr.msra.gmra.mrb[4].mxu0 %vm727_vm1, %v785_v16 }
 0x3f2   : > { %2407 = vmatpush3.bf16.msra.mxu0 %v908_v17  ;;  %2408 = vmatprep.mubr.msk.bf16.mxu0 %vm3026_vm0, %v3025_v0 }
 0x3f3   : > { %2418 = vmatprep.subr.bf16.mxu0 %v3025_v0 }
 0x453   : > { %v895_v18 = vpop.xlane.xlu0 %894 }
 0x454   : > { %2686 = vrcp.f32 %v895_v18 }
 0x45b   : > { %v1008_v19 = vpop.xlane.xlu1 %1007 }
 0x45c   : > { %2688 = vrcp.f32 %v1008_v19 }
 0x45e   : > { %v2687_v20 = vpop.eup %2686 }
 0x45f   : > { %v897_v21 = vmul.f32 %v2687_v20, %v2679_v62  ;;  %v1123_v27 = vpop.permute.xlu1 %1122  ;;  %v1264_v20 = vsub.s32 2, %v3441_v9 }
 0x460   : > { %v1128_v30 = vsel %vm789_vm3, %v1123_v27, 0 }
 0x461   : > { %v898_v22 = vpack.c.bf16 %v897_v21, %v897_v21  ;;  %v1269_v21 = vsub.s32 3, %v3441_v9 }
 0x463   : > { %2409 = vmatmul.mubr.msk.bf16.vlgmr.msra.gmra.mrb[8].mxu0 %vm727_vm1, %v898_v22  ;;  %v1118_v23 = vpop.xlane.xlu0 %1117  ;;  %v1265_v22 = vrot.slane %v3444_v11, %v1264_v20 }
 0x464   : > { %2690 = vrcp.f32 %v1118_v23  ;;  %2420 = vmatprep.mubr.msk.bf16.mxu0 %vm3026_vm0, %v3025_v0 }
 0x466   : > { %v2689_v24 = vpop.eup %2688 }
 0x467   : > { %v1010_v25 = vmul.f32 %v2689_v24, %v2681_v5  ;;  %v1013_v26 = vpop.permute.xlu0 %1012 }
 0x468   : > { %v1018_v28 = vsel %vm789_vm3, %v1013_v26, 0 }
 0x469   : > { %2419 = vmatpush3.bf16.msra.mxu0 %v1018_v28  ;;  %v1011_v29 = vpack.c.bf16 %v1010_v25, %v1010_v25  ;;  %v1270_v25 = vrot.slane %v3444_v11, %v1269_v21 }
 0x46a   : > { %2430 = vmatprep.subr.bf16.mxu0 %v3025_v0 }
 0x46c   : > { %2421 = vmatmul.mubr.msk.bf16.vlgmr.msra.gmra.mrb[12].mxu0 %vm727_vm1, %v1011_v29  ;;  %v1283_v29 = vsub.s32 4, %v3441_v9 }
 0x46d   : > { %2431 = vmatpush3.bf16.msra.mxu0 %v1128_v30  ;;  %2432 = vmatprep.mubr.msk.bf16.mxu0 %vm3026_vm0, %v3025_v0 }
 0x46e   : > { %v2691_v31 = vpop.eup %2690  ;;  %2444 = vmatprep.subr.bf16.mxu0 %v3025_v0  ;;  %v1284_v30 = vrot.slane %v3444_v11, %v1283_v29 }
 0x46f   : > { %v1120_v32 = vmul.f32 %v2691_v31, %v2683_v7 }
 0x471   : > { %v1121_v33 = vpack.c.bf16 %v1120_v32, %v1120_v32 }
 0x474   : > { %2433 = vmatmul.mubr.msk.bf16.vlgmr.msra.gmra.mrb[16].mxu0 %vm727_vm1, %v1121_v33 }
 0x475   : > { %2448 = vmatprep.mubr.msk.bf16.mxu0 %vm3026_vm0, %v3025_v0  ;;  %2445 = vmatpush3.bf16.msra.mxu0 %v2664_v14 }
 0x476   : > { %2446 = vmatprep.subr.bf16.mxu0 %v3025_v0 }
 0x479   : > { %2447 = vmatpush3.bf16.msra.mxu0 %v2665_v15 }
 0x47a   : > { %2458 = vmatprep.subr.bf16.mxu0 %v3025_v0 }
 0x4c4   : > { %v827_v34 = vpop.f32.mrb[4].mxu0 }
 0x4c5   : > { %v2398_v35 = vpop.f32.mrb[5].mxu0 }
 0x4c6   : > { %v830_v36 = vpop.f32.mrb[6].mxu0 }
 0x4c7   : > { %v2399_v37 = vpop.f32.mrb[7].mxu0 }
 0x536   : > { %v944_v39 = vpop.f32.mrb[8].mxu0 }
 0x537   : > { %1171 = vrot.lane.b32.xlu1 %v944_v39, %s3030_s10  ;;  %v2410_v40 = vpop.f32.mrb[9].mxu0 }
 0x538   : > { %v947_v41 = vpop.f32.mrb[10].mxu0 }
 0x539   : > { %v2411_v42 = vpop.f32.mrb[11].mxu0 }
 0x53f   : > { %v1054_v44 = vpop.f32.mrb[12].mxu0 }
 0x540   : > { %1175 = vrot.lane.b32.xlu0 %v1054_v44, %s3031_s11  ;;  %v2422_v45 = vpop.f32.mrb[13].mxu0 }
 0x541   : > { %v1057_v46 = vpop.f32.mrb[14].mxu0 }
 0x542   : > { %v2423_v47 = vpop.f32.mrb[15].mxu0 }
 0x547   : > { %v1164_v48 = vpop.f32.mrb[16].mxu0 }
 0x548   : > { %1179 = vrot.lane.b32.xlu1 %v1164_v48, %s3032_s4  ;;  %v2434_v49 = vpop.f32.mrb[17].mxu0 }
 0x549   : > { %v1167_v50 = vpop.f32.mrb[18].mxu0 }
 0x54a   : > { %v2435_v51 = vpop.f32.mrb[19].mxu0 }
 0x54b   : > { %v2667_v51 = vld [vmem:[%s646_s14] sm:$0xff]   ;;  %s2275_s14 = sshll.u32 %s3387_s13, 3 }
 0x54c   : > { %s629_s18 = scalar_lea.vmem [#allocation14], %s2275_s14 }
 0x54d   : > { %s2066_s17 = sshll.u32 %s629_s18, 4  ;;  %s3660_s17 = int_to_ptr.vmem [resolvable:$true] %s2066_s17 }
 0x54e   : > { %s2914_s7 = scalar_lea.vmem %s3660_s17, 128  ;;  %p2921_p4 = scmp.lt.s32.totalorder %s3660_s17, %s2919_s23 }
 0x54f   : > { %p2915_p0 = scmp.ne.s32.totalorder %s3660_s17, %s2914_s7  ;;  %p2922_p11 = scmp.lt.s32.totalorder %s2920_s0, %s2914_s7 }
 0x551   : > { %p2916_p5 = pnand %p2915_p0, %p3770_p7  ;;  %p2923_p1 = por %p2922_p11, %p2921_p4 }
 0x553   : > { %p2917_p2 = pneg %p2916_p5 }
 0x555   : > { %p2924_p6 = pnand %p2923_p1, %p2917_p2 }
 0x5a9   : > { %v1172_v52 = vpop.permute.xlu1 %1171 }
 0x5aa   : > { %v1182_v54 = vsel %vm727_vm1, %v827_v34, %v1172_v52 }
 0x5b2   : > { %v1176_v53 = vpop.permute.xlu0 %1175 }
 0x5b3   : > { %v1184_v55 = vsel %vm1183_vm4, %v1182_v54, %v1176_v53 }
 0x5ba   : > { %v1180_v56 = vpop.permute.xlu1 %1179 }
 0x5bb   : > { %v1186_v57 = vsel %vm1185_vm5, %v1184_v55, %v1180_v56 }
 0x5bc   : > { %v1187_v58 = vpack.c.bf16 %v1186_v57, %v1186_v57 }
 0x5be   : > { %2441 = vmatmul.mubr.msk.bf16.vlgmr.msra.gmra.mrb[16].mxu1 %vm682_vm2, %v1187_v58 }
 0x5bf   : > { %2454 = vmatprep.mubr.msk.bf16.mxu1 %vm3026_vm0, %v3025_v0 }
 0x691   : > { %v1241_v61 = vpop.f32.mrb[16].mxu1 }
 0x692   : > { %v1242_v62 = vadd.f32 %v1241_v61, %v1191_v60  ;;  %v2442_v63 = vpop.f32.mrb[17].mxu1 }
 0x693   : > { %v1244_v1 = vpop.f32.mrb[18].mxu1 }
 0x694   : > { %v2443_v2 = vpop.f32.mrb[19].mxu1  ;;  %v1247_v4 = vadd.f32 %v1242_v62, %v3428_v3  ;;  %v2666_v3 = vld [vmem:[%s641_s22] sm:$0xff]  }
 0x695   : > { %v1350_v16 = vsel %vm727_vm1, %v2666_v3, 0 }
 0x696   : > { %v1248_v5 = vsel %vm682_vm2, %v1247_v4, 0.0  ;;  %2453 = vmatpush3.bf16.xpose.msra.mxu1 %v1350_v16 }
 0x697   : > { %1249 = vadd.xlane.f32.xlu0 %v1248_v5  ;;  %2464 = vmatprep.subr.bf16.mxu1 %v3025_v0 }
 0x6ad   : > { %1456 = vrot.lane.b32.xlu0 %v2666_v3, %s3027_s3 }
 0x6b1   : > { %1564 = vrot.lane.b32.xlu0 %v2666_v3, %s3028_s12 }
 0x6b5   : > { %1672 = vrot.lane.b32.xlu0 %v2666_v3, %s3029_s6 }
 0x724   : > { %v1250_v6 = vpop.xlane.xlu0 %1249 }
 0x725   : > { %v1252_v7 = vmul.f32 0.03125, %v1250_v6 }
 0x727   : > { %v1253_v8 = vsub.f32 %v1247_v4, %v1252_v7 }
 0x728   : > { %v1457_v32 = vpop.permute.xlu0 %1456 }
 0x729   : > { %v1254_v12 = vmul.f32 %v1253_v8, %v1253_v8  ;;  %v1462_v38 = vsel %vm727_vm1, %v1457_v32, 0 }
 0x72b   : > { %v1255_v13 = vsel %vm682_vm2, %v1254_v12, 0.0 }
 0x72c   : > { %1256 = vadd.xlane.f32.xlu1 %v1255_v13  ;;  %v1565_v39 = vpop.permute.xlu0 %1564 }
 0x72d   : > { %v1570_v40 = vsel %vm727_vm1, %v1565_v39, 0 }
 0x730   : > { %v1673_v42 = vpop.permute.xlu0 %1672 }
 0x731   : > { %v1678_v43 = vsel %vm727_vm1, %v1673_v42, 0 }
 0x7b9   : > { %v1257_v17 = vpop.xlane.xlu1 %1256 }
 0x7ba   : > { %v1258_v18 = vmul.f32 0.03125, %v1257_v17 }
 0x7bc   : > { %v1259_v19 = vadd.f32 1e-05, %v1258_v18 }
 0x7be   : > { %2692 = vrsqrt.f32 %v1259_v19 }
 0x7c8   : > { %v2693_v23 = vpop.eup %2692 }
 0x7c9   : > { %v1261_v24 = vmul.f32 %v2693_v23, %v1253_v8 }
 0x7cb   : > { %v1266_v26 = vmul.f32 %v1265_v22, %v1261_v24 }
 0x7cd   : > { %v3538_v27 = vadd.f32 %v1270_v25, %v1266_v26 }
 0x7cf   : > { %v1272_v28 = vpack.c.bf16 %v3538_v27, %v3538_v27 }
 0x7d1   : > { %2449 = vmatmul.mubr.msk.bf16.vlgmr.msra.gmra.mrb[20].mxu0 %vm682_vm2, %v1272_v28 }
 0x7d2   : > { %2460 = vmatprep.mubr.msk.bf16.mxu0 %vm3026_vm0, %v3025_v0  ;;  %2459 = vmatpush3.bf16.msra.mxu0 %v2667_v51 }
 0x7d3   : > { %2470 = vmatprep.subr.bf16.mxu0 %v3025_v0 }
 0x8a4   : > { %v1334_v31 = vpop.f32.mrb[20].mxu0 }
 0x8a5   : > { %v1335_v33 = vadd.f32 %v1334_v31, %v1284_v30  ;;  %v2450_v34 = vpop.f32.mrb[21].mxu0 }
 0x8a6   : > { %v1337_v35 = vpop.f32.mrb[22].mxu0 }
 0x8a7   : > { %v1340_v36 = vpack.c.bf16 %v1335_v33, %v1335_v33  ;;  %v2451_v37 = vpop.f32.mrb[23].mxu0 }
 0x8a9   : > { %1454 = vrot.lane.b32.xlu1 %v1340_v36, %s3027_s3  ;;  %2455 = vmatmul.mubr.msk.bf16.vlgmr.msra.gmra.mrb[20].mxu1 %vm727_vm1, %v1340_v36 }
 0x8aa   : > { %2465 = vmatpush3.bf16.xpose.msra.mxu1 %v1462_v38  ;;  %2466 = vmatprep.mubr.msk.bf16.mxu1 %vm3026_vm0, %v3025_v0 }
 0x8ab   : > { %2476 = vmatprep.subr.bf16.mxu1 %v3025_v0 }
 0x8ad   : > { %1562 = vrot.lane.b32.xlu1 %v1340_v36, %s3028_s12 }
 0x8b1   : > { %1670 = vrot.lane.b32.xlu1 %v1340_v36, %s3029_s6 }
 0x91b   : > { %v1455_v41 = vpop.permute.xlu1 %1454 }
 0x91c   : > { %2467 = vmatmul.mubr.msk.bf16.vlgmr.msra.gmra.mrb[24].mxu1 %vm727_vm1, %v1455_v41 }
 0x91d   : > { %2477 = vmatpush3.bf16.xpose.msra.mxu1 %v1570_v40  ;;  %2478 = vmatprep.mubr.msk.bf16.mxu1 %vm3026_vm0, %v3025_v0 }
 0x91e   : > { %2488 = vmatprep.subr.bf16.mxu1 %v3025_v0 }
 0x91f   : > { %v1563_v44 = vpop.permute.xlu1 %1562 }
 0x923   : > { %v1671_v45 = vpop.permute.xlu1 %1670 }
 0x924   : > { %2479 = vmatmul.mubr.msk.bf16.vlgmr.msra.gmra.mrb[28].mxu1 %vm727_vm1, %v1563_v44 }
 0x925   : > { %2489 = vmatpush3.bf16.xpose.msra.mxu1 %v1678_v43  ;;  %2490 = vmatprep.mubr.msk.bf16.mxu1 %vm3026_vm0, %v3025_v0 }
 0x926   : > { %2500 = vmatprep.subr.bf16.mxu1 %v3025_v0 }
 0x92c   : > { %2491 = vmatmul.mubr.msk.bf16.vlgmr.msra.gmra.mrb[32].mxu1 %vm727_vm1, %v1671_v45 }
 0x92d   : > { %2504 = vmatprep.mubr.msk.bf16.mxu1 %vm3026_vm0, %v3025_v0 }
 0x97c   : > { %v1386_v46 = vpop.f32.mrb[20].mxu1 }
 0x97d   : > { %v2456_v47 = vpop.f32.mrb[21].mxu1  ;;  %v1392_v48 = vsel %vm1183_vm4, %v1386_v46, -inf }
 0x97e   : > { %1393 = vmax.xlane.f32.xlu0 %v1392_v48  ;;  %v1389_v49 = vpop.f32.mrb[22].mxu1 }
 0x97f   : > { %v2457_v50 = vpop.f32.mrb[23].mxu1 }
 0x9ef   : > { %v1498_v52 = vpop.f32.mrb[24].mxu1 }
 0x9f0   : > { %v2468_v53 = vpop.f32.mrb[25].mxu1  ;;  %v1504_v54 = vsel %vm1183_vm4, %v1498_v52, -inf }
 0x9f1   : > { %1505 = vmax.xlane.f32.xlu1 %v1504_v54  ;;  %v1501_v55 = vpop.f32.mrb[26].mxu1  ;;  %v2668_v53 = vld [vmem:[#allocation11] sm:$0xff]  }
 0x9f2   : > { %v2469_v56 = vpop.f32.mrb[27].mxu1  ;;  %2501 = vmatpush3.bf16.msra.mxu1 %v2668_v53 }
 0x9f3   : > { %2502 = vmatprep.subr.bf16.mxu1 %v3025_v0 }
 0x9f7   : > { %v1606_v57 = vpop.f32.mrb[28].mxu1 }
 0x9f8   : > { %v2480_v58 = vpop.f32.mrb[29].mxu1  ;;  %v1612_v60 = vsel %vm1183_vm4, %v1606_v57, -inf }
 0x9f9   : > { %1613 = vmax.xlane.f32.xlu0 %v1612_v60  ;;  %v1609_v61 = vpop.f32.mrb[30].mxu1  ;;  %v2669_v58 = vld [vmem:[#allocation11 + $0x8] sm:$0xff]  }
 0x9fa   : > { %v2481_v62 = vpop.f32.mrb[31].mxu1  ;;  %2503 = vmatpush3.bf16.msra.mxu1 %v2669_v58 }
 0x9fb   : > { %2516 = vmatprep.subr.bf16.mxu1 %v3025_v0 }
 0x9ff   : > { %v1714_v63 = vpop.f32.mrb[32].mxu1 }
 0xa00   : > { %v2492_v1 = vpop.f32.mrb[33].mxu1  ;;  %v1720_v2 = vsel %vm1183_vm4, %v1714_v63, -inf }
 0xa01   : > { %1721 = vmax.xlane.f32.xlu0 %v1720_v2  ;;  %v1717_v4 = vpop.f32.mrb[34].mxu1 }
 0xa02   : > { %v2493_v5 = vpop.f32.mrb[35].mxu1 }
 0xa0b   : > { %v1394_v6 = vpop.xlane.xlu0 %1393 }
 0xa0c   : > { %v1395_v7 = vsub.f32 %v1386_v46, %v1394_v6 }
 0xa0e   : > { %v1396_v8 = vmul.f32 1.442695, %v1395_v7 }
 0xa10   : > { %2694 = vpow2.f32 %v1396_v8 }
 0xa1a   : > { %v2695_v12 = vpop.eup %2694 }
 0xa1b   : > { %v1398_v13 = vsel %vm1183_vm4, %v2695_v12, 0.0 }
 0xa1c   : > { %1399 = vadd.xlane.f32.xlu1 %v1398_v13 }
 0xa2d   : > { %1516 = vrot.lane.b32.xlu1 %v2667_v51, %s3027_s3 }
 0xa7e   : > { %v1506_v14 = vpop.xlane.xlu1 %1505 }
 0xa7f   : > { %v1507_v15 = vsub.f32 %v1498_v52, %v1506_v14 }
 0xa81   : > { %v1508_v3 = vmul.f32 1.442695, %v1507_v15 }
 0xa83   : > { %2696 = vpow2.f32 %v1508_v3  ;;  %v1796_v3 = vsub.s32 5, %v3441_v9 }
 0xa86   : > { %v1614_v16 = vpop.xlane.xlu0 %1613 }
 0xa87   : > { %v1615_v17 = vsub.f32 %v1606_v57, %v1614_v16  ;;  %v1797_v16 = vrot.slane %v3444_v11, %v1796_v3 }
 0xa89   : > { %v1616_v18 = vmul.f32 1.442695, %v1615_v17 }
 0xa8b   : > { %2698 = vpow2.f32 %v1616_v18 }
 0xa8d   : > { %v2697_v19 = vpop.eup %2696 }
 0xa8e   : > { %v1722_v21 = vpop.xlane.xlu0 %1721  ;;  %v1510_v22 = vsel %vm1183_vm4, %v2697_v19, 0.0 }
 0xa8f   : > { %v1723_v23 = vsub.f32 %v1714_v63, %v1722_v21  ;;  %1511 = vadd.xlane.f32.xlu0 %v1510_v22 }
 0xa91   : > { %v1724_v24 = vmul.f32 1.442695, %v1723_v23 }
 0xa93   : > { %2700 = vpow2.f32 %v1724_v24 }
 0xa95   : > { %v2699_v25 = vpop.eup %2698 }
 0xa96   : > { %v1618_v26 = vsel %vm1183_vm4, %v2699_v25, 0.0 }
 0xa97   : > { %1619 = vadd.xlane.f32.xlu1 %v1618_v26 }
 0xa9d   : > { %v2701_v28 = vpop.eup %2700 }
 0xa9e   : > { %v1726_v29 = vsel %vm1183_vm4, %v2701_v28, 0.0 }
 0xa9f   : > { %1727 = vadd.xlane.f32.xlu0 %v1726_v29 }
 0xaa8   : > { %1732 = vrot.lane.b32.xlu1 %v2667_v51, %s3029_s6  ;;  %s3769_s6 = sld [smem:[#allocation32_spill]] }
 0xaa9   : > { %v1400_v30 = vpop.xlane.xlu1 %1399 }
 0xaaa   : > { %2702 = vrcp.f32 %v1400_v30 }
 0xaad   : > { %v1517_v34 = vpop.permute.xlu1 %1516 }
 0xab4   : > { %v2703_v31 = vpop.eup %2702 }
 0xab5   : > { %v1402_v32 = vmul.f32 %v2703_v31, %v2695_v12  ;;  %1624 = vrot.lane.b32.xlu0 %v2667_v51, %s3028_s12  ;;  %v2670_v31 = vld [vmem:[%s3766_s21] sm:$0xff]  }
 0xab7   : > { %v1403_v33 = vpack.c.bf16 %v1402_v32, %v1402_v32  ;;  %v2671_v32 = vld [vmem:[%s3766_s21 + $0x8] sm:$0xff]  }
 0xab9   : > { %2461 = vmatmul.mubr.msk.bf16.vlgmr.msra.gmra.mrb[24].mxu0 %vm1183_vm4, %v1403_v33 }
 0xaba   : > { %2471 = vmatpush3.bf16.msra.mxu0 %v1517_v34  ;;  %2472 = vmatprep.mubr.msk.bf16.mxu0 %vm3026_vm0, %v3025_v0 }
 0xabb   : > { %2482 = vmatprep.subr.bf16.mxu0 %v3025_v0 }
 0xb1c   : > { %v1512_v35 = vpop.xlane.xlu0 %1511 }
 0xb1d   : > { %2704 = vrcp.f32 %v1512_v35 }
 0xb24   : > { %v1620_v36 = vpop.xlane.xlu1 %1619 }
 0xb25   : > { %2706 = vrcp.f32 %v1620_v36 }
 0xb27   : > { %v2705_v37 = vpop.eup %2704 }
 0xb28   : > { %v1514_v38 = vmul.f32 %v2705_v37, %v2697_v19  ;;  %v1733_v45 = vpop.permute.xlu1 %1732  ;;  %v1869_v37 = vsub.s32 6, %v3441_v9 }
 0xb2a   : > { %v1515_v39 = vpack.c.bf16 %v1514_v38, %v1514_v38  ;;  %v1874_v38 = vsub.s32 7, %v3441_v9 }
 0xb2c   : > { %2473 = vmatmul.mubr.msk.bf16.vlgmr.msra.gmra.mrb[28].mxu0 %vm1183_vm4, %v1515_v39  ;;  %v1728_v40 = vpop.xlane.xlu0 %1727  ;;  %v1870_v39 = vrot.slane %v3444_v11, %v1869_v37 }
 0xb2d   : > { %2708 = vrcp.f32 %v1728_v40  ;;  %2484 = vmatprep.mubr.msk.bf16.mxu0 %vm3026_vm0, %v3025_v0 }
 0xb2f   : > { %v2707_v41 = vpop.eup %2706 }
 0xb30   : > { %v1622_v42 = vmul.f32 %v2707_v41, %v2699_v25  ;;  %v1625_v43 = vpop.permute.xlu0 %1624 }
 0xb31   : > { %2483 = vmatpush3.bf16.msra.mxu0 %v1625_v43 }
 0xb32   : > { %v1623_v44 = vpack.c.bf16 %v1622_v42, %v1622_v42  ;;  %2494 = vmatprep.subr.bf16.mxu0 %v3025_v0  ;;  %v1875_v42 = vrot.slane %v3444_v11, %v1874_v38  ;;  %v2313_v11 = vld [vmem:[%s3768_s24] ss:$0 sm:$0xff] }
 0xb34   : > { %2485 = vmatmul.mubr.msk.bf16.vlgmr.msra.gmra.mrb[32].mxu0 %vm1183_vm4, %v1623_v44 }
 0xb35   : > { %2495 = vmatpush3.bf16.msra.mxu0 %v1733_v45  ;;  %2496 = vmatprep.mubr.msk.bf16.mxu0 %vm3026_vm0, %v3025_v0 }
 0xb36   : > { %2508 = vmatprep.subr.bf16.mxu0 %v3025_v0 }
 0xb37   : > { %v2709_v46 = vpop.eup %2708 }
 0xb38   : > { %v1730_v47 = vmul.f32 %v2709_v46, %v2701_v28 }
 0xb3a   : > { %v1731_v48 = vpack.c.bf16 %v1730_v47, %v1730_v47 }
 0xb3c   : > { %2497 = vmatmul.mubr.msk.bf16.vlgmr.msra.gmra.mrb[36].mxu0 %vm1183_vm4, %v1731_v48 }
 0xb3d   : > { %2512 = vmatprep.mubr.msk.bf16.mxu0 %vm3026_vm0, %v3025_v0  ;;  %2509 = vmatpush3.bf16.msra.mxu0 %v2670_v31 }
 0xb3e   : > { %2510 = vmatprep.subr.bf16.mxu0 %v3025_v0 }
 0xb41   : > { %2511 = vmatpush3.bf16.msra.mxu0 %v2671_v32 }
 0xb8c   : > { %v1447_v49 = vpop.f32.mrb[24].mxu0 }
 0xb8d   : > { %v2462_v50 = vpop.f32.mrb[25].mxu0 }
 0xb8e   : > { %v1450_v51 = vpop.f32.mrb[26].mxu0 }
 0xb8f   : > { %v2463_v52 = vpop.f32.mrb[27].mxu0 }
 0xbff   : > { %v1556_v54 = vpop.f32.mrb[28].mxu0 }
 0xc00   : > { %1779 = vrot.lane.b32.xlu1 %v1556_v54, %s3030_s10  ;;  %v2474_v55 = vpop.f32.mrb[29].mxu0  ;;  %s3767_s10 = sld [smem:[#allocation30_spill]] }
 0xc01   : > { %v1559_v56 = vpop.f32.mrb[30].mxu0  ;;  %v656_v55 = vld [vmem:[#allocation13 + $0x8] sm:$0x7] }
 0xc02   : > { %v2475_v57 = vpop.f32.mrb[31].mxu0 }
 0xc06   : > { %v2673_v33 = vld [vmem:[%s3767_s10 + $0x8] sm:$0xff]   ;;  %v2674_v46 = vld [vmem:[%s3767_s10 + $0x10] sm:$0xff]   ;;  %v2675_v47 = vld [vmem:[%s3767_s10 + $0x18] sm:$0xff]  }
 0xc07   : > { %v1664_v60 = vpop.f32.mrb[32].mxu0 }
 0xc08   : > { %1783 = vrot.lane.b32.xlu0 %v1664_v60, %s3031_s11  ;;  %v2486_v61 = vpop.f32.mrb[33].mxu0  ;;  %s3658_s11 = scalar_lea.hbm %s3769_s6, %s2323_s8 }
 0xc09   : > { %v1667_v62 = vpop.f32.mrb[34].mxu0 }
 0xc0a   : > { %v2487_v63 = vpop.f32.mrb[35].mxu0 }
 0xc0f   : > { %v1772_v1 = vpop.f32.mrb[36].mxu0 }
 0xc10   : > { %1787 = vrot.lane.b32.xlu1 %v1772_v1, %s3032_s4  ;;  %v2498_v2 = vpop.f32.mrb[37].mxu0  ;;  %s2052_s4 = scalar_lea.sflag [#allocation4], %s3387_s13 }
 0xc11   : > { %v1775_v4 = vpop.f32.mrb[38].mxu0 }
 0xc12   : > { %v2499_v5 = vpop.f32.mrb[39].mxu0 }
 0xc72   : > { %v1780_v6 = vpop.permute.xlu1 %1779 }
 0xc73   : > { %v1790_v8 = vsel %vm727_vm1, %v1447_v49, %v1780_v6 }
 0xc7a   : > { %v1784_v7 = vpop.permute.xlu0 %1783 }
 0xc7b   : > { %v1791_v12 = vsel %vm1183_vm4, %v1790_v8, %v1784_v7 }
 0xc82   : > { %v1788_v13 = vpop.permute.xlu1 %1787 }
 0xc83   : > { %v1792_v14 = vsel %vm1185_vm5, %v1791_v12, %v1788_v13  ;;  %v2043_v12 = vrot.slane %v656_v55, %v1190_v59 }
 0xc84   : > { %v1793_v15 = vpack.c.bf16 %v1792_v14, %v1792_v14  ;;  %v2048_v14 = vrot.slane %v656_v55, %v1264_v20 }
 0xc86   : > { %2505 = vmatmul.mubr.msk.bf16.vlgmr.msra.gmra.mrb[36].mxu1 %vm682_vm2, %v1793_v15 }
 0xc87   : > { %2524 = vmatprep.mubr.msk.bf16.mxu1 %vm3026_vm0, %v3025_v0 }
 0xd59   : > { %v1847_v17 = vpop.f32.mrb[36].mxu1 }
 0xd5a   : > { %v1848_v18 = vadd.f32 %v1847_v17, %v1797_v16  ;;  %v2506_v19 = vpop.f32.mrb[37].mxu1 }
 0xd5b   : > { %v1850_v21 = vpop.f32.mrb[38].mxu1 }
 0xd5c   : > { %v2507_v22 = vpop.f32.mrb[39].mxu1  ;;  %v1853_v23 = vadd.f32 %v1848_v18, %v3538_v27  ;;  %v2672_v27 = vld [vmem:[%s3767_s10] sm:$0xff]  }
 0xd5d   : > { %2517 = vmatpush3.bf16.msra.mxu1 %v2672_v27 }
 0xd5e   : > { %v1854_v24 = vsel %vm682_vm2, %v1853_v23, 0.0  ;;  %2518 = vmatprep.subr.bf16.mxu1 %v3025_v0 }
 0xd5f   : > { %1855 = vadd.xlane.f32.xlu0 %v1854_v24 }
 0xd61   : > { %2519 = vmatpush3.bf16.msra.mxu1 %v2673_v33 }
 0xd62   : > { %2520 = vmatprep.subr.bf16.mxu1 %v3025_v0 }
 0xd65   : > { %2521 = vmatpush3.bf16.msra.mxu1 %v2674_v46 }
 0xd66   : > { %2522 = vmatprep.subr.bf16.mxu1 %v3025_v0  ;;  %v1957_v0 = vrot.slane %v656_v55, %v668_v10 }
 0xd69   : > { %2523 = vmatpush3.bf16.msra.mxu1 %v2675_v47 }
 0xdec   : > { %v1856_v25 = vpop.xlane.xlu0 %1855 }
 0xded   : > { %v1857_v26 = vmul.f32 0.03125, %v1856_v25 }
 0xdef   : > { %v1858_v28 = vsub.f32 %v1853_v23, %v1857_v26 }
 0xdf1   : > { %v1859_v29 = vmul.f32 %v1858_v28, %v1858_v28 }
 0xdf3   : > { %v1860_v30 = vsel %vm682_vm2, %v1859_v29, 0.0 }
 0xdf4   : > { %1861 = vadd.xlane.f32.xlu1 %v1860_v30 }
 0xe81   : > { %v1862_v34 = vpop.xlane.xlu1 %1861 }
 0xe82   : > { %v1863_v35 = vmul.f32 0.03125, %v1862_v34 }
 0xe84   : > { %v1864_v36 = vadd.f32 1e-05, %v1863_v35 }
 0xe86   : > { %2710 = vrsqrt.f32 %v1864_v36 }
 0xe90   : > { %v2711_v40 = vpop.eup %2710 }
 0xe91   : > { %v1866_v41 = vmul.f32 %v2711_v40, %v1858_v28 }
 0xe93   : > { %v1871_v43 = vmul.f32 %v1870_v39, %v1866_v41 }
 0xe95   : > { %v1876_v44 = vadd.f32 %v1875_v42, %v1871_v43 }
 0xe97   : > { %v1877_v45 = vpack.c.bf16 %v1876_v44, %v1876_v44 }
 0xe99   : > { %2513 = vmatmul.mubr.msk.bf16.vlgmr.msra.gmra.mrb[40].mxu0 %vm682_vm2, %v1877_v45 }
 0xf6c   : > { %v1938_v48 = vpop.f32.mrb[40].mxu0 }
 0xf6d   : > { %v1939_v49 = vadd.f32 %v2313_v11, %v1938_v48  ;;  %v2514_v50 = vpop.f32.mrb[41].mxu0 }
 0xf6e   : > { %v1941_v51 = vpop.f32.mrb[42].mxu0 }
 0xf6f   : > { %v1944_v52 = vmax.f32 %v1939_v49, 0.0  ;;  %v2515_v53 = vpop.f32.mrb[43].mxu0 }
 0xf71   : > { %v1945_v54 = vpack.c.bf16 %v1944_v52, %v1944_v52 }
 0xf73   : > { %2525 = vmatmul.mubr.msk.bf16.vlgmr.msra.gmra.mrb[40].mxu1 %vm1982_vm6, %v1945_v54 }
0x1046   : > { %v2020_v56 = vpop.f32.mrb[40].mxu1 }
0x1047   : > { %v2021_v57 = vadd.f32 %v2020_v56, %v1957_v0  ;;  %v2526_v58 = vpop.f32.mrb[41].mxu1 }
0x1048   : > { %v2023_v60 = vpop.f32.mrb[42].mxu1 }
0x1049   : > { %v2527_v61 = vpop.f32.mrb[43].mxu1  ;;  %v2026_v62 = vadd.f32 %v2021_v57, %v1876_v44 }
0x104b   : > { %v2027_v63 = vsel %vm682_vm2, %v2026_v62, 0.0 }
0x104c   : > { %2028 = vadd.xlane.f32.xlu0 %v2027_v63 }
0x10d9   : > { %v2029_v1 = vpop.xlane.xlu0 %2028 }
0x10da   : > { %v2030_v2 = vmul.f32 0.03125, %v2029_v1 }
0x10dc   : > { %v2031_v4 = vsub.f32 %v2026_v62, %v2030_v2 }
0x10de   : > { %v2032_v5 = vmul.f32 %v2031_v4, %v2031_v4 }
0x10e0   : > { %v2033_v6 = vsel %vm682_vm2, %v2032_v5, 0.0 }
0x10e1   : > { %2034 = vadd.xlane.f32.xlu0 %v2033_v6 }
0x116e   : > { %v2035_v7 = vpop.xlane.xlu0 %2034 }
0x116f   : > { %v2036_v10 = vmul.f32 0.03125, %v2035_v7 }
0x1171   : > { %v2037_v8 = vadd.f32 1e-05, %v2036_v10 }
0x1173   : > { %2712 = vrsqrt.f32 %v2037_v8 }
0x117d   : > { %v2713_v13 = vpop.eup %2712 }
0x117e   : > { %v2039_v15 = vmul.f32 %v2713_v13, %v2031_v4 }
0x1180   : > { %v2044_v3 = vmul.f32 %v2043_v12, %v2039_v15 }
0x1182   : > { %v2049_v16 = vadd.f32 %v2048_v14, %v2044_v3 }
0x1184   : > { %2050 = vst.msk [vmem:[%s629_s18] sm:$0xff] %vm682_vm2, %v2049_v16 }
0x1185   : > { %2927 = shalt.err (!%p2924_p6)
}
0x1186   : > { %s2928_s13 = scalar_lea.hbm %s3658_s11, 128  ;;  %s2932_s15 = scalar_lea.hbm %s3769_s6, 256 }
0x1187   : > { %p2929_p10 = scmp.ne.s32.totalorder %s3658_s11, %s2928_s13  ;;  %p2933_p3 = scmp.lt.u32.totalorder %s3658_s11, %s3769_s6 }
0x1188   : > { %p2934_p12 = scmp.lt.u32.totalorder %s2932_s15, %s2928_s13  ;;  %p2936_p0 = scmp.lt.u32.totalorder %s2928_s13, %s3658_s11 }
0x1189   : > { %p2930_p9 = pnand %p2929_p10, %p3770_p7 }
0x118a   : > { %p2935_p13 = por %p2934_p12, %p2933_p3 }
0x118b   : > { %p2931_p8 = pneg %p2930_p9 }
0x118c   : > { %p2937_p5 = por %p2936_p0, %p2935_p13 }
0x118e   : > { %p2938_p2 = pnand %p2937_p5, %p2931_p8 }
0x1190   : > { %2941 = shalt.err (!%p2938_p2)
}
0x1191   : > { %2552 = dma.vmem_to_hbm [thread:$0]  (%p3770_p7), %s3660_s17, 128, %s3658_s11, %s2052_s4  }
0x1192 PF: > { %s2078_s8 = sand.u32 1, %s2992_s25   ;;  %p3771_p4 = scmp.ne.s32.totalorder %s3753_s19, 0 }
0x1193   : > { %p3772_p11 = scmp.ge.s32.totalorder %s3012_s30, 2  ;;  %s2079_s18 = scalar_lea.sflag [#allocation4], %s2078_s8 }
0x1195   : > { %p2578_p1 = pnand %p3772_p11, %p3771_p4 }
0x1197   : > { %2987 = dma.done.wait (!%p2578_p1), %s2079_s18, 128  }
0x1198   : > { %2989 = vsyncadd (!%p2578_p1), %s2079_s18, 4294967168  ;;  %s34_s30 = sadd.s32 1, %s3012_s30   ;;  %s3773_s25 = smov %s2996_s26 }
0x1199   : > { %p31_p6 = scmp.ge.s32.totalorder %s34_s30, 4   ;;  %s3774_s26 = smov %s3000_s27 }
0x119a   : > { %s3775_s27 = smov %s3307_s16  ;;  %s3776_s28 = smov %s3008_s29 }
0x119b   : > { %s3777_s29 = smov %s3779_s5  ;;  %33 = sbr.rel (!%p31_p6) target bundleno = 23 (0x17), region = 159 }
0x11a2   :  { %2084 = vsyncpa [#allocation3], 1 }
0x11a3   :  { %2086 = vsyncpa [#allocation3 + $0x1], 1 }
0x11a4   :  { %2087 = vsyncpa [#allocation6], 1 }
0x11a5   :  { %2089 = vsyncpa [#allocation6 + $0x1], 1 }
0x11a6   :  { %2090 = vsyncpa [#allocation9], 1 }
0x11a7   :  { %2091 = vsyncpa [#allocation12], 1 }
0x11a8   :  { %2092 = vsyncpa [#allocation4], 1 }
0x11a9   :  { %2094 = vsyncpa [#allocation4 + $0x1], 1 }

// kernel: tpu_custom_call.1
= control target key start
LH: loop header
LB: loop body
LE: loop exit
PB: predicated region body
PF: predicated region fallthrough
CT: control target
= control target key end

     0   :  { %s3708_s0 = inlined_call_operand.vmem [shape: f32[2,8,32], index: 0, kind: input, shape index: {}]   ;;  %s3709_s1 = inlined_call_operand.hbm [shape: bf16[2,8,32], index: 1, kind: input, shape index: {}]   ;;  %s3710_s2 = inlined_call_operand.hbm [shape: bf16[2,8,32], index: 2, kind: input, shape index: {}]   ;;  %s3711_s3 = inlined_call_operand.vmem [shape: bf16[2,16,32], index: 3, kind: input, shape index: {}]   ;;  %s3712_s4 = inlined_call_operand.vmem [shape: bf16[2,16,32], index: 4, kind: input, shape index: {}]   ;;  %s3713_s5 = inlined_call_operand.hbm [shape: bf16[32,32], index: 5, kind: input, shape index: {}]   ;;  %s3714_s6 = inlined_call_operand.hbm [shape: bf16[32,32], index: 6, kind: input, shape index: {}]   ;;  %s3715_s7 = inlined_call_operand.hbm [shape: bf16[32,32], index: 7, kind: input, shape index: {}]   ;;  %s3716_s8 = inlined_call_operand.hbm [shape: bf16[32,32], index: 8, kind: input, shape index: {}]   ;;  %s3717_s9 = inlined_call_operand.vmem [shape: bf16[32,64], index: 9, kind: input, shape index: {}]   ;;  %s3718_s10 = inlined_call_operand.vmem [shape: f32[1,64], index: 10, kind: input, shape index: {}]   ;;  %s3719_s11 = inlined_call_operand.vmem [shape: bf16[64,32], index: 11, kind: input, shape index: {}]   ;;  %s3720_s12 = inlined_call_operand.hbm [shape: f32[11,32], index: 12, kind: input, shape index: {}]   ;;  %s3721_s13 = inlined_call_operand.hbm [shape: f32[2,8,32], index: 13, kind: output, shape index: {}]  }
   0x1   :  { %3729 = sst [smem:[#allocation21_spill]] %s3708_s0 }
   0x2   :  { %3730 = sst [smem:[#allocation22_spill]] %s3711_s3 }
   0x3   :  { %3731 = sst [smem:[#allocation23_spill]] %s3712_s4 }
   0x4   :  { %3732 = sst [smem:[#allocation24_spill]] %s3713_s5 }
   0x5   :  { %3733 = sst [smem:[#allocation25_spill]] %s3714_s6 }
   0x6   :  { %3734 = sst [smem:[#allocation26_spill]] %s3715_s7 }
   0x7   :  { %3735 = sst [smem:[#allocation27_spill]] %s3716_s8 }
   0x8   :  { %3736 = sst [smem:[#allocation28_spill]] %s3717_s9 }
   0x9   :  { %3737 = sst [smem:[#allocation29_spill]] %s3718_s10 }
   0xa   :  { %3738 = sst [smem:[#allocation30_spill]] %s3719_s11 }
   0xb   :  { %3739 = sst [smem:[#allocation31_spill]] %s3720_s12 }
   0xc   :  { %3740 = sst [smem:[#allocation32_spill]] %s3721_s13 }
   0xd   :  { %18 = vsyncpa [#allocation3], 0 }
   0xe   :  { %20 = vsyncpa [#allocation3 + $0x1], 0 }
   0xf   :  { %21 = vsyncpa [#allocation6], 0 }
  0x10   :  { %23 = vsyncpa [#allocation6 + $0x1], 0 }
  0x11   :  { %24 = vsyncpa [#allocation9], 0 }
  0x12   :  { %25 = vsyncpa [#allocation12], 0 }
  0x13   :  { %26 = vsyncpa [#allocation4], 0 }
  0x14   :  { %28 = vsyncpa [#allocation4 + $0x1], 0  ;;  %s3104_s25 = smov 0   ;;  %s3106_s26 = smov 0  }
  0x15   :  { %s3108_s27 = smov 0   ;;  %s3110_s28 = smov 0  }
  0x16   :  { %s3112_s29 = smov 0   ;;  %s3114_s30 = smov 0  }
  0x17 LB: > { %s3135_s14 = sadd.s32 4294967295, %s3012_s30   ;;  %p2256_p0 = scmp.ge.s32.totalorder %s3012_s30, 1  ;;  %s3012_s30 = sphi %s3114_s30, %s34_s30   ;;  %s3008_s29 = sphi %s3112_s29, %s3777_s29   ;;  %s3004_s28 = sphi %s3110_s28, %s3776_s28   ;;  %s3000_s27 = sphi %s3108_s27, %s3775_s27   ;;  %s2996_s26 = sphi %s3106_s26, %s3774_s26   ;;  %s2992_s25 = sphi %s3104_s25, %s3773_s25  }
  0x18   : > { %p3725_p1 = scmp.eq.s32.totalorder %s3135_s14, 0  ;;  %p379_p2 = scmp.lt.s32.totalorder %s3012_s30, 3 }
  0x19   : > { %s3014_s16 = smov [#allocation7]   ;;  %s3015_s19 = smov [#allocation8]  }
  0x1a   : > { %p3140_p3 = pnand %p2256_p0, %p379_p2  ;;  %s391_s17 = sshll.u32 %s3014_s16, 4  ;;  %s3144_s17 = int_to_ptr.vmem [resolvable:$true] %s391_s17 }
  0x1b   : > { %s404_s20 = sshll.u32 %s3015_s19, 4  ;;  %s3016_s21 = smov [#allocation11]   ;;  %s3155_s20 = int_to_ptr.vmem [resolvable:$true] %s404_s20 }
  0x1c   : > { %s3741_s15 = scalar_select %p3140_p3, 1, 0 }
  0x1d   : > { %p2554_p4 = pneg %p3140_p3  ;;  %s3157_s22 = sshll.u32 %s3016_s21, 4  ;;  %s431_s22 = int_to_ptr.vmem [resolvable:$true] %s3157_s22 }
  0x1e   : > { %s3743_s5 = sld [smem:[#allocation24_spill]] }
  0x1f   : > { %p3151_p6 = pnand %p2554_p4, %p3725_p1 }
  0x21   : > { %p3167_p8 = pneg %p3151_p6 }
  0x24   : > { %s2714_s16 = scalar_lea.hbm %s3743_s5, 256 }
  0x25   : > { %p2715_p7 = scmp.ne.s32.totalorder %s3743_s5, %s2714_s16  ;;  %p2721_p11 = scmp.lt.u32.totalorder %s2714_s16, %s3743_s5 }
  0x27   : > { %p2717_p9 = pnand %p3167_p8, %p2715_p7 }
  0x29   : > { %p2718_p10 = pneg %p2717_p9 }
  0x2b   : > { %p2723_p12 = pnand %p2721_p11, %p2718_p10 }
  0x2d   : > { %2726 = shalt.err (!%p2723_p12)
}
  0x2e   : > { %s2727_s10 = scalar_lea.vmem %s3144_s17, 256  ;;  %p2735_p4 = scmp.lt.s32.totalorder %s3144_s17, %s3144_s17 }
  0x2f   : > { %p2728_p13 = scmp.ne.s32.totalorder %s3144_s17, %s2727_s10  ;;  %p2736_p5 = scmp.lt.s32.totalorder %s2727_s10, %s2727_s10 }
  0x31   : > { %p2730_p0 = pnand %p2728_p13, %p3167_p8  ;;  %p2737_p7 = por %p2736_p5, %p2735_p4 }
  0x33   : > { %p2731_p2 = pneg %p2730_p0 }
  0x35   : > { %p2738_p9 = pnand %p2737_p7, %p2731_p2 }
  0x37   : > { %2741 = shalt.err (!%p2738_p9)
}
  0x38   : > { %s3017_s13 = smov 64   ;;  %s3018_s23 = smov 4  }
  0x39   : > { %2557 = dma.hbm_to_vmem [thread:$0]  (!%p3151_p6), %s3743_s5, 256, %s3144_s17, [#allocation6], %s3017_s13, %s3017_s13, %s3018_s23  }
  0x3a   : > { %s3745_s6 = sld [smem:[#allocation25_spill]] }
  0x40   : > { %s2742_s10 = scalar_lea.hbm %s3745_s6, 256 }
  0x41   : > { %p2743_p5 = scmp.ne.s32.totalorder %s3745_s6, %s2742_s10  ;;  %p2749_p12 = scmp.lt.u32.totalorder %s2742_s10, %s3745_s6 }
  0x43   : > { %p2745_p10 = pnand %p2743_p5, %p3167_p8 }
  0x45   : > { %p2746_p11 = pneg %p2745_p10 }
  0x47   : > { %p2751_p13 = pnand %p2749_p12, %p2746_p11 }
  0x49   : > { %2754 = shalt.err (!%p2751_p13)
}
  0x4a   : > { %s2755_s17 = scalar_lea.vmem %s3155_s20, 256  ;;  %p2763_p7 = scmp.lt.s32.totalorder %s3155_s20, %s3155_s20 }
  0x4b   : > { %p2756_p0 = scmp.ne.s32.totalorder %s3155_s20, %s2755_s17  ;;  %p2764_p9 = scmp.lt.s32.totalorder %s2755_s17, %s2755_s17 }
  0x4d   : > { %p2758_p2 = pnand %p2756_p0, %p3167_p8  ;;  %p2765_p5 = por %p2764_p9, %p2763_p7 }
  0x4f   : > { %p2759_p4 = pneg %p2758_p2 }
  0x51   : > { %p2766_p10 = pnand %p2765_p5, %p2759_p4 }
  0x53   : > { %2769 = shalt.err (!%p2766_p10)
}
  0x54   : > { %2560 = dma.hbm_to_vmem [thread:$0]  (!%p3151_p6), %s3745_s6, 256, %s3155_s20, [#allocation9], %s3017_s13, %s3017_s13, %s3018_s23  }
  0x55   : > { %s3746_s8 = sld [smem:[#allocation27_spill]] }
  0x5b   : > { %s2770_s24 = scalar_lea.hbm %s3746_s8, 256 }
  0x5c   : > { %p2771_p11 = scmp.ne.s32.totalorder %s3746_s8, %s2770_s24  ;;  %p2777_p0 = scmp.lt.u32.totalorder %s2770_s24, %s3746_s8 }
  0x5e   : > { %p2773_p12 = pnand %p2771_p11, %p3167_p8 }
  0x60   : > { %p2774_p13 = pneg %p2773_p12 }
  0x62   : > { %p2779_p2 = pnand %p2777_p0, %p2774_p13 }
  0x64   : > { %2782 = shalt.err (!%p2779_p2)
}
  0x65   : > { %s2783_s17 = scalar_lea.vmem %s431_s22, 256  ;;  %p2791_p5 = scmp.lt.s32.totalorder %s431_s22, %s431_s22 }
  0x66   : > { %p2784_p4 = scmp.ne.s32.totalorder %s431_s22, %s2783_s17  ;;  %p2792_p10 = scmp.lt.s32.totalorder %s2783_s17, %s2783_s17 }
  0x68   : > { %p2786_p7 = pnand %p2784_p4, %p3167_p8  ;;  %p2793_p1 = por %p2792_p10, %p2791_p5 }
  0x6a   : > { %p2787_p9 = pneg %p2786_p7 }
  0x6c   : > { %p2794_p3 = pnand %p2793_p1, %p2787_p9 }
  0x6e   : > { %2797 = shalt.err (!%p2794_p3)
}
  0x6f   : > { %2566 = dma.hbm_to_vmem [thread:$0]  (!%p3151_p6), %s3746_s8, 256, %s431_s22, [#allocation12], %s3017_s13, %s3017_s13, %s3018_s23  }
  0x70   : > { %s3019_s3 = smov [#allocation10]   ;;  %s3020_s9 = smov [#allocation13]  }
  0x71   : > { %s417_s4 = sshll.u32 %s3019_s3, 4  ;;  %s452_s24 = sshll.u32 %s3020_s9, 4  ;;  %s418_s4 = int_to_ptr.vmem [resolvable:$true] %s417_s4  ;;  %s453_s24 = int_to_ptr.vmem [resolvable:$true] %s452_s24 }
  0x72   : > { %s3747_s7 = sld [smem:[#allocation26_spill]] }
  0x78   : > { %s2798_s21 = scalar_lea.hbm %s3747_s7, 256 }
  0x79   : > { %p2799_p1 = scmp.ne.s32.totalorder %s3747_s7, %s2798_s21  ;;  %p2805_p12 = scmp.lt.u32.totalorder %s2798_s21, %s3747_s7 }
  0x7b   : > { %p2801_p3 = pnand %p2799_p1, %p3167_p8 }
  0x7d   : > { %p2802_p11 = pneg %p2801_p3 }
  0x7f   : > { %p2807_p13 = pnand %p2805_p12, %p2802_p11 }
  0x81   : > { %2810 = shalt.err (!%p2807_p13)
}
  0x82   : > { %s2811_s22 = scalar_lea.vmem %s418_s4, 256  ;;  %p2819_p7 = scmp.lt.s32.totalorder %s418_s4, %s418_s4 }
  0x83   : > { %p2812_p0 = scmp.ne.s32.totalorder %s418_s4, %s2811_s22  ;;  %p2820_p9 = scmp.lt.s32.totalorder %s2811_s22, %s2811_s22 }
  0x85   : > { %p2814_p2 = pnand %p2812_p0, %p3167_p8  ;;  %p2821_p5 = por %p2820_p9, %p2819_p7 }
  0x87   : > { %p2815_p4 = pneg %p2814_p2 }
  0x89   : > { %p2822_p10 = pnand %p2821_p5, %p2815_p4 }
  0x8b   : > { %2825 = shalt.err (!%p2822_p10)
}
  0x8c   : > { %2563 = dma.hbm_to_vmem [thread:$0]  (!%p3151_p6), %s3747_s7, 256, %s418_s4, [#allocation9], %s3017_s13, %s3017_s13, %s3018_s23  }
  0x8d   : > { %s3748_s12 = sld [smem:[#allocation31_spill]] }
  0x93   : > { %s2826_s16 = scalar_lea.hbm %s3748_s12, 256 }
  0x94   : > { %p2827_p1 = scmp.ne.s32.totalorder %s3748_s12, %s2826_s16  ;;  %p2833_p12 = scmp.lt.u32.totalorder %s2826_s16, %s3748_s12 }
  0x96   : > { %p2829_p3 = pnand %p2827_p1, %p3167_p8 }
  0x98   : > { %p2830_p11 = pneg %p2829_p3 }
  0x9a   : > { %p2835_p13 = pnand %p2833_p12, %p2830_p11 }
  0x9c   : > { %2838 = shalt.err (!%p2835_p13)
}
  0x9d   : > { %s2839_s20 = scalar_lea.vmem %s453_s24, 256  ;;  %p2847_p7 = scmp.lt.s32.totalorder %s453_s24, %s453_s24 }
  0x9e   : > { %p2840_p0 = scmp.ne.s32.totalorder %s453_s24, %s2839_s20  ;;  %p2848_p9 = scmp.lt.s32.totalorder %s2839_s20, %s2839_s20 }
  0xa0   : > { %p2842_p2 = pnand %p2840_p0, %p3167_p8  ;;  %p2849_p5 = por %p2848_p9, %p2847_p7 }
  0xa2   : > { %p2843_p4 = pneg %p2842_p2 }
  0xa4   : > { %p2850_p10 = pnand %p2849_p5, %p2843_p4 }
  0xa6   : > { %2853 = shalt.err (!%p2850_p10)
}
  0xa7   : > { %s3021_s13 = smov 128   ;;  %s3022_s11 = smov 8  }
  0xa8   : > { %2569 = dma.hbm_to_vmem [thread:$0]  (!%p3151_p6), %s3748_s12, 256, %s453_s24, [#allocation12], %s3021_s13, %s3021_s13, %s3022_s11  }
  0xa9   : > { %s2255_s22 = sadd.s32 4294967294, %s3012_s30   ;;  %s46_s5 = sadd.s32 1, %s3008_s29 }
  0xaa   : > { %s81_s0 = sadd.s32 1, %s3000_s27  ;;  %p48_p8 = scmp.ge.s32.totalorder %s46_s5, 2 }
  0xab   : > { %p88_p1 = scmp.ne.s32.totalorder %s3000_s27, %s2996_s26  ;;  %p89_p3 = scmp.eq.s32.totalorder %s3012_s30, 0 }
  0xac   : > { %p94_p11 = scmp.ne.s32.totalorder %s2996_s26, %s2992_s25  ;;  %s3779_s5 = smov (%p48_p8, %s46_s5), 0 }
  0xad   : > { %p3288_p12 = por %p89_p3, %p88_p1  ;;  %p3750_p13 = scmp.eq.s32.totalorder %s3135_s14, 0 }
  0xae   : > { %s78_s3 = ssub.s32 %s3008_s29, %s3779_s5  ;;  %p366_p0 = scmp.eq.s32.totalorder %s3135_s14, 1 }
  0xaf   : > { %p3294_p6 = por %p3750_p13, %p94_p11  ;;  %p79_p2 = scmp.eq.s32.totalorder %s78_s3, 0 }
  0xb0   : > { %p372_p4 = scmp.eq.s32.totalorder %s2255_s22, 1  ;;  %p3301_p7 = por %p366_p0, %p88_p1 }
  0xb1   : > { %s3751_s24 = scalar_select %p3294_p6, 1, 0 }
  0xb2   : > { %s3752_s9 = scalar_select %p3301_p7, 1, 0 }
  0xb3   : > { %p2586_p9 = scmp.lt.s32.totalorder %s3012_s30, 2  ;;  %p3309_p5 = por %p372_p4, %p94_p11 }
  0xb4   : > { %s3307_s16 = scalar_select %p79_p2, %s3000_s27, %s81_s0  }
  0xb5   : > { %s3753_s19 = scalar_select %p3309_p5, 1, 0 }
  0xb6   : > { %s476_s21 = sand.u32 1, %s3000_s27   ;;  %s2264_s17 = sshll.u32 %s3008_s29, 6 }
  0xb7   : > { %s3314_s10 = sshll.u32 %s476_s21, 2  ;;  %s3320_s11 = scalar_lea.hbm %s3709_s1, %s2264_s17 }
  0xb8   : > { %s480_s23 = scalar_lea.vmem [#allocation2], %s3314_s10  ;;  %p3327_p10 = pnand %p2586_p9, %p3288_p12 }
  0xb9   : > { %s487_s4 = sshll.u32 %s480_s23, 4  ;;  %s3334_s20 = scalar_lea.hbm %s3710_s2, %s2264_s17  ;;  %s3323_s4 = int_to_ptr.vmem [resolvable:$true] %s487_s4 }
  0xba   : > { %s494_s13 = sand.u32 1, %s3012_s30   ;;  %s477_s6 = scalar_lea.sflag [#allocation3], %s476_s21 }
  0xbb   : > { %s2854_s7 = scalar_lea.hbm %s3320_s11, 64  ;;  %p2856_p1 = pneg %p3327_p10 }
  0xbc   : > { %p2855_p8 = scmp.ne.s32.totalorder %s3320_s11, %s2854_s7  ;;  %s2859_s8 = scalar_lea.hbm %s3709_s1, 128 }
  0xbd   : > { %p2860_p12 = scmp.lt.u32.totalorder %s3320_s11, %s3709_s1  ;;  %p2861_p13 = scmp.lt.u32.totalorder %s2859_s8, %s2854_s7 }
  0xbe   : > { %p2857_p3 = pnand %p2856_p1, %p2855_p8  ;;  %p2863_p2 = scmp.lt.u32.totalorder %s2854_s7, %s3320_s11 }
  0xbf   : > { %p2862_p0 = por %p2861_p13, %p2860_p12 }
  0xc0   : > { %p2858_p11 = pneg %p2857_p3 }
  0xc1   : > { %p2864_p4 = por %p2863_p2, %p2862_p0 }
  0xc3   : > { %p2865_p9 = pnand %p2864_p4, %p2858_p11 }
  0xc5   : > { %2868 = shalt.err (!%p2865_p9)
}
  0xc6   : > { %s2869_s21 = scalar_lea.vmem %s3323_s4, 64  ;;  %s3023_s17 = smov [#allocation2]  }
  0xc7   : > { %p2870_p8 = scmp.ne.s32.totalorder %s3323_s4, %s2869_s21  ;;  %s2874_s3 = sshll.u32 %s3023_s17, 4  ;;  %s2875_s3 = int_to_ptr.vmem [resolvable:$false] %s2874_s3 }
  0xc8   : > { %s2876_s12 = scalar_lea.vmem %s2875_s3, 128  ;;  %p2877_p7 = scmp.lt.s32.totalorder %s3323_s4, %s2875_s3 }
  0xc9   : > { %p2872_p3 = pnand %p2870_p8, %p2856_p1  ;;  %p2878_p12 = scmp.lt.s32.totalorder %s2876_s12, %s2869_s21 }
  0xcb   : > { %p2873_p5 = pneg %p2872_p3  ;;  %p2879_p13 = por %p2878_p12, %p2877_p7 }
  0xcd   : > { %p2880_p0 = pnand %p2879_p13, %p2873_p5 }
  0xcf   : > { %2883 = shalt.err (!%p2880_p0)
}
  0xd0   : > { %2573 = dma.hbm_to_vmem [thread:$0]  (!%p3327_p10), %s3320_s11, 64, %s3323_s4, %s477_s6  }
  0xd1   : > { %s498_s7 = scalar_lea.vmem [#allocation5], %s3314_s10  ;;  %s495_s18 = scalar_lea.sflag [#allocation6], %s494_s13 }
  0xd2   : > { %s505_s8 = sshll.u32 %s498_s7, 4  ;;  %s2884_s23 = scalar_lea.hbm %s3334_s20, 64  ;;  %s506_s8 = int_to_ptr.vmem [resolvable:$true] %s505_s8 }
  0xd3   : > { %p2885_p7 = scmp.ne.s32.totalorder %s3334_s20, %s2884_s23  ;;  %s2889_s17 = scalar_lea.hbm %s3710_s2, 128 }
  0xd4   : > { %p2890_p2 = scmp.lt.u32.totalorder %s3334_s20, %s3710_s2  ;;  %p2891_p4 = scmp.lt.u32.totalorder %s2889_s17, %s2884_s23 }
  0xd5   : > { %p2887_p5 = pnand %p2885_p7, %p2856_p1  ;;  %p2893_p8 = scmp.lt.u32.totalorder %s2884_s23, %s3334_s20 }
  0xd6   : > { %p2892_p9 = por %p2891_p4, %p2890_p2 }
  0xd7   : > { %p2888_p11 = pneg %p2887_p5 }
  0xd8   : > { %p2894_p3 = por %p2893_p8, %p2892_p9 }
  0xda   : > { %p2895_p12 = pnand %p2894_p3, %p2888_p11 }
  0xdc   : > { %2898 = shalt.err (!%p2895_p12)
}
  0xdd   : > { %s2899_s6 = scalar_lea.vmem %s506_s8, 64  ;;  %s3024_s10 = smov [#allocation5]  }
  0xde   : > { %p2900_p13 = scmp.ne.s32.totalorder %s506_s8, %s2899_s6  ;;  %s2904_s11 = sshll.u32 %s3024_s10, 4  ;;  %s2905_s11 = int_to_ptr.vmem [resolvable:$false] %s2904_s11 }
  0xdf   : > { %s2906_s4 = scalar_lea.vmem %s2905_s11, 128  ;;  %p2907_p5 = scmp.lt.s32.totalorder %s506_s8, %s2905_s11 }
  0xe0   : > { %p2902_p0 = pnand %p2900_p13, %p2856_p1  ;;  %p2908_p6 = scmp.lt.s32.totalorder %s2906_s4, %s2899_s6 }
  0xe2   : > { %p2903_p7 = pneg %p2902_p0  ;;  %p2909_p2 = por %p2908_p6, %p2907_p5 }
  0xe4   : > { %p2910_p4 = pnand %p2909_p2, %p2903_p7 }
  0xe6   : > { %2913 = shalt.err (!%p2910_p4)
}
  0xe7   : > { %2576 = dma.hbm_to_vmem [thread:$0]  (!%p3327_p10), %s3334_s20, 64, %s506_s8, %s495_s18  }
  0xe8   : > { %p3755_p11 = scmp.ne.s32.totalorder %s3741_s15, 0 }
  0xe9   : > { %s3387_s13 = sand.u32 (!%p3755_p11), 1, %s2996_s26   ;;  %p3756_p1 = scmp.ne.s32.totalorder (!%p3755_p11), %s3751_s24, 0 }
  0xea   : > { %530 = sbr.rel (%p3755_p11) target bundleno = 4498 (0x1192), region = 72  ;;  %s2268_s7 = sshll.u32 (!%p3755_p11), %s3387_s13, 2 }
  0xeb   : > { %s533_s23 = scalar_lea.sflag (!%p3755_p11), [#allocation3], %s3387_s13  ;;  %s536_s0 = scalar_lea.vmem (!%p3755_p11), [#allocation2], %s2268_s7 }
  0xf1   : > { %2967 = dma.done.wait (%p3756_p1), %s533_s23, 64  }
  0xf2   : > { %2969 = vsyncadd (%p3756_p1), %s533_s23, 4294967232  ;;  %s541_s22 = sand.u32 1, %s3135_s14   ;;  %s3396_s15 = scalar_lea.vmem [#allocation5], %s2268_s7 }
  0xf3   : > { %s542_s20 = scalar_lea.sflag [#allocation6], %s541_s22 }
  0xf4   : > { %2971 = dma.done.wait (%p3756_p1), %s542_s20, 64  }
  0xf5   : > { %2973 = vsyncadd (%p3756_p1), %s542_s20, 4294967232  ;;  %p3757_p6 = scmp.eq.s32.totalorder %s3135_s14, 0 }
  0xf7   : > { %2975 = dma.done.wait (%p3757_p6), [#allocation6], 256   ;;  %p3758_p10 = pmov %p3757_p6 }
  0xf8   : > { %p3759_p9 = pmov %p3757_p6 }
  0xf9   : > { %2977 = vsyncadd (%p3758_p10), [#allocation6], 4294967040 }
  0xfa   : > { %2979 = dma.done.wait (%p3759_p9), [#allocation9], 512   ;;  %p3760_p8 = pmov %p3757_p6 }
  0xfb   : > { %p3761_p3 = pmov %p3757_p6 }
  0xfc   : > { %2981 = vsyncadd (%p3760_p8), [#allocation9], 4294966784 }
  0xfd   : > { %2983 = dma.done.wait (%p3761_p3), [#allocation12], 512   ;;  %p3762_p12 = pmov %p3761_p3 }
  0xfe   : > { %p630_p13 = scmp.lt.s32.totalorder %s3004_s28, 1  ;;  %v3025_v0 = vmov 0.0   ;;  %vm3026_vm0 = vmmov 0   ;;  %s3763_s21 = sld [smem:[#allocation21_spill]]  ;;  %v2658_v1 = vld [vmem:[#allocation7] sm:$0xff]   ;;  %vm727_vm1 = vcmask 64512   ;;  %v666_v8 = vlaneseq }
  0xff   : > { %2985 = vsyncadd (%p3762_p12), [#allocation12], 4294966784  ;;  %2380 = vmatprep.subr.bf16.mxu0 %v3025_v0  ;;  %2384 = vmatprep.mubr.msk.bf16.mxu0 %vm3026_vm0, %v3025_v0  ;;  %v2659_v2 = vld [vmem:[#allocation7 + $0x8] sm:$0xff]   ;;  %v649_v4 = vld [vmem:[%s536_s0] sm:$0xf]  ;;  %vm682_vm2 = vcmask 261120  }
 0x100   : > { %s631_s24 = scalar_select %p630_p13, %s3004_s28, 1  ;;  %2388 = vmatprep.subr.bf16.mxu1 %v3025_v0  ;;  %2390 = vmatprep.mubr.msk.bf16.mxu1 %vm3026_vm0, %v3025_v0  ;;  %v2286_v5 = vcombine.low %v649_v4, %v649_v4  ;;  %v732_v6 = vsel %vm727_vm1, %v649_v4, 0  ;;  %v3441_v9 = vshrl.u32 %v666_v8, 7  ;;  %v3444_v11 = vld [vmem:[#allocation13] sm:$0xff]  ;;  %v650_v53 = vld [vmem:[%s3396_s15] sm:$0xf] }
 0x101   : > { %2381 = vmatpush3.bf16.msra.mxu0 %v2658_v1  ;;  %2389 = vmatpush3.bf16.xpose.msra.mxu1 %v732_v6  ;;  %s3027_s3 = smov 120   ;;  %s3028_s12 = smov 112   ;;  %v2288_v54 = vcombine.low %v650_v53, %v650_v53  ;;  %vm789_vm3 = vcmask 1043456   ;;  %vm1183_vm4 = vcmask 130048   ;;  %vm1185_vm5 = vcmask 195584  }
 0x102   : > { %s3422_s8 = sshll.u32 %s631_s24, 3  ;;  %2382 = vmatprep.subr.bf16.mxu0 %v3025_v0  ;;  %839 = vrot.lane.b32.xlu0 %v2286_v5, %s3027_s3  ;;  %v668_v10 = vsub.s32 0, %v3441_v9  ;;  %s3029_s6 = smov 104   ;;  %v791_v55 = vsel %vm789_vm3, %v650_v53, 0  ;;  %vm1982_vm6 = vcmask 523264  }
 0x103   : > { %2400 = vmatprep.subr.bf16.mxu1 %v3025_v0  ;;  %952 = vrot.lane.b32.xlu1 %v2286_v5, %s3028_s12  ;;  %s3030_s10 = smov 8   ;;  %s3031_s11 = smov 16  }
 0x104   : > { %s636_s17 = scalar_lea.vmem %s3763_s21, %s3422_s8  ;;  %v669_v12 = vrot.slane %v3444_v11, %v668_v10  ;;  %s3032_s4 = smov 24  }
 0x105   : > { %v3428_v3 = vld [vmem:[%s636_s17] sm:$0xff]  ;;  %2383 = vmatpush3.bf16.msra.mxu0 %v2659_v2  ;;  %s3764_s0 = sld [smem:[#allocation22_spill]]  ;;  %s3765_s24 = sld [smem:[#allocation23_spill]] }
 0x106   : > { %v657_v7 = vpack.c.bf16 %v3428_v3, %v3428_v3  ;;  %2394 = vmatprep.subr.bf16.mxu0 %v3025_v0  ;;  %s3766_s21 = sld [smem:[#allocation28_spill]]  ;;  %p3770_p7 = scmp.ne.s32.totalorder %s3752_s9, 0 }
 0x108   : > { %2385 = vmatmul.mubr.msk.bf16.vlgmr.msra.gmra.mrb[0].mxu0 %vm682_vm2, %v657_v7 }
 0x109   : > { %2396 = vmatprep.mubr.msk.bf16.mxu0 %vm3026_vm0, %v3025_v0  ;;  %2395 = vmatpush3.bf16.msra.mxu0 %v791_v55 }
 0x10a   : > { %2406 = vmatprep.subr.bf16.mxu0 %v3025_v0 }
 0x10b   : > { %s641_s22 = scalar_lea.vmem %s3764_s0, %s3422_s8  ;;  %s646_s14 = scalar_lea.vmem %s3765_s24, %s3422_s8 }
 0x10c   : > { %s3768_s24 = sld [smem:[#allocation29_spill]]  ;;  %s2323_s8 = sshll.u32 %s3004_s28, 7 }
 0x10d   : > { %s3033_s28 = smov [#allocation14]  }
 0x10e   : > { %s2918_s23 = sshll.u32 %s3033_s28, 4  ;;  %s2919_s23 = int_to_ptr.vmem [resolvable:$false] %s2918_s23 }
 0x10f   : > { %s2920_s0 = scalar_lea.vmem %s2919_s23, 256 }
 0x174   : > { %v840_v16 = vpop.permute.xlu0 %839 }
 0x175   : > { %v845_v20 = vsel %vm727_vm1, %v840_v16, 0  ;;  %v953_v21 = vpop.permute.xlu1 %952 }
 0x176   : > { %v958_v22 = vsel %vm727_vm1, %v953_v21, 0 }
 0x1db   : > { %v720_v13 = vpop.f32.mrb[0].mxu0 }
 0x1dc   : > { %v721_v14 = vadd.f32 %v720_v13, %v669_v12  ;;  %v2386_v15 = vpop.f32.mrb[1].mxu0 }
 0x1dd   : > { %v723_v17 = vpop.f32.mrb[2].mxu0 }
 0x1de   : > { %v726_v18 = vpack.c.bf16 %v721_v14, %v721_v14  ;;  %v2387_v19 = vpop.f32.mrb[3].mxu0 }
 0x1e0   : > { %950 = vrot.lane.b32.xlu1 %v726_v18, %s3028_s12  ;;  %834 = vrot.lane.b32.xlu0 %v726_v18, %s3027_s3 }
 0x1e1   : > { %2391 = vmatmul.mubr.msk.bf16.vlgmr.msra.gmra.mrb[0].mxu1 %vm727_vm1, %v726_v18 }
 0x1e2   : > { %2401 = vmatpush3.bf16.xpose.msra.mxu1 %v845_v20  ;;  %2402 = vmatprep.mubr.msk.bf16.mxu1 %vm3026_vm0, %v3025_v0 }
 0x1e3   : > { %2412 = vmatprep.subr.bf16.mxu1 %v3025_v0 }
 0x1e4   : > { %1060 = vrot.lane.b32.xlu1 %v726_v18, %s3029_s6  ;;  %1062 = vrot.lane.b32.xlu0 %v2286_v5, %s3029_s6 }
 0x252   : > { %v835_v23 = vpop.permute.xlu0 %834  ;;  %v951_v26 = vpop.permute.xlu1 %950 }
 0x253   : > { %2403 = vmatmul.mubr.msk.bf16.vlgmr.msra.gmra.mrb[4].mxu1 %vm727_vm1, %v835_v23 }
 0x254   : > { %2413 = vmatpush3.bf16.xpose.msra.mxu1 %v958_v22  ;;  %2414 = vmatprep.mubr.msk.bf16.mxu1 %vm3026_vm0, %v3025_v0 }
 0x255   : > { %2424 = vmatprep.subr.bf16.mxu1 %v3025_v0 }
 0x256   : > { %v1063_v24 = vpop.permute.xlu0 %1062  ;;  %v1061_v27 = vpop.permute.xlu1 %1060 }
 0x257   : > { %v1068_v25 = vsel %vm727_vm1, %v1063_v24, 0 }
 0x25b   : > { %2415 = vmatmul.mubr.msk.bf16.vlgmr.msra.gmra.mrb[8].mxu1 %vm727_vm1, %v951_v26 }
 0x25c   : > { %2425 = vmatpush3.bf16.xpose.msra.mxu1 %v1068_v25  ;;  %2426 = vmatprep.mubr.msk.bf16.mxu1 %vm3026_vm0, %v3025_v0 }
 0x25d   : > { %2436 = vmatprep.subr.bf16.mxu1 %v3025_v0 }
 0x263   : > { %2427 = vmatmul.mubr.msk.bf16.vlgmr.msra.gmra.mrb[12].mxu1 %vm727_vm1, %v1061_v27 }
 0x264   : > { %2440 = vmatprep.mubr.msk.bf16.mxu1 %vm3026_vm0, %v3025_v0 }
 0x2b4   : > { %v768_v28 = vpop.f32.mrb[0].mxu1 }
 0x2b5   : > { %v2392_v29 = vpop.f32.mrb[1].mxu1  ;;  %v774_v30 = vsel %vm727_vm1, %v768_v28, -inf }
 0x2b6   : > { %775 = vmax.xlane.f32.xlu0 %v774_v30  ;;  %v771_v31 = vpop.f32.mrb[2].mxu1 }
 0x2b7   : > { %v2393_v32 = vpop.f32.mrb[3].mxu1 }
 0x326   : > { %v881_v33 = vpop.f32.mrb[4].mxu1 }
 0x327   : > { %v2404_v34 = vpop.f32.mrb[5].mxu1  ;;  %v887_v35 = vsel %vm727_vm1, %v881_v33, -inf }
 0x328   : > { %888 = vmax.xlane.f32.xlu1 %v887_v35  ;;  %v884_v36 = vpop.f32.mrb[6].mxu1 }
 0x329   : > { %v2405_v37 = vpop.f32.mrb[7].mxu1 }
 0x32e   : > { %v994_v38 = vpop.f32.mrb[8].mxu1 }
 0x32f   : > { %v2416_v39 = vpop.f32.mrb[9].mxu1  ;;  %v1000_v40 = vsel %vm727_vm1, %v994_v38, -inf }
 0x330   : > { %1001 = vmax.xlane.f32.xlu0 %v1000_v40  ;;  %v997_v41 = vpop.f32.mrb[10].mxu1 }
 0x331   : > { %v2417_v42 = vpop.f32.mrb[11].mxu1 }
 0x336   : > { %v1104_v43 = vpop.f32.mrb[12].mxu1 }
 0x337   : > { %v2428_v44 = vpop.f32.mrb[13].mxu1  ;;  %v1110_v45 = vsel %vm727_vm1, %v1104_v43, -inf }
 0x338   : > { %1111 = vmax.xlane.f32.xlu0 %v1110_v45  ;;  %v1107_v46 = vpop.f32.mrb[14].mxu1 }
 0x339   : > { %v2429_v47 = vpop.f32.mrb[15].mxu1 }
 0x343   : > { %v776_v48 = vpop.xlane.xlu0 %775 }
 0x344   : > { %v777_v49 = vsub.f32 %v768_v28, %v776_v48 }
 0x346   : > { %v778_v50 = vmul.f32 1.442695, %v777_v49 }
 0x348   : > { %2676 = vpow2.f32 %v778_v50 }
 0x352   : > { %v2677_v51 = vpop.eup %2676 }
 0x353   : > { %v780_v52 = vsel %vm727_vm1, %v2677_v51, 0.0 }
 0x354   : > { %781 = vadd.xlane.f32.xlu1 %v780_v52 }
 0x365   : > { %902 = vrot.lane.b32.xlu1 %v2288_v54, %s3027_s3 }
 0x3b5   : > { %v889_v56 = vpop.xlane.xlu1 %888 }
 0x3b6   : > { %v890_v57 = vsub.f32 %v881_v33, %v889_v56 }
 0x3b8   : > { %v891_v58 = vmul.f32 1.442695, %v890_v57 }
 0x3ba   : > { %2678 = vpow2.f32 %v891_v58 }
 0x3bd   : > { %v1002_v59 = vpop.xlane.xlu0 %1001 }
 0x3be   : > { %v1003_v60 = vsub.f32 %v994_v38, %v1002_v59  ;;  %v2662_v38 = vld [vmem:[#allocation8] sm:$0xff]   ;;  %v1190_v59 = vsub.s32 1, %v3441_v9 }
 0x3bf   : > { %2437 = vmatpush3.bf16.msra.mxu1 %v2662_v38 }
 0x3c0   : > { %v1004_v61 = vmul.f32 1.442695, %v1003_v60  ;;  %2438 = vmatprep.subr.bf16.mxu1 %v3025_v0  ;;  %v1191_v60 = vrot.slane %v3444_v11, %v1190_v59 }
 0x3c2   : > { %2680 = vpow2.f32 %v1004_v61 }
 0x3c4   : > { %v2679_v62 = vpop.eup %2678 }
 0x3c5   : > { %v1112_v63 = vpop.xlane.xlu0 %1111  ;;  %v893_v1 = vsel %vm727_vm1, %v2679_v62, 0.0 }
 0x3c6   : > { %v1113_v2 = vsub.f32 %v1104_v43, %v1112_v63  ;;  %894 = vadd.xlane.f32.xlu0 %v893_v1  ;;  %v2663_v43 = vld [vmem:[#allocation8 + $0x8] sm:$0xff]  }
 0x3c7   : > { %2439 = vmatpush3.bf16.msra.mxu1 %v2663_v43 }
 0x3c8   : > { %v1114_v4 = vmul.f32 1.442695, %v1113_v2  ;;  %2452 = vmatprep.subr.bf16.mxu1 %v3025_v0 }
 0x3ca   : > { %2682 = vpow2.f32 %v1114_v4 }
 0x3cc   : > { %v2681_v5 = vpop.eup %2680 }
 0x3cd   : > { %v1006_v6 = vsel %vm727_vm1, %v2681_v5, 0.0 }
 0x3ce   : > { %1007 = vadd.xlane.f32.xlu1 %v1006_v6 }
 0x3d4   : > { %v2683_v7 = vpop.eup %2682 }
 0x3d5   : > { %v1116_v8 = vsel %vm727_vm1, %v2683_v7, 0.0 }
 0x3d6   : > { %1117 = vadd.xlane.f32.xlu0 %v1116_v8 }
 0x3df   : > { %1122 = vrot.lane.b32.xlu1 %v2288_v54, %s3029_s6 }
 0x3e1   : > { %v782_v12 = vpop.xlane.xlu1 %781 }
 0x3e2   : > { %2684 = vrcp.f32 %v782_v12 }
 0x3e5   : > { %v903_v14 = vpop.permute.xlu1 %902 }
 0x3e6   : > { %v908_v17 = vsel %vm789_vm3, %v903_v14, 0  ;;  %v2664_v14 = vld [vmem:[#allocation10] sm:$0xff]  }
 0x3ec   : > { %v2685_v13 = vpop.eup %2684  ;;  %1012 = vrot.lane.b32.xlu0 %v2288_v54, %s3028_s12 }
 0x3ed   : > { %v784_v15 = vmul.f32 %v2685_v13, %v2677_v51 }
 0x3ef   : > { %v785_v16 = vpack.c.bf16 %v784_v15, %v784_v15  ;;  %v2665_v15 = vld [vmem:[#allocation10 + $0x8] sm:$0xff]  }
 0x3f1   : > { %2397 = vmatmul.mubr.msk.bf16.vlgmr.msra.gmra.mrb[4].mxu0 %vm727_vm1, %v785_v16 }
 0x3f2   : > { %2407 = vmatpush3.bf16.msra.mxu0 %v908_v17  ;;  %2408 = vmatprep.mubr.msk.bf16.mxu0 %vm3026_vm0, %v3025_v0 }
 0x3f3   : > { %2418 = vmatprep.subr.bf16.mxu0 %v3025_v0 }
 0x453   : > { %v895_v18 = vpop.xlane.xlu0 %894 }
 0x454   : > { %2686 = vrcp.f32 %v895_v18 }
 0x45b   : > { %v1008_v19 = vpop.xlane.xlu1 %1007 }
 0x45c   : > { %2688 = vrcp.f32 %v1008_v19 }
 0x45e   : > { %v2687_v20 = vpop.eup %2686 }
 0x45f   : > { %v897_v21 = vmul.f32 %v2687_v20, %v2679_v62  ;;  %v1123_v27 = vpop.permute.xlu1 %1122  ;;  %v1264_v20 = vsub.s32 2, %v3441_v9 }
 0x460   : > { %v1128_v30 = vsel %vm789_vm3, %v1123_v27, 0 }
 0x461   : > { %v898_v22 = vpack.c.bf16 %v897_v21, %v897_v21  ;;  %v1269_v21 = vsub.s32 3, %v3441_v9 }
 0x463   : > { %2409 = vmatmul.mubr.msk.bf16.vlgmr.msra.gmra.mrb[8].mxu0 %vm727_vm1, %v898_v22  ;;  %v1118_v23 = vpop.xlane.xlu0 %1117  ;;  %v1265_v22 = vrot.slane %v3444_v11, %v1264_v20 }
 0x464   : > { %2690 = vrcp.f32 %v1118_v23  ;;  %2420 = vmatprep.mubr.msk.bf16.mxu0 %vm3026_vm0, %v3025_v0 }
 0x466   : > { %v2689_v24 = vpop.eup %2688 }
 0x467   : > { %v1010_v25 = vmul.f32 %v2689_v24, %v2681_v5  ;;  %v1013_v26 = vpop.permute.xlu0 %1012 }
 0x468   : > { %v1018_v28 = vsel %vm789_vm3, %v1013_v26, 0 }
 0x469   : > { %2419 = vmatpush3.bf16.msra.mxu0 %v1018_v28  ;;  %v1011_v29 = vpack.c.bf16 %v1010_v25, %v1010_v25  ;;  %v1270_v25 = vrot.slane %v3444_v11, %v1269_v21 }
 0x46a   : > { %2430 = vmatprep.subr.bf16.mxu0 %v3025_v0 }
 0x46c   : > { %2421 = vmatmul.mubr.msk.bf16.vlgmr.msra.gmra.mrb[12].mxu0 %vm727_vm1, %v1011_v29  ;;  %v1283_v29 = vsub.s32 4, %v3441_v9 }
 0x46d   : > { %2431 = vmatpush3.bf16.msra.mxu0 %v1128_v30  ;;  %2432 = vmatprep.mubr.msk.bf16.mxu0 %vm3026_vm0, %v3025_v0 }
 0x46e   : > { %v2691_v31 = vpop.eup %2690  ;;  %2444 = vmatprep.subr.bf16.mxu0 %v3025_v0  ;;  %v1284_v30 = vrot.slane %v3444_v11, %v1283_v29 }
 0x46f   : > { %v1120_v32 = vmul.f32 %v2691_v31, %v2683_v7 }
 0x471   : > { %v1121_v33 = vpack.c.bf16 %v1120_v32, %v1120_v32 }
 0x474   : > { %2433 = vmatmul.mubr.msk.bf16.vlgmr.msra.gmra.mrb[16].mxu0 %vm727_vm1, %v1121_v33 }
 0x475   : > { %2448 = vmatprep.mubr.msk.bf16.mxu0 %vm3026_vm0, %v3025_v0  ;;  %2445 = vmatpush3.bf16.msra.mxu0 %v2664_v14 }
 0x476   : > { %2446 = vmatprep.subr.bf16.mxu0 %v3025_v0 }
 0x479   : > { %2447 = vmatpush3.bf16.msra.mxu0 %v2665_v15 }
 0x47a   : > { %2458 = vmatprep.subr.bf16.mxu0 %v3025_v0 }
 0x4c4   : > { %v827_v34 = vpop.f32.mrb[4].mxu0 }
 0x4c5   : > { %v2398_v35 = vpop.f32.mrb[5].mxu0 }
 0x4c6   : > { %v830_v36 = vpop.f32.mrb[6].mxu0 }
 0x4c7   : > { %v2399_v37 = vpop.f32.mrb[7].mxu0 }
 0x536   : > { %v944_v39 = vpop.f32.mrb[8].mxu0 }
 0x537   : > { %1171 = vrot.lane.b32.xlu1 %v944_v39, %s3030_s10  ;;  %v2410_v40 = vpop.f32.mrb[9].mxu0 }
 0x538   : > { %v947_v41 = vpop.f32.mrb[10].mxu0 }
 0x539   : > { %v2411_v42 = vpop.f32.mrb[11].mxu0 }
 0x53f   : > { %v1054_v44 = vpop.f32.mrb[12].mxu0 }
 0x540   : > { %1175 = vrot.lane.b32.xlu0 %v1054_v44, %s3031_s11  ;;  %v2422_v45 = vpop.f32.mrb[13].mxu0 }
 0x541   : > { %v1057_v46 = vpop.f32.mrb[14].mxu0 }
 0x542   : > { %v2423_v47 = vpop.f32.mrb[15].mxu0 }
 0x547   : > { %v1164_v48 = vpop.f32.mrb[16].mxu0 }
 0x548   : > { %1179 = vrot.lane.b32.xlu1 %v1164_v48, %s3032_s4  ;;  %v2434_v49 = vpop.f32.mrb[17].mxu0 }
 0x549   : > { %v1167_v50 = vpop.f32.mrb[18].mxu0 }
 0x54a   : > { %v2435_v51 = vpop.f32.mrb[19].mxu0 }
 0x54b   : > { %v2667_v51 = vld [vmem:[%s646_s14] sm:$0xff]   ;;  %s2275_s14 = sshll.u32 %s3387_s13, 3 }
 0x54c   : > { %s629_s18 = scalar_lea.vmem [#allocation14], %s2275_s14 }
 0x54d   : > { %s2066_s17 = sshll.u32 %s629_s18, 4  ;;  %s3660_s17 = int_to_ptr.vmem [resolvable:$true] %s2066_s17 }
 0x54e   : > { %s2914_s7 = scalar_lea.vmem %s3660_s17, 128  ;;  %p2921_p4 = scmp.lt.s32.totalorder %s3660_s17, %s2919_s23 }
 0x54f   : > { %p2915_p0 = scmp.ne.s32.totalorder %s3660_s17, %s2914_s7  ;;  %p2922_p11 = scmp.lt.s32.totalorder %s2920_s0, %s2914_s7 }
 0x551   : > { %p2916_p5 = pnand %p2915_p0, %p3770_p7  ;;  %p2923_p1 = por %p2922_p11, %p2921_p4 }
 0x553   : > { %p2917_p2 = pneg %p2916_p5 }
 0x555   : > { %p2924_p6 = pnand %p2923_p1, %p2917_p2 }
 0x5a9   : > { %v1172_v52 = vpop.permute.xlu1 %1171 }
 0x5aa   : > { %v1182_v54 = vsel %vm727_vm1, %v827_v34, %v1172_v52 }
 0x5b2   : > { %v1176_v53 = vpop.permute.xlu0 %1175 }
 0x5b3   : > { %v1184_v55 = vsel %vm1183_vm4, %v1182_v54, %v1176_v53 }
 0x5ba   : > { %v1180_v56 = vpop.permute.xlu1 %1179 }
 0x5bb   : > { %v1186_v57 = vsel %vm1185_vm5, %v1184_v55, %v1180_v56 }
 0x5bc   : > { %v1187_v58 = vpack.c.bf16 %v1186_v57, %v1186_v57 }
 0x5be   : > { %2441 = vmatmul.mubr.msk.bf16.vlgmr.msra.gmra.mrb[16].mxu1 %vm682_vm2, %v1187_v58 }
 0x5bf   : > { %2454 = vmatprep.mubr.msk.bf16.mxu1 %vm3026_vm0, %v3025_v0 }
 0x691   : > { %v1241_v61 = vpop.f32.mrb[16].mxu1 }
 0x692   : > { %v1242_v62 = vadd.f32 %v1241_v61, %v1191_v60  ;;  %v2442_v63 = vpop.f32.mrb[17].mxu1 }
 0x693   : > { %v1244_v1 = vpop.f32.mrb[18].mxu1 }
 0x694   : > { %v2443_v2 = vpop.f32.mrb[19].mxu1  ;;  %v1247_v4 = vadd.f32 %v1242_v62, %v3428_v3  ;;  %v2666_v3 = vld [vmem:[%s641_s22] sm:$0xff]  }
 0x695   : > { %v1350_v16 = vsel %vm727_vm1, %v2666_v3, 0 }
 0x696   : > { %v1248_v5 = vsel %vm682_vm2, %v1247_v4, 0.0  ;;  %2453 = vmatpush3.bf16.xpose.msra.mxu1 %v1350_v16 }
 0x697   : > { %1249 = vadd.xlane.f32.xlu0 %v1248_v5  ;;  %2464 = vmatprep.subr.bf16.mxu1 %v3025_v0 }
 0x6ad   : > { %1456 = vrot.lane.b32.xlu0 %v2666_v3, %s3027_s3 }
 0x6b1   : > { %1564 = vrot.lane.b32.xlu0 %v2666_v3, %s3028_s12 }
 0x6b5   : > { %1672 = vrot.lane.b32.xlu0 %v2666_v3, %s3029_s6 }
 0x724   : > { %v1250_v6 = vpop.xlane.xlu0 %1249 }
 0x725   : > { %v1252_v7 = vmul.f32 0.03125, %v1250_v6 }
 0x727   : > { %v1253_v8 = vsub.f32 %v1247_v4, %v1252_v7 }
 0x728   : > { %v1457_v32 = vpop.permute.xlu0 %1456 }
 0x729   : > { %v1254_v12 = vmul.f32 %v1253_v8, %v1253_v8  ;;  %v1462_v38 = vsel %vm727_vm1, %v1457_v32, 0 }
 0x72b   : > { %v1255_v13 = vsel %vm682_vm2, %v1254_v12, 0.0 }
 0x72c   : > { %1256 = vadd.xlane.f32.xlu1 %v1255_v13  ;;  %v1565_v39 = vpop.permute.xlu0 %1564 }
 0x72d   : > { %v1570_v40 = vsel %vm727_vm1, %v1565_v39, 0 }
 0x730   : > { %v1673_v42 = vpop.permute.xlu0 %1672 }
 0x731   : > { %v1678_v43 = vsel %vm727_vm1, %v1673_v42, 0 }
 0x7b9   : > { %v1257_v17 = vpop.xlane.xlu1 %1256 }
 0x7ba   : > { %v1258_v18 = vmul.f32 0.03125, %v1257_v17 }
 0x7bc   : > { %v1259_v19 = vadd.f32 1e-05, %v1258_v18 }
 0x7be   : > { %2692 = vrsqrt.f32 %v1259_v19 }
 0x7c8   : > { %v2693_v23 = vpop.eup %2692 }
 0x7c9   : > { %v1261_v24 = vmul.f32 %v2693_v23, %v1253_v8 }
 0x7cb   : > { %v1266_v26 = vmul.f32 %v1265_v22, %v1261_v24 }
 0x7cd   : > { %v3538_v27 = vadd.f32 %v1270_v25, %v1266_v26 }
 0x7cf   : > { %v1272_v28 = vpack.c.bf16 %v3538_v27, %v3538_v27 }
 0x7d1   : > { %2449 = vmatmul.mubr.msk.bf16.vlgmr.msra.gmra.mrb[20].mxu0 %vm682_vm2, %v1272_v28 }
 0x7d2   : > { %2460 = vmatprep.mubr.msk.bf16.mxu0 %vm3026_vm0, %v3025_v0  ;;  %2459 = vmatpush3.bf16.msra.mxu0 %v2667_v51 }
 0x7d3   : > { %2470 = vmatprep.subr.bf16.mxu0 %v3025_v0 }
 0x8a4   : > { %v1334_v31 = vpop.f32.mrb[20].mxu0 }
 0x8a5   : > { %v1335_v33 = vadd.f32 %v1334_v31, %v1284_v30  ;;  %v2450_v34 = vpop.f32.mrb[21].mxu0 }
 0x8a6   : > { %v1337_v35 = vpop.f32.mrb[22].mxu0 }
 0x8a7   : > { %v1340_v36 = vpack.c.bf16 %v1335_v33, %v1335_v33  ;;  %v2451_v37 = vpop.f32.mrb[23].mxu0 }
 0x8a9   : > { %1454 = vrot.lane.b32.xlu1 %v1340_v36, %s3027_s3  ;;  %2455 = vmatmul.mubr.msk.bf16.vlgmr.msra.gmra.mrb[20].mxu1 %vm727_vm1, %v1340_v36 }
 0x8aa   : > { %2465 = vmatpush3.bf16.xpose.msra.mxu1 %v1462_v38  ;;  %2466 = vmatprep.mubr.msk.bf16.mxu1 %vm3026_vm0, %v3025_v0 }
 0x8ab   : > { %2476 = vmatprep.subr.bf16.mxu1 %v3025_v0 }
 0x8ad   : > { %1562 = vrot.lane.b32.xlu1 %v1340_v36, %s3028_s12 }
 0x8b1   : > { %1670 = vrot.lane.b32.xlu1 %v1340_v36, %s3029_s6 }
 0x91b   : > { %v1455_v41 = vpop.permute.xlu1 %1454 }
 0x91c   : > { %2467 = vmatmul.mubr.msk.bf16.vlgmr.msra.gmra.mrb[24].mxu1 %vm727_vm1, %v1455_v41 }
 0x91d   : > { %2477 = vmatpush3.bf16.xpose.msra.mxu1 %v1570_v40  ;;  %2478 = vmatprep.mubr.msk.bf16.mxu1 %vm3026_vm0, %v3025_v0 }
 0x91e   : > { %2488 = vmatprep.subr.bf16.mxu1 %v3025_v0 }
 0x91f   : > { %v1563_v44 = vpop.permute.xlu1 %1562 }
 0x923   : > { %v1671_v45 = vpop.permute.xlu1 %1670 }
 0x924   : > { %2479 = vmatmul.mubr.msk.bf16.vlgmr.msra.gmra.mrb[28].mxu1 %vm727_vm1, %v1563_v44 }
 0x925   : > { %2489 = vmatpush3.bf16.xpose.msra.mxu1 %v1678_v43  ;;  %2490 = vmatprep.mubr.msk.bf16.mxu1 %vm3026_vm0, %v3025_v0 }
 0x926   : > { %2500 = vmatprep.subr.bf16.mxu1 %v3025_v0 }
 0x92c   : > { %2491 = vmatmul.mubr.msk.bf16.vlgmr.msra.gmra.mrb[32].mxu1 %vm727_vm1, %v1671_v45 }
 0x92d   : > { %2504 = vmatprep.mubr.msk.bf16.mxu1 %vm3026_vm0, %v3025_v0 }
 0x97c   : > { %v1386_v46 = vpop.f32.mrb[20].mxu1 }
 0x97d   : > { %v2456_v47 = vpop.f32.mrb[21].mxu1  ;;  %v1392_v48 = vsel %vm1183_vm4, %v1386_v46, -inf }
 0x97e   : > { %1393 = vmax.xlane.f32.xlu0 %v1392_v48  ;;  %v1389_v49 = vpop.f32.mrb[22].mxu1 }
 0x97f   : > { %v2457_v50 = vpop.f32.mrb[23].mxu1 }
 0x9ef   : > { %v1498_v52 = vpop.f32.mrb[24].mxu1 }
 0x9f0   : > { %v2468_v53 = vpop.f32.mrb[25].mxu1  ;;  %v1504_v54 = vsel %vm1183_vm4, %v1498_v52, -inf }
 0x9f1   : > { %1505 = vmax.xlane.f32.xlu1 %v1504_v54  ;;  %v1501_v55 = vpop.f32.mrb[26].mxu1  ;;  %v2668_v53 = vld [vmem:[#allocation11] sm:$0xff]  }
 0x9f2   : > { %v2469_v56 = vpop.f32.mrb[27].mxu1  ;;  %2501 = vmatpush3.bf16.msra.mxu1 %v2668_v53 }
 0x9f3   : > { %2502 = vmatprep.subr.bf16.mxu1 %v3025_v0 }
 0x9f7   : > { %v1606_v57 = vpop.f32.mrb[28].mxu1 }
 0x9f8   : > { %v2480_v58 = vpop.f32.mrb[29].mxu1  ;;  %v1612_v60 = vsel %vm1183_vm4, %v1606_v57, -inf }
 0x9f9   : > { %1613 = vmax.xlane.f32.xlu0 %v1612_v60  ;;  %v1609_v61 = vpop.f32.mrb[30].mxu1  ;;  %v2669_v58 = vld [vmem:[#allocation11 + $0x8] sm:$0xff]  }
 0x9fa   : > { %v2481_v62 = vpop.f32.mrb[31].mxu1  ;;  %2503 = vmatpush3.bf16.msra.mxu1 %v2669_v58 }
 0x9fb   : > { %2516 = vmatprep.subr.bf16.mxu1 %v3025_v0 }
 0x9ff   : > { %v1714_v63 = vpop.f32.mrb[32].mxu1 }
 0xa00   : > { %v2492_v1 = vpop.f32.mrb[33].mxu1  ;;  %v1720_v2 = vsel %vm1183_vm4, %v1714_v63, -inf }
 0xa01   : > { %1721 = vmax.xlane.f32.xlu0 %v1720_v2  ;;  %v1717_v4 = vpop.f32.mrb[34].mxu1 }
 0xa02   : > { %v2493_v5 = vpop.f32.mrb[35].mxu1 }
 0xa0b   : > { %v1394_v6 = vpop.xlane.xlu0 %1393 }
 0xa0c   : > { %v1395_v7 = vsub.f32 %v1386_v46, %v1394_v6 }
 0xa0e   : > { %v1396_v8 = vmul.f32 1.442695, %v1395_v7 }
 0xa10   : > { %2694 = vpow2.f32 %v1396_v8 }
 0xa1a   : > { %v2695_v12 = vpop.eup %2694 }
 0xa1b   : > { %v1398_v13 = vsel %vm1183_vm4, %v2695_v12, 0.0 }
 0xa1c   : > { %1399 = vadd.xlane.f32.xlu1 %v1398_v13 }
 0xa2d   : > { %1516 = vrot.lane.b32.xlu1 %v2667_v51, %s3027_s3 }
 0xa7e   : > { %v1506_v14 = vpop.xlane.xlu1 %1505 }
 0xa7f   : > { %v1507_v15 = vsub.f32 %v1498_v52, %v1506_v14 }
 0xa81   : > { %v1508_v3 = vmul.f32 1.442695, %v1507_v15 }
 0xa83   : > { %2696 = vpow2.f32 %v1508_v3  ;;  %v1796_v3 = vsub.s32 5, %v3441_v9 }
 0xa86   : > { %v1614_v16 = vpop.xlane.xlu0 %1613 }
 0xa87   : > { %v1615_v17 = vsub.f32 %v1606_v57, %v1614_v16  ;;  %v1797_v16 = vrot.slane %v3444_v11, %v1796_v3 }
 0xa89   : > { %v1616_v18 = vmul.f32 1.442695, %v1615_v17 }
 0xa8b   : > { %2698 = vpow2.f32 %v1616_v18 }
 0xa8d   : > { %v2697_v19 = vpop.eup %2696 }
 0xa8e   : > { %v1722_v21 = vpop.xlane.xlu0 %1721  ;;  %v1510_v22 = vsel %vm1183_vm4, %v2697_v19, 0.0 }
 0xa8f   : > { %v1723_v23 = vsub.f32 %v1714_v63, %v1722_v21  ;;  %1511 = vadd.xlane.f32.xlu0 %v1510_v22 }
 0xa91   : > { %v1724_v24 = vmul.f32 1.442695, %v1723_v23 }
 0xa93   : > { %2700 = vpow2.f32 %v1724_v24 }
 0xa95   : > { %v2699_v25 = vpop.eup %2698 }
 0xa96   : > { %v1618_v26 = vsel %vm1183_vm4, %v2699_v25, 0.0 }
 0xa97   : > { %1619 = vadd.xlane.f32.xlu1 %v1618_v26 }
 0xa9d   : > { %v2701_v28 = vpop.eup %2700 }
 0xa9e   : > { %v1726_v29 = vsel %vm1183_vm4, %v2701_v28, 0.0 }
 0xa9f   : > { %1727 = vadd.xlane.f32.xlu0 %v1726_v29 }
 0xaa8   : > { %1732 = vrot.lane.b32.xlu1 %v2667_v51, %s3029_s6  ;;  %s3769_s6 = sld [smem:[#allocation32_spill]] }
 0xaa9   : > { %v1400_v30 = vpop.xlane.xlu1 %1399 }
 0xaaa   : > { %2702 = vrcp.f32 %v1400_v30 }
 0xaad   : > { %v1517_v34 = vpop.permute.xlu1 %1516 }
 0xab4   : > { %v2703_v31 = vpop.eup %2702 }
 0xab5   : > { %v1402_v32 = vmul.f32 %v2703_v31, %v2695_v12  ;;  %1624 = vrot.lane.b32.xlu0 %v2667_v51, %s3028_s12  ;;  %v2670_v31 = vld [vmem:[%s3766_s21] sm:$0xff]  }
 0xab7   : > { %v1403_v33 = vpack.c.bf16 %v1402_v32, %v1402_v32  ;;  %v2671_v32 = vld [vmem:[%s3766_s21 + $0x8] sm:$0xff]  }
 0xab9   : > { %2461 = vmatmul.mubr.msk.bf16.vlgmr.msra.gmra.mrb[24].mxu0 %vm1183_vm4, %v1403_v33 }
 0xaba   : > { %2471 = vmatpush3.bf16.msra.mxu0 %v1517_v34  ;;  %2472 = vmatprep.mubr.msk.bf16.mxu0 %vm3026_vm0, %v3025_v0 }
 0xabb   : > { %2482 = vmatprep.subr.bf16.mxu0 %v3025_v0 }
 0xb1c   : > { %v1512_v35 = vpop.xlane.xlu0 %1511 }
 0xb1d   : > { %2704 = vrcp.f32 %v1512_v35 }
 0xb24   : > { %v1620_v36 = vpop.xlane.xlu1 %1619 }
 0xb25   : > { %2706 = vrcp.f32 %v1620_v36 }
 0xb27   : > { %v2705_v37 = vpop.eup %2704 }
 0xb28   : > { %v1514_v38 = vmul.f32 %v2705_v37, %v2697_v19  ;;  %v1733_v45 = vpop.permute.xlu1 %1732  ;;  %v1869_v37 = vsub.s32 6, %v3441_v9 }
 0xb2a   : > { %v1515_v39 = vpack.c.bf16 %v1514_v38, %v1514_v38  ;;  %v1874_v38 = vsub.s32 7, %v3441_v9 }
 0xb2c   : > { %2473 = vmatmul.mubr.msk.bf16.vlgmr.msra.gmra.mrb[28].mxu0 %vm1183_vm4, %v1515_v39  ;;  %v1728_v40 = vpop.xlane.xlu0 %1727  ;;  %v1870_v39 = vrot.slane %v3444_v11, %v1869_v37 }
 0xb2d   : > { %2708 = vrcp.f32 %v1728_v40  ;;  %2484 = vmatprep.mubr.msk.bf16.mxu0 %vm3026_vm0, %v3025_v0 }
 0xb2f   : > { %v2707_v41 = vpop.eup %2706 }
 0xb30   : > { %v1622_v42 = vmul.f32 %v2707_v41, %v2699_v25  ;;  %v1625_v43 = vpop.permute.xlu0 %1624 }
 0xb31   : > { %2483 = vmatpush3.bf16.msra.mxu0 %v1625_v43 }
 0xb32   : > { %v1623_v44 = vpack.c.bf16 %v1622_v42, %v1622_v42  ;;  %2494 = vmatprep.subr.bf16.mxu0 %v3025_v0  ;;  %v1875_v42 = vrot.slane %v3444_v11, %v1874_v38  ;;  %v2313_v11 = vld [vmem:[%s3768_s24] ss:$0 sm:$0xff] }
 0xb34   : > { %2485 = vmatmul.mubr.msk.bf16.vlgmr.msra.gmra.mrb[32].mxu0 %vm1183_vm4, %v1623_v44 }
 0xb35   : > { %2495 = vmatpush3.bf16.msra.mxu0 %v1733_v45  ;;  %2496 = vmatprep.mubr.msk.bf16.mxu0 %vm3026_vm0, %v3025_v0 }
 0xb36   : > { %2508 = vmatprep.subr.bf16.mxu0 %v3025_v0 }
 0xb37   : > { %v2709_v46 = vpop.eup %2708 }
 0xb38   : > { %v1730_v47 = vmul.f32 %v2709_v46, %v2701_v28 }
 0xb3a   : > { %v1731_v48 = vpack.c.bf16 %v1730_v47, %v1730_v47 }
 0xb3c   : > { %2497 = vmatmul.mubr.msk.bf16.vlgmr.msra.gmra.mrb[36].mxu0 %vm1183_vm4, %v1731_v48 }
 0xb3d   : > { %2512 = vmatprep.mubr.msk.bf16.mxu0 %vm3026_vm0, %v3025_v0  ;;  %2509 = vmatpush3.bf16.msra.mxu0 %v2670_v31 }
 0xb3e   : > { %2510 = vmatprep.subr.bf16.mxu0 %v3025_v0 }
 0xb41   : > { %2511 = vmatpush3.bf16.msra.mxu0 %v2671_v32 }
 0xb8c   : > { %v1447_v49 = vpop.f32.mrb[24].mxu0 }
 0xb8d   : > { %v2462_v50 = vpop.f32.mrb[25].mxu0 }
 0xb8e   : > { %v1450_v51 = vpop.f32.mrb[26].mxu0 }
 0xb8f   : > { %v2463_v52 = vpop.f32.mrb[27].mxu0 }
 0xbff   : > { %v1556_v54 = vpop.f32.mrb[28].mxu0 }
 0xc00   : > { %1779 = vrot.lane.b32.xlu1 %v1556_v54, %s3030_s10  ;;  %v2474_v55 = vpop.f32.mrb[29].mxu0  ;;  %s3767_s10 = sld [smem:[#allocation30_spill]] }
 0xc01   : > { %v1559_v56 = vpop.f32.mrb[30].mxu0  ;;  %v656_v55 = vld [vmem:[#allocation13 + $0x8] sm:$0x7] }
 0xc02   : > { %v2475_v57 = vpop.f32.mrb[31].mxu0 }
 0xc06   : > { %v2673_v33 = vld [vmem:[%s3767_s10 + $0x8] sm:$0xff]   ;;  %v2674_v46 = vld [vmem:[%s3767_s10 + $0x10] sm:$0xff]   ;;  %v2675_v47 = vld [vmem:[%s3767_s10 + $0x18] sm:$0xff]  }
 0xc07   : > { %v1664_v60 = vpop.f32.mrb[32].mxu0 }
 0xc08   : > { %1783 = vrot.lane.b32.xlu0 %v1664_v60, %s3031_s11  ;;  %v2486_v61 = vpop.f32.mrb[33].mxu0  ;;  %s3658_s11 = scalar_lea.hbm %s3769_s6, %s2323_s8 }
 0xc09   : > { %v1667_v62 = vpop.f32.mrb[34].mxu0 }
 0xc0a   : > { %v2487_v63 = vpop.f32.mrb[35].mxu0 }
 0xc0f   : > { %v1772_v1 = vpop.f32.mrb[36].mxu0 }
 0xc10   : > { %1787 = vrot.lane.b32.xlu1 %v1772_v1, %s3032_s4  ;;  %v2498_v2 = vpop.f32.mrb[37].mxu0  ;;  %s2052_s4 = scalar_lea.sflag [#allocation4], %s3387_s13 }
 0xc11   : > { %v1775_v4 = vpop.f32.mrb[38].mxu0 }
 0xc12   : > { %v2499_v5 = vpop.f32.mrb[39].mxu0 }
 0xc72   : > { %v1780_v6 = vpop.permute.xlu1 %1779 }
 0xc73   : > { %v1790_v8 = vsel %vm727_vm1, %v1447_v49, %v1780_v6 }
 0xc7a   : > { %v1784_v7 = vpop.permute.xlu0 %1783 }
 0xc7b   : > { %v1791_v12 = vsel %vm1183_vm4, %v1790_v8, %v1784_v7 }
 0xc82   : > { %v1788_v13 = vpop.permute.xlu1 %1787 }
 0xc83   : > { %v1792_v14 = vsel %vm1185_vm5, %v1791_v12, %v1788_v13  ;;  %v2043_v12 = vrot.slane %v656_v55, %v1190_v59 }
 0xc84   : > { %v1793_v15 = vpack.c.bf16 %v1792_v14, %v1792_v14  ;;  %v2048_v14 = vrot.slane %v656_v55, %v1264_v20 }
 0xc86   : > { %2505 = vmatmul.mubr.msk.bf16.vlgmr.msra.gmra.mrb[36].mxu1 %vm682_vm2, %v1793_v15 }
 0xc87   : > { %2524 = vmatprep.mubr.msk.bf16.mxu1 %vm3026_vm0, %v3025_v0 }
 0xd59   : > { %v1847_v17 = vpop.f32.mrb[36].mxu1 }
 0xd5a   : > { %v1848_v18 = vadd.f32 %v1847_v17, %v1797_v16  ;;  %v2506_v19 = vpop.f32.mrb[37].mxu1 }
 0xd5b   : > { %v1850_v21 = vpop.f32.mrb[38].mxu1 }
 0xd5c   : > { %v2507_v22 = vpop.f32.mrb[39].mxu1  ;;  %v1853_v23 = vadd.f32 %v1848_v18, %v3538_v27  ;;  %v2672_v27 = vld [vmem:[%s3767_s10] sm:$0xff]  }
 0xd5d   : > { %2517 = vmatpush3.bf16.msra.mxu1 %v2672_v27 }
 0xd5e   : > { %v1854_v24 = vsel %vm682_vm2, %v1853_v23, 0.0  ;;  %2518 = vmatprep.subr.bf16.mxu1 %v3025_v0 }
 0xd5f   : > { %1855 = vadd.xlane.f32.xlu0 %v1854_v24 }
 0xd61   : > { %2519 = vmatpush3.bf16.msra.mxu1 %v2673_v33 }
 0xd62   : > { %2520 = vmatprep.subr.bf16.mxu1 %v3025_v0 }
 0xd65   : > { %2521 = vmatpush3.bf16.msra.mxu1 %v2674_v46 }
 0xd66   : > { %2522 = vmatprep.subr.bf16.mxu1 %v3025_v0  ;;  %v1957_v0 = vrot.slane %v656_v55, %v668_v10 }
 0xd69   : > { %2523 = vmatpush3.bf16.msra.mxu1 %v2675_v47 }
 0xdec   : > { %v1856_v25 = vpop.xlane.xlu0 %1855 }
 0xded   : > { %v1857_v26 = vmul.f32 0.03125, %v1856_v25 }
 0xdef   : > { %v1858_v28 = vsub.f32 %v1853_v23, %v1857_v26 }
 0xdf1   : > { %v1859_v29 = vmul.f32 %v1858_v28, %v1858_v28 }
 0xdf3   : > { %v1860_v30 = vsel %vm682_vm2, %v1859_v29, 0.0 }
 0xdf4   : > { %1861 = vadd.xlane.f32.xlu1 %v1860_v30 }
 0xe81   : > { %v1862_v34 = vpop.xlane.xlu1 %1861 }
 0xe82   : > { %v1863_v35 = vmul.f32 0.03125, %v1862_v34 }
 0xe84   : > { %v1864_v36 = vadd.f32 1e-05, %v1863_v35 }
 0xe86   : > { %2710 = vrsqrt.f32 %v1864_v36 }
 0xe90   : > { %v2711_v40 = vpop.eup %2710 }
 0xe91   : > { %v1866_v41 = vmul.f32 %v2711_v40, %v1858_v28 }
 0xe93   : > { %v1871_v43 = vmul.f32 %v1870_v39, %v1866_v41 }
 0xe95   : > { %v1876_v44 = vadd.f32 %v1875_v42, %v1871_v43 }
 0xe97   : > { %v1877_v45 = vpack.c.bf16 %v1876_v44, %v1876_v44 }
 0xe99   : > { %2513 = vmatmul.mubr.msk.bf16.vlgmr.msra.gmra.mrb[40].mxu0 %vm682_vm2, %v1877_v45 }
 0xf6c   : > { %v1938_v48 = vpop.f32.mrb[40].mxu0 }
 0xf6d   : > { %v1939_v49 = vadd.f32 %v2313_v11, %v1938_v48  ;;  %v2514_v50 = vpop.f32.mrb[41].mxu0 }
 0xf6e   : > { %v1941_v51 = vpop.f32.mrb[42].mxu0 }
 0xf6f   : > { %v1944_v52 = vmax.f32 %v1939_v49, 0.0  ;;  %v2515_v53 = vpop.f32.mrb[43].mxu0 }
 0xf71   : > { %v1945_v54 = vpack.c.bf16 %v1944_v52, %v1944_v52 }
 0xf73   : > { %2525 = vmatmul.mubr.msk.bf16.vlgmr.msra.gmra.mrb[40].mxu1 %vm1982_vm6, %v1945_v54 }
0x1046   : > { %v2020_v56 = vpop.f32.mrb[40].mxu1 }
0x1047   : > { %v2021_v57 = vadd.f32 %v2020_v56, %v1957_v0  ;;  %v2526_v58 = vpop.f32.mrb[41].mxu1 }
0x1048   : > { %v2023_v60 = vpop.f32.mrb[42].mxu1 }
0x1049   : > { %v2527_v61 = vpop.f32.mrb[43].mxu1  ;;  %v2026_v62 = vadd.f32 %v2021_v57, %v1876_v44 }
0x104b   : > { %v2027_v63 = vsel %vm682_vm2, %v2026_v62, 0.0 }
0x104c   : > { %2028 = vadd.xlane.f32.xlu0 %v2027_v63 }
0x10d9   : > { %v2029_v1 = vpop.xlane.xlu0 %2028 }
0x10da   : > { %v2030_v2 = vmul.f32 0.03125, %v2029_v1 }
0x10dc   : > { %v2031_v4 = vsub.f32 %v2026_v62, %v2030_v2 }
0x10de   : > { %v2032_v5 = vmul.f32 %v2031_v4, %v2031_v4 }
0x10e0   : > { %v2033_v6 = vsel %vm682_vm2, %v2032_v5, 0.0 }
0x10e1   : > { %2034 = vadd.xlane.f32.xlu0 %v2033_v6 }
0x116e   : > { %v2035_v7 = vpop.xlane.xlu0 %2034 }
0x116f   : > { %v2036_v10 = vmul.f32 0.03125, %v2035_v7 }
0x1171   : > { %v2037_v8 = vadd.f32 1e-05, %v2036_v10 }
0x1173   : > { %2712 = vrsqrt.f32 %v2037_v8 }
0x117d   : > { %v2713_v13 = vpop.eup %2712 }
0x117e   : > { %v2039_v15 = vmul.f32 %v2713_v13, %v2031_v4 }
0x1180   : > { %v2044_v3 = vmul.f32 %v2043_v12, %v2039_v15 }
0x1182   : > { %v2049_v16 = vadd.f32 %v2048_v14, %v2044_v3 }
0x1184   : > { %2050 = vst.msk [vmem:[%s629_s18] sm:$0xff] %vm682_vm2, %v2049_v16 }
0x1185   : > { %2927 = shalt.err (!%p2924_p6)
}
0x1186   : > { %s2928_s13 = scalar_lea.hbm %s3658_s11, 128  ;;  %s2932_s15 = scalar_lea.hbm %s3769_s6, 256 }
0x1187   : > { %p2929_p10 = scmp.ne.s32.totalorder %s3658_s11, %s2928_s13  ;;  %p2933_p3 = scmp.lt.u32.totalorder %s3658_s11, %s3769_s6 }
0x1188   : > { %p2934_p12 = scmp.lt.u32.totalorder %s2932_s15, %s2928_s13  ;;  %p2936_p0 = scmp.lt.u32.totalorder %s2928_s13, %s3658_s11 }
0x1189   : > { %p2930_p9 = pnand %p2929_p10, %p3770_p7 }
0x118a   : > { %p2935_p13 = por %p2934_p12, %p2933_p3 }
0x118b   : > { %p2931_p8 = pneg %p2930_p9 }
0x118c   : > { %p2937_p5 = por %p2936_p0, %p2935_p13 }
0x118e   : > { %p2938_p2 = pnand %p2937_p5, %p2931_p8 }
0x1190   : > { %2941 = shalt.err (!%p2938_p2)
}
0x1191   : > { %2552 = dma.vmem_to_hbm [thread:$0]  (%p3770_p7), %s3660_s17, 128, %s3658_s11, %s2052_s4  }
0x1192 PF: > { %s2078_s8 = sand.u32 1, %s2992_s25   ;;  %p3771_p4 = scmp.ne.s32.totalorder %s3753_s19, 0 }
0x1193   : > { %p3772_p11 = scmp.ge.s32.totalorder %s3012_s30, 2  ;;  %s2079_s18 = scalar_lea.sflag [#allocation4], %s2078_s8 }
0x1195   : > { %p2578_p1 = pnand %p3772_p11, %p3771_p4 }
0x1197   : > { %2987 = dma.done.wait (!%p2578_p1), %s2079_s18, 128  }
0x1198   : > { %2989 = vsyncadd (!%p2578_p1), %s2079_s18, 4294967168  ;;  %s34_s30 = sadd.s32 1, %s3012_s30   ;;  %s3773_s25 = smov %s2996_s26 }
0x1199   : > { %p31_p6 = scmp.ge.s32.totalorder %s34_s30, 4   ;;  %s3774_s26 = smov %s3000_s27 }
0x119a   : > { %s3775_s27 = smov %s3307_s16  ;;  %s3776_s28 = smov %s3008_s29 }
0x119b   : > { %s3777_s29 = smov %s3779_s5  ;;  %33 = sbr.rel (!%p31_p6) target bundleno = 23 (0x17), region = 159 }
0x11a2   :  { %2084 = vsyncpa [#allocation3], 1 }
0x11a3   :  { %2086 = vsyncpa [#allocation3 + $0x1], 1 }
0x11a4   :  { %2087 = vsyncpa [#allocation6], 1 }
0x11a5   :  { %2089 = vsyncpa [#allocation6 + $0x1], 1 }
0x11a6   :  { %2090 = vsyncpa [#allocation9], 1 }
0x11a7   :  { %2091 = vsyncpa [#allocation12], 1 }
0x11a8   :  { %2092 = vsyncpa [#allocation4], 1 }
0x11a9   :  { %2094 = vsyncpa [#allocation4 + $0x1], 1 }

</bundles_post_ra>
